<compile_context>
chip_gen: v7x
topology: tpu7x:2x2x1
jax: 0.10.0
libtpu: 0.0.40
codegen_flags: <defaults>
</compile_context>

<pallas_src>
import numpy as np
import jax
import jax.numpy as jnp
from jax.experimental import pallas as pl
from jax.experimental.pallas import tpu as pltpu

C1 = 32      # conv1 output channels (fixed by the module)
HID = 128    # decoder / fc hidden width (fixed by the module)


# ---------------------------------------------------------------------------
# Fused kernel: per-channel temporal CNN feature extractor + per-node linears
# ("addict"), cosine-similarity graph attention, per-node decoders, fc head.
# Single invocation (no grid); all operands are whole-array VMEM refs.
#
# Kernel-side layouts (channel-major / node-major so batched matmuls have the
# batch dim leading):
#   x      -> [C, N, S]   (raw, unscaled: 1/18000 folded into weights)
#   feat   -> [C, N, E]
#   nodes  -> [Nn, N, E]
# ---------------------------------------------------------------------------
def _cocoons_kernel(x_ref, w1_ref, b1_ref, w2a_ref, w2b_ref, b2_ref,
                    aw_ref, ab_ref, wqd_ref, wkd_ref, bq_ref, bk_ref, adj_ref,
                    dw1a_ref, dw1b_ref, dw1c_ref, db1_ref, dw2_ref, db2_ref,
                    fw1a_ref, fw1b_ref, fw1c_ref, fb1_ref, fw2_ref, fb2_ref,
                    out_ref):
    f32 = jnp.float32
    x = x_ref[...]                                   # [C, N, S] raw input
    Cc, Nb, S = x.shape
    w1 = w1_ref[...]                                 # [C, 3, C1] (BN + 1/18000 folded)
    b1 = b1_ref[...]                                 # [C, 1, C1] (BN folded)
    C1v = w1.shape[-1]

    # Batched dot_general dims: contract last lhs dim with middle rhs dim,
    # batch over the leading (channel / node) dim.
    dn_b = (((2,), (1,)), ((0,), (0,)))

    # ---- Conv1d(1->32, k=3, pad=1) [+ folded BN] + ReLU, all channels at once
    zc = jnp.zeros((Cc, Nb, 1), f32)
    xpad = jnp.concatenate([zc, x, zc], axis=2)      # [C, N, S+2]
    out1 = jnp.zeros((Cc, Nb, S, C1v), f32) + b1[:, None, :, :]
    for k in range(3):                               # 3 shifted multiply-accumulates
        out1 = out1 + xpad[:, :, k:k + S, None] * w1[:, None, k:k + 1, :]
    h1 = jnp.maximum(out1, 0.0)                      # [C, N, S, C1]

    # ---- Conv1d(32->E, k=2, pad=1) [+ folded BN] + ReLU + AdaptiveAvgPool1d(1)
    w2a = w2a_ref[...]                               # [C, C1, E]  (kernel tap k=0)
    w2b = w2b_ref[...]                               # [C, C1, E]  (kernel tap k=1)
    b2 = b2_ref[...]                                 # [C, 1, E]
    zr = jnp.zeros((Cc, Nb, 1, C1v), f32)
    h1p = jnp.concatenate([zr, h1, zr], axis=2)      # [C, N, S+2, C1]
    T = S + 1                                        # conv2 output length
    feats = []
    for n in range(Nb):                              # tiny static batch loop (N=2)
        t0 = h1p[:, n, 0:T, :]                       # [C, T, C1]
        t1 = h1p[:, n, 1:T + 1, :]                   # [C, T, C1]
        o2 = (jax.lax.dot_general(t0, w2a, dn_b, preferred_element_type=f32)
              + jax.lax.dot_general(t1, w2b, dn_b, preferred_element_type=f32)
              + b2)                                  # [C, T, E]
        h2 = jnp.maximum(o2, 0.0)
        feats.append(jnp.mean(h2, axis=1))           # [C, E]  (adaptive avg pool)
    feat = jnp.stack(feats, axis=1)                  # [C, N, E]

    ch0 = feat[0]                                    # [N, E]   (channel 0)
    nodes = feat[1:]                                 # [Nn, N, E]

    # ---- "addict": per-node Linear(E,E), batched over the node dim
    cat = jax.lax.dot_general(nodes, aw_ref[...], dn_b,
                              preferred_element_type=f32) + ab_ref[...]   # [Nn, N, E]
    cat1 = cat                                       # detach().clone(): same values

    # ---- cosine-similarity graph attention (only diag(W_q)/diag(W_k) matter)
    Q = cat * wqd_ref[...] + bq_ref[...]             # [Nn, N, E]
    K = cat * wkd_ref[...] + bk_ref[...]
    adj = adj_ref[...]                               # [Nn, Nn]
    mixed_cols = []
    for b in range(Nb):                              # tiny static batch loop (N=2)
        Qb = Q[:, b, :]                              # [Nn, E]
        Kb = K[:, b, :]
        qn = jnp.sqrt(jnp.sum(Qb * Qb, axis=-1, keepdims=True))
        kn = jnp.sqrt(jnp.sum(Kb * Kb, axis=-1, keepdims=True))
        sim = jnp.dot(Qb, Kb.T, preferred_element_type=f32)
        sim = sim / (qn * kn.T + 1e-8) + adj         # keep the +1e-8 guard
        sim = sim - jnp.max(sim, axis=-1, keepdims=True)   # softmax over keys
        p = jnp.exp(sim)
        att = p * pl.reciprocal(jnp.sum(p, axis=-1, keepdims=True))
        mixed_cols.append(jnp.dot(att, cat[:, b, :], preferred_element_type=f32))
    mixed = jnp.stack(mixed_cols, axis=1)            # [Nn, N, E]

    # ---- per-node decoder: Linear(3E,128)+ReLU+Linear(128,1), concat-free
    h = (jax.lax.dot_general(nodes, dw1a_ref[...], dn_b, preferred_element_type=f32)
         + jax.lax.dot_general(cat1, dw1b_ref[...], dn_b, preferred_element_type=f32)
         + jax.lax.dot_general(mixed, dw1c_ref[...], dn_b, preferred_element_type=f32)
         + db1_ref[...])                             # [Nn, N, HID]
    h = jnp.maximum(h, 0.0)
    dec_nb = jnp.sum(h * dw2_ref[...], axis=-1) + db2_ref[...]   # [Nn, N]
    dec = dec_nb.T                                   # [N, Nn]

    # ---- fc head (concat-free): fw1 pre-split into (ch0 | x_flat | dec) blocks.
    # x_flat contribution: sum_c x[c] @ fw1b[c]  (1/18000 already folded into fw1b)
    xh = jax.lax.dot_general(x, fw1b_ref[...], dn_b, preferred_element_type=f32)  # [C,N,HID]
    hf = (jnp.dot(ch0, fw1a_ref[...], preferred_element_type=f32)
          + jnp.sum(xh, axis=0)
          + jnp.dot(dec, fw1c_ref[...], preferred_element_type=f32)
          + fb1_ref[...])                            # [N, HID]
    hf = jnp.maximum(hf, 0.0)
    xc = jnp.dot(hf, fw2_ref[...], preferred_element_type=f32) + fb2_ref[...]
    out_ref[...] = jax.nn.sigmoid(xc)                # [N, 1]


def cocoons_forward(x_ncs, KP):
    """x_ncs: PyTorch-layout input [N, total_channels, seq_len]; KP: folded params."""
    N, C, S = x_ncs.shape
    x_cns = jnp.transpose(x_ncs, (1, 0, 2))          # [C, N, S] (tiny; fused by XLA)
    args = (x_cns, KP['w1'], KP['b1'], KP['w2a'], KP['w2b'], KP['b2'],
            KP['aw'], KP['ab'], KP['wqd'], KP['wkd'], KP['bq'], KP['bk'], KP['adj'],
            KP['dw1a'], KP['dw1b'], KP['dw1c'], KP['db1'], KP['dw2'], KP['db2'],
            KP['fw1a'], KP['fw1b'], KP['fw1c'], KP['fb1'], KP['fw2'], KP['fb2'])
    vmem = pl.BlockSpec(memory_space=pltpu.MemorySpace.VMEM)   # whole-array VMEM blocks
    return pl.pallas_call(
        _cocoons_kernel,
        out_shape=jax.ShapeDtypeStruct((N, 1), jnp.float32),
        in_specs=[vmem] * len(args),
        out_specs=vmem,
    )(*args)


# ---------------------------------------------------------------------------
# Deterministic "PyTorch-equivalent" parameters (same layouts as before).
#   c1w[c, k, o]        <-> torch conv1 weight[o, 0, k]
#   c2w[c, k*C1+ci, o]  <-> torch conv2 weight[o, ci, k]
# ---------------------------------------------------------------------------
def init_params(key, C, Nn, S, E):
    ks = jax.random.split(key, 26)
    n = lambda k, shape, s: (jax.random.normal(k, shape, jnp.float32) * s)
    P = {}
    P['c1w'] = n(ks[0], (C, 3, C1), 0.3)
    P['c1b'] = n(ks[1], (C, 1, C1), 0.1)
    P['bn1g'] = 1.0 + n(ks[2], (C, 1, C1), 0.05)
    P['bn1b'] = n(ks[3], (C, 1, C1), 0.05)
    P['bn1m'] = n(ks[4], (C, 1, C1), 0.05)
    P['bn1v'] = 1.0 + jnp.abs(n(ks[5], (C, 1, C1), 0.1))
    P['c2w'] = n(ks[6], (C, 2 * C1, E), 1.0 / (2 * C1) ** 0.5)
    P['c2b'] = n(ks[7], (C, 1, E), 0.1)
    P['bn2g'] = 1.0 + n(ks[8], (C, 1, E), 0.05)
    P['bn2b'] = n(ks[9], (C, 1, E), 0.05)
    P['bn2m'] = n(ks[10], (C, 1, E), 0.05)
    P['bn2v'] = 1.0 + jnp.abs(n(ks[11], (C, 1, E), 0.1))
    P['aw'] = n(ks[12], (Nn, E, E), 1.0 / E ** 0.5)
    P['ab'] = n(ks[13], (Nn, 1, E), 0.05)
    P['wqd'] = n(ks[14], (Nn, 1, E), 1.0 / E ** 0.5)        # diag(W_q[n])
    P['wkd'] = n(ks[15], (Nn, 1, E), 1.0 / E ** 0.5)        # diag(W_k[n])
    P['bq'] = jnp.zeros((Nn, 1, 1), jnp.float32)            # nn.init.zeros_
    P['bk'] = jnp.zeros((Nn, 1, 1), jnp.float32)
    P['adj'] = n(ks[16], (Nn, Nn), (2.0 / (2 * Nn)) ** 0.5)
    P['dw1'] = n(ks[17], (Nn, 3 * E, HID), 1.0 / (3 * E) ** 0.5)
    P['db1'] = n(ks[18], (Nn, 1, HID), 0.05)
    P['dw2'] = n(ks[19], (Nn, 1, HID), 1.0 / HID ** 0.5)
    P['db2'] = n(ks[20], (Nn, 1), 0.05)
    F = E + C * S + Nn
    P['fw1'] = n(ks[21], (F, HID), 1.0 / F ** 0.5)
    P['fb1'] = n(ks[22], (1, HID), 0.05)
    P['fw2'] = n(ks[23], (HID, 1), 1.0 / HID ** 0.5)
    P['fb2'] = n(ks[24], (1, 1), 0.05)
    return P


# ---------------------------------------------------------------------------
# Fold inference-mode BatchNorms and the 1/18000 input scaling into weights,
# and pre-split concatenated weight blocks so the kernel is concat-free.
# ---------------------------------------------------------------------------
def fold_params(P, S):
    eps = 1e-5
    C = P['c1w'].shape[0]
    E = P['c2w'].shape[-1]
    a1 = P['bn1g'] * jax.lax.rsqrt(P['bn1v'] + eps)          # [C, 1, C1]
    a2 = P['bn2g'] * jax.lax.rsqrt(P['bn2v'] + eps)          # [C, 1, E]
    # channels 1.. are divided by 18000 before the conv stacks and the fc input
    scale = jnp.concatenate(
        [jnp.ones((1, 1, 1), jnp.float32),
         jnp.full((C - 1, 1, 1), 1.0 / 18000.0, jnp.float32)], axis=0)   # [C,1,1]

    K = {}
    K['w1'] = P['c1w'] * scale * a1                          # conv1 + scale + BN1
    K['b1'] = P['c1b'] * a1 + P['bn1b'] - P['bn1m'] * a1
    w2f = P['c2w'] * a2                                      # conv2 + BN2
    K['w2a'] = w2f[:, :C1, :]                                # kernel tap k=0
    K['w2b'] = w2f[:, C1:, :]                                # kernel tap k=1
    K['b2'] = P['c2b'] * a2 + P['bn2b'] - P['bn2m'] * a2

    for name in ('aw', 'ab', 'wqd', 'wkd', 'bq', 'bk', 'adj',
                 'db1', 'dw2', 'db2', 'fb1', 'fw2', 'fb2'):
        K[name] = P[name]

    # decoder Linear(3E,128) split into (nodes | cat1 | mixed) blocks
    K['dw1a'] = P['dw1'][:, :E, :]
    K['dw1b'] = P['dw1'][:, E:2 * E, :]
    K['dw1c'] = P['dw1'][:, 2 * E:, :]

    # fc Linear(E + C*S + Nn, 128) split into (ch0 | x_flat | dec) blocks;
    # x_flat rows reshaped to [C, S, HID] with the 1/18000 scale folded in.
    K['fw1a'] = P['fw1'][:E, :]
    K['fw1b'] = P['fw1'][E:E + C * S, :].reshape(C, S, HID) * scale
    K['fw1c'] = P['fw1'][E + C * S:, :]
    return K


# ---------------------------------------------------------------------------
# Pure-JAX reference (original, unfolded parameters) used for verification.
# ---------------------------------------------------------------------------
def reference(x_ncs, P):
    x = x_ncs.at[:, 1:, :].set(x_ncs[:, 1:, :] / 18000.0)
    N, C, S = x.shape
    relu = jax.nn.relu
    xpad = jnp.pad(x, ((0, 0), (0, 0), (1, 1)))
    cols1 = jnp.stack([xpad[:, :, k:k + S] for k in range(3)], -1)       # [N,C,S,3]
    out1 = jnp.einsum('ncsk,cko->ncso', cols1, P['c1w']) + P['c1b'][None]
    h1 = (out1 - P['bn1m'][None]) * jax.lax.rsqrt(P['bn1v'][None] + 1e-5)
    h1 = relu(h1 * P['bn1g'][None] + P['bn1b'][None])
    h1p = jnp.pad(h1, ((0, 0), (0, 0), (1, 1), (0, 0)))
    T = S + 1
    cols2 = jnp.concatenate([h1p[:, :, k:k + T, :] for k in range(2)], -1)
    out2 = jnp.einsum('nctf,cfo->ncto', cols2, P['c2w']) + P['c2b'][None]
    h2 = (out2 - P['bn2m'][None]) * jax.lax.rsqrt(P['bn2v'][None] + 1e-5)
    h2 = relu(h2 * P['bn2g'][None] + P['bn2b'][None])
    feat = jnp.mean(h2, axis=2)                                          # [N,C,E]
    ch0, nodes = feat[:, 0], feat[:, 1:]
    cat = jnp.einsum('bne,neo->bno', nodes, P['aw']) + P['ab'][:, 0, :][None]
    Q = cat * P['wqd'][:, 0, :][None] + P['bq'][:, 0, :][None]
    K = cat * P['wkd'][:, 0, :][None] + P['bk'][:, 0, :][None]
    qn = jnp.linalg.norm(Q, axis=-1, keepdims=True)
    kn = jnp.linalg.norm(K, axis=-1, keepdims=True)
    sim = jnp.einsum('bie,bje->bij', Q, K) / (qn * jnp.swapaxes(kn, -2, -1) + 1e-8)
    sim = sim + P['adj'][None]
    att = jax.nn.softmax(sim, axis=2)
    mixed = jnp.einsum('bij,bje->bie', att, cat)
    total = jnp.concatenate([nodes, cat, mixed], -1)
    h = relu(jnp.einsum('bnd,ndh->bnh', total, P['dw1']) + P['db1'][:, 0, :][None])
    dec = jnp.einsum('bnh,nh->bn', h, P['dw2'][:, 0, :]) + P['db2'][:, 0][None]
    fc_in = jnp.concatenate([ch0, x.reshape(N, -1), dec], -1)
    hf = relu(fc_in @ P['fw1'] + P['fb1'])
    return jax.nn.sigmoid(hf @ P['fw2'] + P['fb2'])


if __name__ == "__main__":
    # small shapes consistent with the module: seq_len=5, embed_dim=32, num_nodes=7
    S, E, Nn, N = 5, 32, 7, 2
    C = Nn + 1                                              # total_channels

    key = jax.random.PRNGKey(0)
    kx, kp = jax.random.split(key)
    x = jax.random.uniform(kx, (N, C, S), jnp.float32)      # [N, total_channels, seq_len]
    x = x.at[:, 1:, :].multiply(18000.0)                    # raw counts (module scales them)
    P = init_params(kp, C, Nn, S, E)
    KP = fold_params(P, S)                                  # folded / split kernel params

    fwd = jax.jit(cocoons_forward)
    out = jax.block_until_ready(fwd(x, KP))
    ref = jax.block_until_ready(reference(x, P))
    assert out.shape == (N, 1)
    np.testing.assert_allclose(np.asarray(out), np.asarray(ref), rtol=2e-4, atol=2e-5)
    print("KERNEL_OK")
</pallas_src>

<mosaic_0001>
module attributes {stable_mosaic.version = 11 : i64} {
  func.func @_cocoons_kernel(%arg0: memref<8x2x5xf32, #tpu.memory_space<vmem>>, %arg1: memref<8x3x32xf32, #tpu.memory_space<vmem>>, %arg2: memref<8x1x32xf32, #tpu.memory_space<vmem>>, %arg3: memref<8x32x32xf32, #tpu.memory_space<vmem>>, %arg4: memref<8x32x32xf32, #tpu.memory_space<vmem>>, %arg5: memref<8x1x32xf32, #tpu.memory_space<vmem>>, %arg6: memref<7x32x32xf32, #tpu.memory_space<vmem>>, %arg7: memref<7x1x32xf32, #tpu.memory_space<vmem>>, %arg8: memref<7x1x32xf32, #tpu.memory_space<vmem>>, %arg9: memref<7x1x32xf32, #tpu.memory_space<vmem>>, %arg10: memref<7x1x1xf32, #tpu.memory_space<vmem>>, %arg11: memref<7x1x1xf32, #tpu.memory_space<vmem>>, %arg12: memref<7x7xf32, #tpu.memory_space<vmem>>, %arg13: memref<7x32x128xf32, #tpu.memory_space<vmem>>, %arg14: memref<7x32x128xf32, #tpu.memory_space<vmem>>, %arg15: memref<7x32x128xf32, #tpu.memory_space<vmem>>, %arg16: memref<7x1x128xf32, #tpu.memory_space<vmem>>, %arg17: memref<7x1x128xf32, #tpu.memory_space<vmem>>, %arg18: memref<7x1xf32, #tpu.memory_space<vmem>>, %arg19: memref<32x128xf32, #tpu.memory_space<vmem>>, %arg20: memref<8x5x128xf32, #tpu.memory_space<vmem>>, %arg21: memref<7x128xf32, #tpu.memory_space<vmem>>, %arg22: memref<1x128xf32, #tpu.memory_space<vmem>>, %arg23: memref<128x1xf32, #tpu.memory_space<vmem>>, %arg24: memref<1x1xf32, #tpu.memory_space<vmem>>, %arg25: memref<2x1xf32, #tpu.memory_space<vmem>>) attributes {dimension_semantics = [], scalar_prefetch = 0 : i64, scratch_operands = 0 : i64, tpu.core_type = #tpu.core_type<tc>} {
    %c0 = arith.constant 0 : index
    %c0_0 = arith.constant 0 : index
    %c0_1 = arith.constant 0 : index
    %0 = vector.load %arg0[%c0, %c0_0, %c0_1] : memref<8x2x5xf32, #tpu.memory_space<vmem>>, vector<8x2x5xf32>
    %c0_2 = arith.constant 0 : index
    %c0_3 = arith.constant 0 : index
    %c0_4 = arith.constant 0 : index
    %1 = vector.load %arg1[%c0_2, %c0_3, %c0_4] : memref<8x3x32xf32, #tpu.memory_space<vmem>>, vector<8x3x32xf32>
    %c0_5 = arith.constant 0 : index
    %c0_6 = arith.constant 0 : index
    %c0_7 = arith.constant 0 : index
    %2 = vector.load %arg2[%c0_5, %c0_6, %c0_7] : memref<8x1x32xf32, #tpu.memory_space<vmem>>, vector<8x1x32xf32>
    %cst = arith.constant 0.000000e+00 : f32
    %3 = vector.broadcast %cst : f32 to vector<8x2x1xf32>
    %4 = tpu.concatenate %3, %0, %3 in 2 : vector<8x2x1xf32>, vector<8x2x5xf32>, vector<8x2x1xf32> -> vector<8x2x7xf32>
    %cst_8 = arith.constant 0.000000e+00 : f32
    %5 = vector.broadcast %cst_8 : f32 to vector<8x2x5x32xf32>
    %6 = vector.shape_cast %2 : vector<8x1x32xf32> to vector<8x1x1x32xf32>
    %7 = vector.broadcast %6 : vector<8x1x1x32xf32> to vector<8x2x5x32xf32>
    %8 = arith.addf %5, %7 : vector<8x2x5x32xf32>
    %9 = vector.extract_strided_slice %4 {offsets = [0, 0, 0], sizes = [8, 2, 5], strides = [1, 1, 1]} : vector<8x2x7xf32> to vector<8x2x5xf32>
    %10 = vector.shape_cast %9 : vector<8x2x5xf32> to vector<8x2x5x1xf32>
    %11 = vector.extract_strided_slice %1 {offsets = [0, 0, 0], sizes = [8, 1, 32], strides = [1, 1, 1]} : vector<8x3x32xf32> to vector<8x1x32xf32>
    %12 = vector.shape_cast %11 : vector<8x1x32xf32> to vector<8x1x1x32xf32>
    %13 = vector.broadcast %10 : vector<8x2x5x1xf32> to vector<8x2x5x32xf32>
    %14 = vector.broadcast %12 : vector<8x1x1x32xf32> to vector<8x2x5x32xf32>
    %15 = arith.mulf %13, %14 : vector<8x2x5x32xf32>
    %16 = arith.addf %8, %15 : vector<8x2x5x32xf32>
    %17 = vector.extract_strided_slice %4 {offsets = [0, 0, 1], sizes = [8, 2, 5], strides = [1, 1, 1]} : vector<8x2x7xf32> to vector<8x2x5xf32>
    %18 = vector.shape_cast %17 : vector<8x2x5xf32> to vector<8x2x5x1xf32>
    %19 = vector.extract_strided_slice %1 {offsets = [0, 1, 0], sizes = [8, 1, 32], strides = [1, 1, 1]} : vector<8x3x32xf32> to vector<8x1x32xf32>
    %20 = vector.shape_cast %19 : vector<8x1x32xf32> to vector<8x1x1x32xf32>
    %21 = vector.broadcast %18 : vector<8x2x5x1xf32> to vector<8x2x5x32xf32>
    %22 = vector.broadcast %20 : vector<8x1x1x32xf32> to vector<8x2x5x32xf32>
    %23 = arith.mulf %21, %22 : vector<8x2x5x32xf32>
    %24 = arith.addf %16, %23 : vector<8x2x5x32xf32>
    %25 = vector.extract_strided_slice %4 {offsets = [0, 0, 2], sizes = [8, 2, 5], strides = [1, 1, 1]} : vector<8x2x7xf32> to vector<8x2x5xf32>
    %26 = vector.shape_cast %25 : vector<8x2x5xf32> to vector<8x2x5x1xf32>
    %27 = vector.extract_strided_slice %1 {offsets = [0, 2, 0], sizes = [8, 1, 32], strides = [1, 1, 1]} : vector<8x3x32xf32> to vector<8x1x32xf32>
    %28 = vector.shape_cast %27 : vector<8x1x32xf32> to vector<8x1x1x32xf32>
    %29 = vector.broadcast %26 : vector<8x2x5x1xf32> to vector<8x2x5x32xf32>
    %30 = vector.broadcast %28 : vector<8x1x1x32xf32> to vector<8x2x5x32xf32>
    %31 = arith.mulf %29, %30 : vector<8x2x5x32xf32>
    %32 = arith.addf %24, %31 : vector<8x2x5x32xf32>
    %cst_9 = arith.constant 0.000000e+00 : f32
    %33 = vector.broadcast %cst_9 : f32 to vector<8x2x5x32xf32>
    %34 = arith.maximumf %32, %33 : vector<8x2x5x32xf32>
    %c0_10 = arith.constant 0 : index
    %c0_11 = arith.constant 0 : index
    %c0_12 = arith.constant 0 : index
    %35 = vector.load %arg3[%c0_10, %c0_11, %c0_12] : memref<8x32x32xf32, #tpu.memory_space<vmem>>, vector<8x32x32xf32>
    %c0_13 = arith.constant 0 : index
    %c0_14 = arith.constant 0 : index
    %c0_15 = arith.constant 0 : index
    %36 = vector.load %arg4[%c0_13, %c0_14, %c0_15] : memref<8x32x32xf32, #tpu.memory_space<vmem>>, vector<8x32x32xf32>
    %c0_16 = arith.constant 0 : index
    %c0_17 = arith.constant 0 : index
    %c0_18 = arith.constant 0 : index
    %37 = vector.load %arg5[%c0_16, %c0_17, %c0_18] : memref<8x1x32xf32, #tpu.memory_space<vmem>>, vector<8x1x32xf32>
    %cst_19 = arith.constant 0.000000e+00 : f32
    %38 = vector.broadcast %cst_19 : f32 to vector<8x2x1x32xf32>
    %39 = tpu.concatenate %38, %34, %38 in 2 : vector<8x2x1x32xf32>, vector<8x2x5x32xf32>, vector<8x2x1x32xf32> -> vector<8x2x7x32xf32>
    %40 = vector.extract_strided_slice %39 {offsets = [0, 0, 0, 0], sizes = [8, 1, 6, 32], strides = [1, 1, 1, 1]} : vector<8x2x7x32xf32> to vector<8x1x6x32xf32>
    %41 = vector.shape_cast %40 : vector<8x1x6x32xf32> to vector<8x6x32xf32>
    %42 = vector.extract_strided_slice %39 {offsets = [0, 0, 1, 0], sizes = [8, 1, 6, 32], strides = [1, 1, 1, 1]} : vector<8x2x7x32xf32> to vector<8x1x6x32xf32>
    %43 = vector.shape_cast %42 : vector<8x1x6x32xf32> to vector<8x6x32xf32>
    %cst_20 = arith.constant dense<0.000000e+00> : vector<8x6x32xf32>
    %44 = tpu.matmul %41, %35, %cst_20 {dimension_numbers = #tpu.dot_dimension_numbers<[2], [1], [1], [2], [0, 0, 0, 1, 1, 2], [0], [0]>} : vector<8x6x32xf32>, vector<8x32x32xf32>, vector<8x6x32xf32> -> vector<8x6x32xf32>
    %cst_21 = arith.constant dense<0.000000e+00> : vector<8x6x32xf32>
    %45 = tpu.matmul %43, %36, %cst_21 {dimension_numbers = #tpu.dot_dimension_numbers<[2], [1], [1], [2], [0, 0, 0, 1, 1, 2], [0], [0]>} : vector<8x6x32xf32>, vector<8x32x32xf32>, vector<8x6x32xf32> -> vector<8x6x32xf32>
    %46 = arith.addf %44, %45 : vector<8x6x32xf32>
    %47 = vector.broadcast %37 : vector<8x1x32xf32> to vector<8x6x32xf32>
    %48 = arith.addf %46, %47 : vector<8x6x32xf32>
    %cst_22 = arith.constant 0.000000e+00 : f32
    %49 = vector.broadcast %cst_22 : f32 to vector<8x6x32xf32>
    %50 = arith.maximumf %48, %49 : vector<8x6x32xf32>
    %cst_23 = arith.constant dense<0.000000e+00> : vector<8x32xf32>
    %51 = vector.multi_reduction <add>, %50, %cst_23 [1] : vector<8x6x32xf32> to vector<8x32xf32>
    %cst_24 = arith.constant 6.000000e+00 : f32
    %52 = vector.broadcast %cst_24 : f32 to vector<8x32xf32>
    %53 = arith.divf %51, %52 : vector<8x32xf32>
    %54 = vector.extract_strided_slice %39 {offsets = [0, 1, 0, 0], sizes = [8, 1, 6, 32], strides = [1, 1, 1, 1]} : vector<8x2x7x32xf32> to vector<8x1x6x32xf32>
    %55 = vector.shape_cast %54 : vector<8x1x6x32xf32> to vector<8x6x32xf32>
    %56 = vector.extract_strided_slice %39 {offsets = [0, 1, 1, 0], sizes = [8, 1, 6, 32], strides = [1, 1, 1, 1]} : vector<8x2x7x32xf32> to vector<8x1x6x32xf32>
    %57 = vector.shape_cast %56 : vector<8x1x6x32xf32> to vector<8x6x32xf32>
    %cst_25 = arith.constant dense<0.000000e+00> : vector<8x6x32xf32>
    %58 = tpu.matmul %55, %35, %cst_25 {dimension_numbers = #tpu.dot_dimension_numbers<[2], [1], [1], [2], [0, 0, 0, 1, 1, 2], [0], [0]>} : vector<8x6x32xf32>, vector<8x32x32xf32>, vector<8x6x32xf32> -> vector<8x6x32xf32>
    %cst_26 = arith.constant dense<0.000000e+00> : vector<8x6x32xf32>
    %59 = tpu.matmul %57, %36, %cst_26 {dimension_numbers = #tpu.dot_dimension_numbers<[2], [1], [1], [2], [0, 0, 0, 1, 1, 2], [0], [0]>} : vector<8x6x32xf32>, vector<8x32x32xf32>, vector<8x6x32xf32> -> vector<8x6x32xf32>
    %60 = arith.addf %58, %59 : vector<8x6x32xf32>
    %61 = vector.broadcast %37 : vector<8x1x32xf32> to vector<8x6x32xf32>
    %62 = arith.addf %60, %61 : vector<8x6x32xf32>
    %cst_27 = arith.constant 0.000000e+00 : f32
    %63 = vector.broadcast %cst_27 : f32 to vector<8x6x32xf32>
    %64 = arith.maximumf %62, %63 : vector<8x6x32xf32>
    %cst_28 = arith.constant dense<0.000000e+00> : vector<8x32xf32>
    %65 = vector.multi_reduction <add>, %64, %cst_28 [1] : vector<8x6x32xf32> to vector<8x32xf32>
    %cst_29 = arith.constant 6.000000e+00 : f32
    %66 = vector.broadcast %cst_29 : f32 to vector<8x32xf32>
    %67 = arith.divf %65, %66 : vector<8x32xf32>
    %68 = vector.shape_cast %53 : vector<8x32xf32> to vector<8x1x32xf32>
    %69 = vector.shape_cast %67 : vector<8x32xf32> to vector<8x1x32xf32>
    %70 = tpu.concatenate %68, %69 in 1 : vector<8x1x32xf32>, vector<8x1x32xf32> -> vector<8x2x32xf32>
    %71 = vector.extract_strided_slice %70 {offsets = [0, 0, 0], sizes = [1, 2, 32], strides = [1, 1, 1]} : vector<8x2x32xf32> to vector<1x2x32xf32>
    %72 = vector.shape_cast %71 : vector<1x2x32xf32> to vector<2x32xf32>
    %73 = vector.extract_strided_slice %70 {offsets = [1, 0, 0], sizes = [7, 2, 32], strides = [1, 1, 1]} : vector<8x2x32xf32> to vector<7x2x32xf32>
    %c0_30 = arith.constant 0 : index
    %c0_31 = arith.constant 0 : index
    %c0_32 = arith.constant 0 : index
    %74 = vector.load %arg6[%c0_30, %c0_31, %c0_32] : memref<7x32x32xf32, #tpu.memory_space<vmem>>, vector<7x32x32xf32>
    %cst_33 = arith.constant dense<0.000000e+00> : vector<7x2x32xf32>
    %75 = tpu.matmul %73, %74, %cst_33 {dimension_numbers = #tpu.dot_dimension_numbers<[2], [1], [1], [2], [0, 0, 0, 1, 1, 2], [0], [0]>} : vector<7x2x32xf32>, vector<7x32x32xf32>, vector<7x2x32xf32> -> vector<7x2x32xf32>
    %c0_34 = arith.constant 0 : index
    %c0_35 = arith.constant 0 : index
    %c0_36 = arith.constant 0 : index
    %76 = vector.load %arg7[%c0_34, %c0_35, %c0_36] : memref<7x1x32xf32, #tpu.memory_space<vmem>>, vector<7x1x32xf32>
    %77 = vector.broadcast %76 : vector<7x1x32xf32> to vector<7x2x32xf32>
    %78 = arith.addf %75, %77 : vector<7x2x32xf32>
    %c0_37 = arith.constant 0 : index
    %c0_38 = arith.constant 0 : index
    %c0_39 = arith.constant 0 : index
    %79 = vector.load %arg8[%c0_37, %c0_38, %c0_39] : memref<7x1x32xf32, #tpu.memory_space<vmem>>, vector<7x1x32xf32>
    %80 = vector.broadcast %79 : vector<7x1x32xf32> to vector<7x2x32xf32>
    %81 = arith.mulf %78, %80 : vector<7x2x32xf32>
    %c0_40 = arith.constant 0 : index
    %c0_41 = arith.constant 0 : index
    %c0_42 = arith.constant 0 : index
    %82 = vector.load %arg10[%c0_40, %c0_41, %c0_42] : memref<7x1x1xf32, #tpu.memory_space<vmem>>, vector<7x1x1xf32>
    %83 = vector.broadcast %82 : vector<7x1x1xf32> to vector<7x2x32xf32>
    %84 = arith.addf %81, %83 : vector<7x2x32xf32>
    %c0_43 = arith.constant 0 : index
    %c0_44 = arith.constant 0 : index
    %c0_45 = arith.constant 0 : index
    %85 = vector.load %arg9[%c0_43, %c0_44, %c0_45] : memref<7x1x32xf32, #tpu.memory_space<vmem>>, vector<7x1x32xf32>
    %86 = vector.broadcast %85 : vector<7x1x32xf32> to vector<7x2x32xf32>
    %87 = arith.mulf %78, %86 : vector<7x2x32xf32>
    %c0_46 = arith.constant 0 : index
    %c0_47 = arith.constant 0 : index
    %c0_48 = arith.constant 0 : index
    %88 = vector.load %arg11[%c0_46, %c0_47, %c0_48] : memref<7x1x1xf32, #tpu.memory_space<vmem>>, vector<7x1x1xf32>
    %89 = vector.broadcast %88 : vector<7x1x1xf32> to vector<7x2x32xf32>
    %90 = arith.addf %87, %89 : vector<7x2x32xf32>
    %c0_49 = arith.constant 0 : index
    %c0_50 = arith.constant 0 : index
    %91 = vector.load %arg12[%c0_49, %c0_50] : memref<7x7xf32, #tpu.memory_space<vmem>>, vector<7x7xf32>
    %92 = vector.extract_strided_slice %84 {offsets = [0, 0, 0], sizes = [7, 1, 32], strides = [1, 1, 1]} : vector<7x2x32xf32> to vector<7x1x32xf32>
    %93 = vector.shape_cast %92 : vector<7x1x32xf32> to vector<7x32xf32>
    %94 = vector.extract_strided_slice %90 {offsets = [0, 0, 0], sizes = [7, 1, 32], strides = [1, 1, 1]} : vector<7x2x32xf32> to vector<7x1x32xf32>
    %95 = vector.shape_cast %94 : vector<7x1x32xf32> to vector<7x32xf32>
    %96 = arith.mulf %93, %93 : vector<7x32xf32>
    %cst_51 = arith.constant dense<0.000000e+00> : vector<7xf32>
    %97 = vector.multi_reduction <add>, %96, %cst_51 [1] : vector<7x32xf32> to vector<7xf32>
    %98 = vector.shape_cast %97 : vector<7xf32> to vector<7x1xf32>
    %99 = math.sqrt %98 : vector<7x1xf32>
    %100 = arith.mulf %95, %95 : vector<7x32xf32>
    %cst_52 = arith.constant dense<0.000000e+00> : vector<7xf32>
    %101 = vector.multi_reduction <add>, %100, %cst_52 [1] : vector<7x32xf32> to vector<7xf32>
    %102 = vector.shape_cast %101 : vector<7xf32> to vector<7x1xf32>
    %103 = math.sqrt %102 : vector<7x1xf32>
    %104 = tpu.transpose %95, [1, 0] : vector<7x32xf32> -> vector<32x7xf32>
    %cst_53 = arith.constant dense<0.000000e+00> : vector<7x7xf32>
    %105 = tpu.matmul %93, %104, %cst_53 {dimension_numbers = #tpu.dot_dimension_numbers<[1], [0], [0], [1], [0, 0, 1, 1], [], []>} : vector<7x32xf32>, vector<32x7xf32>, vector<7x7xf32> -> vector<7x7xf32>
    %106 = tpu.transpose %103, [1, 0] : vector<7x1xf32> -> vector<1x7xf32>
    %107 = vector.broadcast %99 : vector<7x1xf32> to vector<7x7xf32>
    %108 = vector.broadcast %106 : vector<1x7xf32> to vector<7x7xf32>
    %109 = arith.mulf %107, %108 : vector<7x7xf32>
    %cst_54 = arith.constant 9.99999993E-9 : f32
    %110 = vector.broadcast %cst_54 : f32 to vector<7x7xf32>
    %111 = arith.addf %109, %110 : vector<7x7xf32>
    %112 = arith.divf %105, %111 : vector<7x7xf32>
    %113 = arith.addf %112, %91 : vector<7x7xf32>
    %cst_55 = arith.constant dense<0xFF800000> : vector<7xf32>
    %114 = vector.multi_reduction <maximumf>, %113, %cst_55 [1] : vector<7x7xf32> to vector<7xf32>
    %115 = vector.shape_cast %114 : vector<7xf32> to vector<7x1xf32>
    %116 = vector.broadcast %115 : vector<7x1xf32> to vector<7x7xf32>
    %117 = arith.subf %113, %116 : vector<7x7xf32>
    %118 = math.exp %117 : vector<7x7xf32>
    %cst_56 = arith.constant dense<0.000000e+00> : vector<7xf32>
    %119 = vector.multi_reduction <add>, %118, %cst_56 [1] : vector<7x7xf32> to vector<7xf32>
    %120 = vector.shape_cast %119 : vector<7xf32> to vector<7x1xf32>
    %121 = tpu.reciprocal %120 : vector<7x1xf32> -> vector<7x1xf32>
    %122 = vector.broadcast %121 : vector<7x1xf32> to vector<7x7xf32>
    %123 = arith.mulf %118, %122 : vector<7x7xf32>
    %124 = vector.extract_strided_slice %78 {offsets = [0, 0, 0], sizes = [7, 1, 32], strides = [1, 1, 1]} : vector<7x2x32xf32> to vector<7x1x32xf32>
    %125 = vector.shape_cast %124 : vector<7x1x32xf32> to vector<7x32xf32>
    %cst_57 = arith.constant dense<0.000000e+00> : vector<7x32xf32>
    %126 = tpu.matmul %123, %125, %cst_57 {dimension_numbers = #tpu.dot_dimension_numbers<[1], [0], [0], [1], [0, 0, 1, 1], [], []>} : vector<7x7xf32>, vector<7x32xf32>, vector<7x32xf32> -> vector<7x32xf32>
    %127 = vector.extract_strided_slice %84 {offsets = [0, 1, 0], sizes = [7, 1, 32], strides = [1, 1, 1]} : vector<7x2x32xf32> to vector<7x1x32xf32>
    %128 = vector.shape_cast %127 : vector<7x1x32xf32> to vector<7x32xf32>
    %129 = vector.extract_strided_slice %90 {offsets = [0, 1, 0], sizes = [7, 1, 32], strides = [1, 1, 1]} : vector<7x2x32xf32> to vector<7x1x32xf32>
    %130 = vector.shape_cast %129 : vector<7x1x32xf32> to vector<7x32xf32>
    %131 = arith.mulf %128, %128 : vector<7x32xf32>
    %cst_58 = arith.constant dense<0.000000e+00> : vector<7xf32>
    %132 = vector.multi_reduction <add>, %131, %cst_58 [1] : vector<7x32xf32> to vector<7xf32>
    %133 = vector.shape_cast %132 : vector<7xf32> to vector<7x1xf32>
    %134 = math.sqrt %133 : vector<7x1xf32>
    %135 = arith.mulf %130, %130 : vector<7x32xf32>
    %cst_59 = arith.constant dense<0.000000e+00> : vector<7xf32>
    %136 = vector.multi_reduction <add>, %135, %cst_59 [1] : vector<7x32xf32> to vector<7xf32>
    %137 = vector.shape_cast %136 : vector<7xf32> to vector<7x1xf32>
    %138 = math.sqrt %137 : vector<7x1xf32>
    %139 = tpu.transpose %130, [1, 0] : vector<7x32xf32> -> vector<32x7xf32>
    %cst_60 = arith.constant dense<0.000000e+00> : vector<7x7xf32>
    %140 = tpu.matmul %128, %139, %cst_60 {dimension_numbers = #tpu.dot_dimension_numbers<[1], [0], [0], [1], [0, 0, 1, 1], [], []>} : vector<7x32xf32>, vector<32x7xf32>, vector<7x7xf32> -> vector<7x7xf32>
    %141 = tpu.transpose %138, [1, 0] : vector<7x1xf32> -> vector<1x7xf32>
    %142 = vector.broadcast %134 : vector<7x1xf32> to vector<7x7xf32>
    %143 = vector.broadcast %141 : vector<1x7xf32> to vector<7x7xf32>
    %144 = arith.mulf %142, %143 : vector<7x7xf32>
    %cst_61 = arith.constant 9.99999993E-9 : f32
    %145 = vector.broadcast %cst_61 : f32 to vector<7x7xf32>
    %146 = arith.addf %144, %145 : vector<7x7xf32>
    %147 = arith.divf %140, %146 : vector<7x7xf32>
    %148 = arith.addf %147, %91 : vector<7x7xf32>
    %cst_62 = arith.constant dense<0xFF800000> : vector<7xf32>
    %149 = vector.multi_reduction <maximumf>, %148, %cst_62 [1] : vector<7x7xf32> to vector<7xf32>
    %150 = vector.shape_cast %149 : vector<7xf32> to vector<7x1xf32>
    %151 = vector.broadcast %150 : vector<7x1xf32> to vector<7x7xf32>
    %152 = arith.subf %148, %151 : vector<7x7xf32>
    %153 = math.exp %152 : vector<7x7xf32>
    %cst_63 = arith.constant dense<0.000000e+00> : vector<7xf32>
    %154 = vector.multi_reduction <add>, %153, %cst_63 [1] : vector<7x7xf32> to vector<7xf32>
    %155 = vector.shape_cast %154 : vector<7xf32> to vector<7x1xf32>
    %156 = tpu.reciprocal %155 : vector<7x1xf32> -> vector<7x1xf32>
    %157 = vector.broadcast %156 : vector<7x1xf32> to vector<7x7xf32>
    %158 = arith.mulf %153, %157 : vector<7x7xf32>
    %159 = vector.extract_strided_slice %78 {offsets = [0, 1, 0], sizes = [7, 1, 32], strides = [1, 1, 1]} : vector<7x2x32xf32> to vector<7x1x32xf32>
    %160 = vector.shape_cast %159 : vector<7x1x32xf32> to vector<7x32xf32>
    %cst_64 = arith.constant dense<0.000000e+00> : vector<7x32xf32>
    %161 = tpu.matmul %158, %160, %cst_64 {dimension_numbers = #tpu.dot_dimension_numbers<[1], [0], [0], [1], [0, 0, 1, 1], [], []>} : vector<7x7xf32>, vector<7x32xf32>, vector<7x32xf32> -> vector<7x32xf32>
    %162 = vector.shape_cast %126 : vector<7x32xf32> to vector<7x1x32xf32>
    %163 = vector.shape_cast %161 : vector<7x32xf32> to vector<7x1x32xf32>
    %164 = tpu.concatenate %162, %163 in 1 : vector<7x1x32xf32>, vector<7x1x32xf32> -> vector<7x2x32xf32>
    %c0_65 = arith.constant 0 : index
    %c0_66 = arith.constant 0 : index
    %c0_67 = arith.constant 0 : index
    %165 = vector.load %arg13[%c0_65, %c0_66, %c0_67] : memref<7x32x128xf32, #tpu.memory_space<vmem>>, vector<7x32x128xf32>
    %cst_68 = arith.constant dense<0.000000e+00> : vector<7x2x128xf32>
    %166 = tpu.matmul %73, %165, %cst_68 {dimension_numbers = #tpu.dot_dimension_numbers<[2], [1], [1], [2], [0, 0, 0, 1, 1, 2], [0], [0]>} : vector<7x2x32xf32>, vector<7x32x128xf32>, vector<7x2x128xf32> -> vector<7x2x128xf32>
    %c0_69 = arith.constant 0 : index
    %c0_70 = arith.constant 0 : index
    %c0_71 = arith.constant 0 : index
    %167 = vector.load %arg14[%c0_69, %c0_70, %c0_71] : memref<7x32x128xf32, #tpu.memory_space<vmem>>, vector<7x32x128xf32>
    %cst_72 = arith.constant dense<0.000000e+00> : vector<7x2x128xf32>
    %168 = tpu.matmul %78, %167, %cst_72 {dimension_numbers = #tpu.dot_dimension_numbers<[2], [1], [1], [2], [0, 0, 0, 1, 1, 2], [0], [0]>} : vector<7x2x32xf32>, vector<7x32x128xf32>, vector<7x2x128xf32> -> vector<7x2x128xf32>
    %169 = arith.addf %166, %168 : vector<7x2x128xf32>
    %c0_73 = arith.constant 0 : index
    %c0_74 = arith.constant 0 : index
    %c0_75 = arith.constant 0 : index
    %170 = vector.load %arg15[%c0_73, %c0_74, %c0_75] : memref<7x32x128xf32, #tpu.memory_space<vmem>>, vector<7x32x128xf32>
    %cst_76 = arith.constant dense<0.000000e+00> : vector<7x2x128xf32>
    %171 = tpu.matmul %164, %170, %cst_76 {dimension_numbers = #tpu.dot_dimension_numbers<[2], [1], [1], [2], [0, 0, 0, 1, 1, 2], [0], [0]>} : vector<7x2x32xf32>, vector<7x32x128xf32>, vector<7x2x128xf32> -> vector<7x2x128xf32>
    %172 = arith.addf %169, %171 : vector<7x2x128xf32>
    %c0_77 = arith.constant 0 : index
    %c0_78 = arith.constant 0 : index
    %c0_79 = arith.constant 0 : index
    %173 = vector.load %arg16[%c0_77, %c0_78, %c0_79] : memref<7x1x128xf32, #tpu.memory_space<vmem>>, vector<7x1x128xf32>
    %174 = vector.broadcast %173 : vector<7x1x128xf32> to vector<7x2x128xf32>
    %175 = arith.addf %172, %174 : vector<7x2x128xf32>
    %cst_80 = arith.constant 0.000000e+00 : f32
    %176 = vector.broadcast %cst_80 : f32 to vector<7x2x128xf32>
    %177 = arith.maximumf %175, %176 : vector<7x2x128xf32>
    %c0_81 = arith.constant 0 : index
    %c0_82 = arith.constant 0 : index
    %c0_83 = arith.constant 0 : index
    %178 = vector.load %arg17[%c0_81, %c0_82, %c0_83] : memref<7x1x128xf32, #tpu.memory_space<vmem>>, vector<7x1x128xf32>
    %179 = vector.broadcast %178 : vector<7x1x128xf32> to vector<7x2x128xf32>
    %180 = arith.mulf %177, %179 : vector<7x2x128xf32>
    %cst_84 = arith.constant dense<0.000000e+00> : vector<7x2xf32>
    %181 = vector.multi_reduction <add>, %180, %cst_84 [2] : vector<7x2x128xf32> to vector<7x2xf32>
    %c0_85 = arith.constant 0 : index
    %c0_86 = arith.constant 0 : index
    %182 = vector.load %arg18[%c0_85, %c0_86] : memref<7x1xf32, #tpu.memory_space<vmem>>, vector<7x1xf32>
    %183 = vector.broadcast %182 : vector<7x1xf32> to vector<7x2xf32>
    %184 = arith.addf %181, %183 : vector<7x2xf32>
    %185 = tpu.transpose %184, [1, 0] : vector<7x2xf32> -> vector<2x7xf32>
    %c0_87 = arith.constant 0 : index
    %c0_88 = arith.constant 0 : index
    %c0_89 = arith.constant 0 : index
    %186 = vector.load %arg20[%c0_87, %c0_88, %c0_89] : memref<8x5x128xf32, #tpu.memory_space<vmem>>, vector<8x5x128xf32>
    %cst_90 = arith.constant dense<0.000000e+00> : vector<8x2x128xf32>
    %187 = tpu.matmul %0, %186, %cst_90 {dimension_numbers = #tpu.dot_dimension_numbers<[2], [1], [1], [2], [0, 0, 0, 1, 1, 2], [0], [0]>} : vector<8x2x5xf32>, vector<8x5x128xf32>, vector<8x2x128xf32> -> vector<8x2x128xf32>
    %c0_91 = arith.constant 0 : index
    %c0_92 = arith.constant 0 : index
    %188 = vector.load %arg19[%c0_91, %c0_92] : memref<32x128xf32, #tpu.memory_space<vmem>>, vector<32x128xf32>
    %cst_93 = arith.constant dense<0.000000e+00> : vector<2x128xf32>
    %189 = tpu.matmul %72, %188, %cst_93 {dimension_numbers = #tpu.dot_dimension_numbers<[1], [0], [0], [1], [0, 0, 1, 1], [], []>} : vector<2x32xf32>, vector<32x128xf32>, vector<2x128xf32> -> vector<2x128xf32>
    %cst_94 = arith.constant dense<0.000000e+00> : vector<2x128xf32>
    %190 = vector.multi_reduction <add>, %187, %cst_94 [0] : vector<8x2x128xf32> to vector<2x128xf32>
    %191 = arith.addf %189, %190 : vector<2x128xf32>
    %c0_95 = arith.constant 0 : index
    %c0_96 = arith.constant 0 : index
    %192 = vector.load %arg21[%c0_95, %c0_96] : memref<7x128xf32, #tpu.memory_space<vmem>>, vector<7x128xf32>
    %cst_97 = arith.constant dense<0.000000e+00> : vector<2x128xf32>
    %193 = tpu.matmul %185, %192, %cst_97 {dimension_numbers = #tpu.dot_dimension_numbers<[1], [0], [0], [1], [0, 0, 1, 1], [], []>} : vector<2x7xf32>, vector<7x128xf32>, vector<2x128xf32> -> vector<2x128xf32>
    %194 = arith.addf %191, %193 : vector<2x128xf32>
    %c0_98 = arith.constant 0 : index
    %c0_99 = arith.constant 0 : index
    %195 = vector.load %arg22[%c0_98, %c0_99] : memref<1x128xf32, #tpu.memory_space<vmem>>, vector<1x128xf32>
    %196 = vector.broadcast %195 : vector<1x128xf32> to vector<2x128xf32>
    %197 = arith.addf %194, %196 : vector<2x128xf32>
    %cst_100 = arith.constant 0.000000e+00 : f32
    %198 = vector.broadcast %cst_100 : f32 to vector<2x128xf32>
    %199 = arith.maximumf %197, %198 : vector<2x128xf32>
    %c0_101 = arith.constant 0 : index
    %c0_102 = arith.constant 0 : index
    %200 = vector.load %arg23[%c0_101, %c0_102] : memref<128x1xf32, #tpu.memory_space<vmem>>, vector<128x1xf32>
    %cst_103 = arith.constant dense<0.000000e+00> : vector<2x1xf32>
    %201 = tpu.matmul %199, %200, %cst_103 {dimension_numbers = #tpu.dot_dimension_numbers<[1], [0], [0], [1], [0, 0, 1, 1], [], []>} : vector<2x128xf32>, vector<128x1xf32>, vector<2x1xf32> -> vector<2x1xf32>
    %c0_104 = arith.constant 0 : index
    %c0_105 = arith.constant 0 : index
    %202 = vector.load %arg24[%c0_104, %c0_105] : memref<1x1xf32, #tpu.memory_space<vmem>>, vector<1x1xf32>
    %203 = vector.broadcast %202 : vector<1x1xf32> to vector<2x1xf32>
    %204 = arith.addf %201, %203 : vector<2x1xf32>
    %205 = arith.negf %204 : vector<2x1xf32>
    %206 = math.exp %205 : vector<2x1xf32>
    %cst_106 = arith.constant 1.000000e+00 : f32
    %207 = vector.broadcast %cst_106 : f32 to vector<2x1xf32>
    %208 = arith.addf %207, %206 : vector<2x1xf32>
    %209 = arith.divf %207, %208 : vector<2x1xf32>
    %c0_107 = arith.constant 0 : index
    %c0_108 = arith.constant 0 : index
    %210 = vector.load %arg25[%c0_107, %c0_108] : memref<2x1xf32, #tpu.memory_space<vmem>>, vector<2x1xf32>
    tpu.vector_store %arg25[%c0_107, %c0_108], %209 {strides = array<i32>} : memref<2x1xf32, #tpu.memory_space<vmem>>, vector<2x1xf32>,
    return
  }
}

</mosaic_0001>

<bundles_post_ra>
// kernel: cocoons_forward.1
= control target key start
LH: loop header
LB: loop body
LE: loop exit
PB: predicated region body
PF: predicated region fallthrough
CT: control target
= control target key end

     0   :  { %s11643_s0 = inlined_call_operand.vmem [shape: f32[8,2,5], index: 0, kind: input, shape index: {}]   ;;  %s11644_s1 = inlined_call_operand.vmem [shape: f32[8,3,32], index: 1, kind: input, shape index: {}]   ;;  %s11645_s2 = inlined_call_operand.vmem [shape: f32[8,1,32], index: 2, kind: input, shape index: {}]   ;;  %s11646_s3 = inlined_call_operand.vmem [shape: f32[8,32,32], index: 3, kind: input, shape index: {}]   ;;  %s11647_s4 = inlined_call_operand.hbm [shape: f32[8,32,32], index: 4, kind: input, shape index: {}]   ;;  %s11648_s5 = inlined_call_operand.vmem [shape: f32[8,1,32], index: 5, kind: input, shape index: {}]   ;;  %s11649_s6 = inlined_call_operand.hbm [shape: f32[7,32,32], index: 6, kind: input, shape index: {}]   ;;  %s11650_s7 = inlined_call_operand.vmem [shape: f32[7,1,32], index: 7, kind: input, shape index: {}]   ;;  %s11651_s8 = inlined_call_operand.vmem [shape: f32[7,1,32], index: 8, kind: input, shape index: {}]   ;;  %s11652_s9 = inlined_call_operand.vmem [shape: f32[7,1,32], index: 9, kind: input, shape index: {}]   ;;  %s11653_s10 = inlined_call_operand.vmem [shape: f32[7,1,1], index: 10, kind: input, shape index: {}]   ;;  %s11654_s11 = inlined_call_operand.vmem [shape: f32[7,1,1], index: 11, kind: input, shape index: {}]   ;;  %s11655_s12 = inlined_call_operand.vmem [shape: f32[7,7], index: 12, kind: input, shape index: {}]   ;;  %s11656_s13 = inlined_call_operand.hbm [shape: f32[7,32,128], index: 13, kind: input, shape index: {}]   ;;  %s11657_s14 = inlined_call_operand.hbm [shape: f32[7,32,128], index: 14, kind: input, shape index: {}]   ;;  %s11658_s15 = inlined_call_operand.hbm [shape: f32[7,32,128], index: 15, kind: input, shape index: {}]   ;;  %s11659_s16 = inlined_call_operand.vmem [shape: f32[7,1,128], index: 16, kind: input, shape index: {}]   ;;  %s11660_s17 = inlined_call_operand.vmem [shape: f32[7,1,128], index: 17, kind: input, shape index: {}]   ;;  %s11661_s18 = inlined_call_operand.vmem [shape: f32[7,1], index: 18, kind: input, shape index: {}]   ;;  %s11662_s19 = inlined_call_operand.vmem [shape: f32[32,128], index: 19, kind: input, shape index: {}]   ;;  %s11663_s20 = inlined_call_operand.vmem [shape: f32[8,5,128], index: 20, kind: input, shape index: {}]   ;;  %s11664_s21 = inlined_call_operand.vmem [shape: f32[7,128], index: 21, kind: input, shape index: {}]   ;;  %s11665_s22 = inlined_call_operand.vmem [shape: f32[1,128], index: 22, kind: input, shape index: {}]   ;;  %s11666_s23 = inlined_call_operand.vmem [shape: f32[128,1], index: 23, kind: input, shape index: {}]   ;;  %s11667_s24 = inlined_call_operand.<no memory space> [shape: f32[1,1], index: 24, kind: input, shape index: {}]   ;;  %s11668_s25 = inlined_call_operand.vmem [shape: f32[2,1], index: 25, kind: output, shape index: {}]  }
   0x1   :  { %11699 = sst [smem:[#allocation27_spill]] %s11643_s0  ;;  %v30_v0 = vstv %s11667_s24 }
   0x2   :  { %11700 = sst [smem:[#allocation28_spill]] %s11644_s1  ;;  %31 = vst [vmem:[#allocation2] sm:$0x1] %v30_v0 }
   0x3   :  { %11701 = sst [smem:[#allocation29_spill]] %s11645_s2 }
   0x4   :  { %11702 = sst [smem:[#allocation30_spill]] %s11646_s3 }
   0x5   :  { %11703 = sst [smem:[#allocation31_spill]] %s11647_s4 }
   0x6   :  { %11704 = sst [smem:[#allocation32_spill]] %s11648_s5 }
   0x7   :  { %11705 = sst [smem:[#allocation33_spill]] %s11649_s6 }
   0x8   :  { %11706 = sst [smem:[#allocation34_spill]] %s11650_s7 }
   0x9   :  { %11707 = sst [smem:[#allocation35_spill]] %s11651_s8 }
   0xa   :  { %11708 = sst [smem:[#allocation36_spill]] %s11652_s9 }
   0xb   :  { %11709 = sst [smem:[#allocation37_spill]] %s11668_s25 }
   0xc   :  { %32 = vsyncpa [#allocation4], 0 }
   0xd   :  { %33 = vsyncpa [#allocation6], 0 }
   0xe   :  { %34 = vsyncpa [#allocation9], 0  ;;  %s9665_s6 = smov [#allocation5]   ;;  %s9666_s7 = smov [#allocation8]  }
   0xf   :  { %s62_s30 = sshll.u32 %s9665_s6, 4  ;;  %s98_s3 = sshll.u32 %s9666_s7, 4  ;;  %s63_s30 = int_to_ptr.vmem [resolvable:$true] %s62_s30  ;;  %s9811_s3 = int_to_ptr.vmem [resolvable:$true] %s98_s3 }
  0x10   :  { %s11710_s8 = sld [smem:[#allocation33_spill]] }
  0x16   :  { %s9549_s27 = scalar_lea.hbm %s11710_s8, 3584 }
  0x17   :  { %p9550_p0 = scmp.ne.s32.totalorder %s11710_s8, %s9549_s27  ;;  %p9553_p1 = scmp.lt.u32.totalorder %s9549_s27, %s11710_s8 }
  0x19   :  { %p9555_p2 = pnand %p9553_p1, %p9550_p0 }
  0x1b   :  { %9558 = shalt.err (!%p9555_p2)
}
  0x1c   :  { %s9559_s5 = scalar_lea.vmem %s63_s30, 3584  ;;  %p9564_p4 = scmp.lt.s32.totalorder %s63_s30, %s63_s30 }
  0x1d   :  { %p9560_p3 = scmp.ne.s32.totalorder %s63_s30, %s9559_s5  ;;  %p9565_p5 = scmp.lt.s32.totalorder %s9559_s5, %s9559_s5 }
  0x1f   :  { %p9566_p6 = por %p9565_p5, %p9564_p4 }
  0x21   :  { %p9567_p7 = pnand %p9566_p6, %p9560_p3 }
  0x23   :  { %9570 = shalt.err (!%p9567_p7)
}
  0x24   :  { %s9667_s0 = smov 128   ;;  %s9668_s29 = smov 8  }
  0x25   :  { %68 = dma.hbm_to_vmem [thread:$0]  %s11710_s8, 3584, %s63_s30, [#allocation6], %s9667_s0, %s9667_s0, %s9668_s29  }
  0x26   :  { %s9571_s1 = scalar_lea.hbm %s11657_s14, 3584 }
  0x27   :  { %p9572_p8 = scmp.ne.s32.totalorder %s11657_s14, %s9571_s1  ;;  %p9575_p9 = scmp.lt.u32.totalorder %s9571_s1, %s11657_s14 }
  0x29   :  { %p9577_p10 = pnand %p9575_p9, %p9572_p8 }
  0x2b   :  { %9580 = shalt.err (!%p9577_p10)
}
  0x2c   :  { %s9581_s9 = scalar_lea.vmem %s9811_s3, 3584  ;;  %p9586_p12 = scmp.lt.s32.totalorder %s9811_s3, %s9811_s3 }
  0x2d   :  { %p9582_p11 = scmp.ne.s32.totalorder %s9811_s3, %s9581_s9  ;;  %p9587_p13 = scmp.lt.s32.totalorder %s9581_s9, %s9581_s9 }
  0x2f   :  { %p9588_p0 = por %p9587_p13, %p9586_p12 }
  0x31   :  { %p9589_p1 = pnand %p9588_p0, %p9582_p11 }
  0x33   :  { %9592 = shalt.err (!%p9589_p1)
}
  0x34   :  { %104 = dma.hbm_to_vmem [thread:$0]  %s11657_s14, 3584, %s9811_s3, [#allocation9], %s9667_s0, %s9667_s0, %s9668_s29  }
  0x35   :  { %s9669_s5 = smov [#allocation3]   ;;  %s9670_s6 = smov [#allocation7]  }
  0x36   :  { %s48_s2 = sshll.u32 %s9669_s5, 4  ;;  %s86_s7 = sshll.u32 %s9670_s6, 4  ;;  %s49_s2 = int_to_ptr.vmem [resolvable:$true] %s48_s2  ;;  %s9848_s7 = int_to_ptr.vmem [resolvable:$true] %s86_s7 }
  0x37   :  { %s11711_s27 = sld [smem:[#allocation31_spill]] }
  0x3d   :  { %s9593_s4 = scalar_lea.hbm %s11711_s27, 4096 }
  0x3e   :  { %p9594_p2 = scmp.ne.s32.totalorder %s11711_s27, %s9593_s4  ;;  %p9597_p3 = scmp.lt.u32.totalorder %s9593_s4, %s11711_s27 }
  0x40   :  { %p9599_p4 = pnand %p9597_p3, %p9594_p2 }
  0x42   :  { %9602 = shalt.err (!%p9599_p4)
}
  0x43   :  { %s9603_s14 = scalar_lea.vmem %s49_s2, 4096  ;;  %p9608_p6 = scmp.lt.s32.totalorder %s49_s2, %s49_s2 }
  0x44   :  { %p9604_p5 = scmp.ne.s32.totalorder %s49_s2, %s9603_s14  ;;  %p9609_p7 = scmp.lt.s32.totalorder %s9603_s14, %s9603_s14 }
  0x46   :  { %p9610_p8 = por %p9609_p7, %p9608_p6 }
  0x48   :  { %p9611_p9 = pnand %p9610_p8, %p9604_p5 }
  0x4a   :  { %9614 = shalt.err (!%p9611_p9)
}
  0x4b   :  { %54 = dma.hbm_to_vmem [thread:$0]  %s11711_s27, 4096, %s49_s2, [#allocation4], %s9667_s0, %s9667_s0, %s9668_s29  }
  0x4c   :  { %s9615_s25 = scalar_lea.hbm %s11656_s13, 3584 }
  0x4d   :  { %p9616_p10 = scmp.ne.s32.totalorder %s11656_s13, %s9615_s25  ;;  %p9619_p11 = scmp.lt.u32.totalorder %s9615_s25, %s11656_s13 }
  0x4f   :  { %p9621_p12 = pnand %p9619_p11, %p9616_p10 }
  0x51   :  { %9624 = shalt.err (!%p9621_p12)
}
  0x52   :  { %s9625_s28 = scalar_lea.vmem %s9848_s7, 3584  ;;  %p9630_p0 = scmp.lt.s32.totalorder %s9848_s7, %s9848_s7 }
  0x53   :  { %p9626_p13 = scmp.ne.s32.totalorder %s9848_s7, %s9625_s28  ;;  %p9631_p1 = scmp.lt.s32.totalorder %s9625_s28, %s9625_s28 }
  0x55   :  { %p9632_p2 = por %p9631_p1, %p9630_p0 }
  0x57   :  { %p9633_p3 = pnand %p9632_p2, %p9626_p13 }
  0x59   :  { %9636 = shalt.err (!%p9633_p3)
}
  0x5a   :  { %92 = dma.hbm_to_vmem [thread:$0]  %s11656_s13, 3584, %s9848_s7, [#allocation6], %s9667_s0, %s9667_s0, %s9668_s29  }
  0x5b   :  { %s9671_s24 = smov [#allocation10]   ;;  %s9637_s30 = scalar_lea.hbm %s11658_s15, 3584 }
  0x5c   :  { %s110_s9 = sshll.u32 %s9671_s24, 4  ;;  %p9638_p4 = scmp.ne.s32.totalorder %s11658_s15, %s9637_s30  ;;  %s111_s9 = int_to_ptr.vmem [resolvable:$true] %s110_s9 }
  0x5d   :  { %p9641_p5 = scmp.lt.u32.totalorder %s9637_s30, %s11658_s15 }
  0x5f   :  { %p9643_p6 = pnand %p9641_p5, %p9638_p4 }
  0x61   :  { %9646 = shalt.err (!%p9643_p6)
}
  0x62   :  { %s9647_s26 = scalar_lea.vmem %s111_s9, 3584  ;;  %p9652_p8 = scmp.lt.s32.totalorder %s111_s9, %s111_s9 }
  0x63   :  { %p9648_p7 = scmp.ne.s32.totalorder %s111_s9, %s9647_s26  ;;  %p9653_p9 = scmp.lt.s32.totalorder %s9647_s26, %s9647_s26 }
  0x65   :  { %p9654_p10 = por %p9653_p9, %p9652_p8 }
  0x67   :  { %p9655_p11 = pnand %p9654_p10, %p9648_p7 }
  0x69   :  { %9658 = shalt.err (!%p9655_p11)
}
  0x6a   :  { %116 = dma.hbm_to_vmem [thread:$0]  %s11658_s15, 3584, %s111_s9, [#allocation9], %s9667_s0, %s9667_s0, %s9668_s29  }
  0x6b   :  { %9659 = dma.done.wait [#allocation4], 4096  }
  0x6c   :  { %9660 = vsyncadd [#allocation4], 4294963200 }
  0x6d   :  { %9661 = dma.done.wait [#allocation6], 7168  }
  0x6e   :  { %9662 = vsyncadd [#allocation6], 4294960128 }
  0x6f   :  { %9663 = dma.done.wait [#allocation9], 7168  }
  0x70   :  { %9664 = vsyncadd [#allocation9], 4294960128  ;;  %s11712_s28 = sld [smem:[#allocation27_spill]]  ;;  %s9672_s24 = smov 1   ;;  %v11679_v9 = vlaneseq  ;;  %v760_v11 = vld [vmem:[#allocation3] sm:$0xff]  ;;  %v761_v12 = vld [vmem:[#allocation3 + $0x8] sm:$0xff] }
  0x71   :  { %vm206_vm0 = vcmask 7168   ;;  %vm215_vm1 = vcmask 48128   ;;  %v11688_v14 = vmov 0.0|0.0   ;;  %v9931_v15 = vpack.c.bf16 %v761_v12, %v760_v11  ;;  %v762_v18 = vld [vmem:[#allocation3 + $0x10] sm:$0xff]  ;;  %v763_v19 = vld [vmem:[#allocation3 + $0x18] sm:$0xff]  ;;  %v780_v44 = vld [vmem:[#allocation3 + $0xa0] sm:$0xff] }
  0x72   :  { %v9925_v10 = vshrl.u32 %v11679_v9, 7  ;;  %9112 = vmatprep.subr.bf16.mxu0 %v11688_v14  ;;  %9142 = vmatprep.subr.bf16.mxu1 %v11688_v14  ;;  %v9942_v24 = vpack.c.bf16 %v763_v19, %v762_v18  ;;  %vm9674_vm2 = vmmov 0   ;;  %v11680_v29 = vmov 0.0   ;;  %v781_v45 = vld [vmem:[#allocation3 + $0xa8] sm:$0xff]  ;;  %v782_v51 = vld [vmem:[#allocation3 + $0xb0] sm:$0xff]  ;;  %v783_v52 = vld [vmem:[#allocation3 + $0xb8] sm:$0xff] }
  0x73   :  { %9114 = vmatpush3.bf16.msra.mxu0 %v9931_v15  ;;  %8349 = vmatprep.mubr.msk.f32.mxu0 %vm9674_vm2, %v11680_v29  ;;  %v9968_v48 = vpack.c.bf16 %v781_v45, %v780_v44  ;;  %v9974_v53 = vpack.c.bf16 %v783_v52, %v782_v51  ;;  %s11719_s1 = sld [smem:[#allocation28_spill]]  ;;  %s11721_s14 = sld [smem:[#allocation29_spill]]  ;;  %vm848_vm3 = vcmask 1040384   ;;  %vm865_vm4 = vcmask 1045504   ;;  %v764_v44 = vld [vmem:[#allocation3 + $0x20] sm:$0xff]  ;;  %v765_v45 = vld [vmem:[#allocation3 + $0x28] sm:$0xff] }
  0x74   :  { %11713 = vst [vmem:[#allocation14_spill] sm:$0xff] %v9925_v10  ;;  %v9928_v13 = vsub.s32 0, %v9925_v10  ;;  %9115 = vmatprep.subr.bf16.mxu0 %v11688_v14  ;;  %11715 = vst [vmem:[#allocation16_spill] sm:$0xff] %v9942_v24  ;;  %8404 = vmatprep.mubr.msk.f32.mxu1 %vm9674_vm2, %v11680_v29  ;;  %v9983_v58 = vsub.s32 1, %v9925_v10  ;;  %vm884_vm5 = vcmask 261120   ;;  %s11730_s6 = sld [smem:[#allocation30_spill]] }
  0x75   :  { %11716 = vst [vmem:[#allocation17_spill] sm:$0xff] %v9968_v48  ;;  %9144 = vmatpush3.bf16.msra.mxu1 %v9968_v48  ;;  %11717 = vst [vmem:[#allocation18_spill] sm:$0xff] %v9974_v53  ;;  %vm2115_vm6 = vcmask 259072   ;;  %s11744_s8 = sld [smem:[#allocation34_spill]]  ;;  %s11746_s26 = sld [smem:[#allocation35_spill]]  ;;  %vm4307_vm7 = vcmask 1041409  }
  0x76   :  { %v150_v1 = vld [vmem:[%s11712_s28] sm:$0x3]  ;;  %v152_v2 = vld [vmem:[%s11712_s28 + $0x4] sm:$0x3]  ;;  %v151_v3 = vld [vmem:[%s11712_s28 + $0x2] sm:$0x3]  ;;  %9145 = vmatprep.subr.bf16.mxu1 %v11688_v14 }
  0x77   :  { %182 = vrot.lane.b32.xlu0 %v150_v1, %s9672_s24  ;;  %186 = vrot.lane.b32.xlu1 %v152_v2, %s9672_s24  ;;  %v153_v4 = vld [vmem:[%s11712_s28 + $0x6] sm:$0x3]  ;;  %v155_v5 = vld [vmem:[%s11712_s28 + $0xa] sm:$0x3]  ;;  %11714 = vst [vmem:[#allocation15_spill] sm:$0xff] %v9928_v13  ;;  %11718 = vst [vmem:[#allocation19_spill] sm:$0xff] %v9983_v58 }
  0x78   :  { %v154_v6 = vld [vmem:[%s11712_s28 + $0x8] sm:$0x3]  ;;  %v157_v7 = vld [vmem:[%s11712_s28 + $0xe] sm:$0x3]  ;;  %v156_v8 = vld [vmem:[%s11712_s28 + $0xc] sm:$0x3]  ;;  %9117 = vmatpush3.bf16.msra.mxu0 %v9942_v24 }
  0x79   :  { %9118 = vmatprep.subr.bf16.mxu0 %v11688_v14  ;;  %9147 = vmatpush3.bf16.msra.mxu1 %v9974_v53  ;;  %v10013_v11 = vld [vmem:[%s11721_s14] ss:$0 sm:$0xff]  ;;  %vm4310_vm8 = vcmask 1042434   ;;  %vm4313_vm9 = vcmask 1043459   ;;  %vm4316_vm10 = vcmask 1044484   ;;  %vm4319_vm11 = vcmask 1045509  }
  0x7a   :  { %9154 = vmatprep.subr.bf16.mxu1 %v11688_v14  ;;  %vm4322_vm12 = vcmask 1046534   ;;  %vm4639_vm13 = vcmask 1047559   ;;  %vm4642_vm14 = vcmask 261121   ;;  %vm4325_vm15 = vcmask 260096  }
  0x7b   :  { %184 = vrot.lane.b32.xlu0 %v151_v3, %s9672_s24  ;;  %188 = vrot.lane.b32.xlu1 %v153_v4, %s9672_s24  ;;  %v158_v3 = vld [vmem:[%s11719_s1] sm:$0x7] }
  0x7c   :  { %v9999_v4 = vrot.slane %v158_v3, %v9928_v13 }
  0x7f   :  { %192 = vrot.lane.b32.xlu1 %v155_v5, %s9672_s24  ;;  %190 = vrot.lane.b32.xlu0 %v154_v6, %s9672_s24  ;;  %v10002_v5 = vsub.s32 2, %v9925_v10  ;;  %v159_v6 = vld [vmem:[%s11719_s1 + $0x4] sm:$0x7] }
  0x80   :  { %v788_v10 = vld [vmem:[#allocation3 + $0xe0] sm:$0xff] }
  0x81   :  { %11720 = vst [vmem:[#allocation20_spill] sm:$0xff] %v10002_v5  ;;  %v10020_v18 = vrot.slane %v158_v3, %v10002_v5 }
  0x83   :  { %196 = vrot.lane.b32.xlu1 %v157_v7, %s9672_s24  ;;  %194 = vrot.lane.b32.xlu0 %v156_v8, %s9672_s24  ;;  %v10008_v7 = vrot.slane %v158_v3, %v9983_v58 }
  0xe9   :  { %v183_v16 = vpop.permute.xlu0 %182  ;;  %v187_v21 = vpop.permute.xlu1 %186 }
  0xea   :  { %v207_v17 = vsel %vm206_vm0, 0.0, %v183_v16  ;;  %v209_v28 = vsel %vm206_vm0, 0.0, %v187_v21  ;;  %v10027_v21 = vld [vmem:[%s11721_s14 + $0x1] ss:$0 sm:$0xff] }
  0xeb   :  { %v9937_v20 = vsel %vm215_vm1, %v207_v17, 0.0  ;;  %v218_v31 = vsel %vm215_vm1, %v209_v28, 0.0  ;;  %v10017_v17 = vrot.slane %v159_v6, %v9928_v13  ;;  %v10032_v28 = vrot.slane %v159_v6, %v9983_v58 }
  0xec   :  { %v283_v22 = vrot.slane %v9937_v20, %v9928_v13  ;;  %v311_v33 = vrot.slane %v218_v31, %v9928_v13  ;;  %v290_v59 = vrot.slane %v9937_v20, %v9983_v58  ;;  %v318_v61 = vrot.slane %v218_v31, %v9983_v58 }
  0xed   :  { %v185_v23 = vpop.permute.xlu0 %184  ;;  %v189_v30 = vpop.permute.xlu1 %188 }
  0xee   :  { %v208_v25 = vsel %vm206_vm0, 0.0, %v185_v23  ;;  %458 = vbcast.lane.b32.xlu1 %v283_v22, 257  ;;  %285 = vbcast.lane.b32.xlu0 %v283_v22, 256  ;;  %v210_v32 = vsel %vm206_vm0, 0.0, %v189_v30  ;;  %v160_v30 = vld [vmem:[%s11719_s1 + $0x8] sm:$0x7] }
  0xef   :  { %v9946_v26 = vsel %vm215_vm1, %v208_v25, 0.0  ;;  %v219_v34 = vsel %vm215_vm1, %v210_v32, 0.0 }
  0xf0   :  { %v297_v27 = vrot.slane %v9946_v26, %v9928_v13  ;;  %v325_v37 = vrot.slane %v219_v34, %v9928_v13  ;;  %v304_v60 = vrot.slane %v9946_v26, %v9983_v58  ;;  %v332_v62 = vrot.slane %v219_v34, %v9983_v58 }
  0xf1   :  { %v193_v35 = vpop.permute.xlu1 %192  ;;  %v191_v36 = vpop.permute.xlu0 %190 }
  0xf2   :  { %586 = vbcast.lane.b32.xlu0 %v283_v22, 258  ;;  %299 = vbcast.lane.b32.xlu1 %v297_v27, 256  ;;  %v212_v38 = vsel %vm206_vm0, 0.0, %v193_v35  ;;  %v211_v39 = vsel %vm206_vm0, 0.0, %v191_v36 }
  0xf3   :  { %v221_v40 = vsel %vm215_vm1, %v212_v38, 0.0  ;;  %v220_v41 = vsel %vm215_vm1, %v211_v39, 0.0  ;;  %v10043_v38 = vrot.slane %v160_v30, %v9928_v13  ;;  %v161_v39 = vld [vmem:[%s11719_s1 + $0xc] sm:$0x7] }
  0xf4   :  { %v353_v42 = vrot.slane %v221_v40, %v9928_v13  ;;  %v339_v43 = vrot.slane %v220_v41, %v9928_v13  ;;  %v360_v63 = vrot.slane %v221_v40, %v9983_v58  ;;  %v346_v0 = vrot.slane %v220_v41, %v9983_v58 }
  0xf5   :  { %v197_v46 = vpop.permute.xlu1 %196  ;;  %v195_v47 = vpop.permute.xlu0 %194 }
  0xf6   :  { %466 = vbcast.lane.b32.xlu0 %v297_v27, 257  ;;  %594 = vbcast.lane.b32.xlu1 %v297_v27, 258  ;;  %v214_v49 = vsel %vm206_vm0, 0.0, %v197_v46  ;;  %v213_v50 = vsel %vm206_vm0, 0.0, %v195_v47  ;;  %v10055_v47 = vld [vmem:[%s11721_s14 + $0x2] ss:$0 sm:$0xff] }
  0xf7   :  { %v223_v54 = vsel %vm215_vm1, %v214_v49, 0.0  ;;  %v222_v55 = vsel %vm215_vm1, %v213_v50, 0.0  ;;  %v10058_v50 = vrot.slane %v161_v39, %v9928_v13  ;;  %vm4561_vm0 = vcmask 1046528  }
  0xf8   :  { %v381_v56 = vrot.slane %v223_v54, %v9928_v13  ;;  %v367_v57 = vrot.slane %v222_v55, %v9928_v13  ;;  %v388_v1 = vrot.slane %v223_v54, %v9983_v58  ;;  %v374_v2 = vrot.slane %v222_v55, %v9983_v58 }
  0xf9   :  { %v10063_v55 = vrot.slane %v160_v30, %v10002_v5 }
  0xfa   :  { %313 = vbcast.lane.b32.xlu0 %v311_v33, 256  ;;  %474 = vbcast.lane.b32.xlu1 %v311_v33, 257 }
  0xfe   :  { %602 = vbcast.lane.b32.xlu0 %v311_v33, 258  ;;  %327 = vbcast.lane.b32.xlu1 %v325_v37, 256  ;;  %v10039_v33 = vrot.slane %v159_v6, %v10002_v5  ;;  %v10079_v6 = vrot.slane %v161_v39, %v9983_v58 }
 0x102   :  { %482 = vbcast.lane.b32.xlu0 %v325_v37, 257  ;;  %610 = vbcast.lane.b32.xlu1 %v325_v37, 258 }
 0x106   :  { %355 = vbcast.lane.b32.xlu1 %v353_v42, 256  ;;  %341 = vbcast.lane.b32.xlu0 %v339_v43, 256 }
 0x10a   :  { %498 = vbcast.lane.b32.xlu1 %v353_v42, 257  ;;  %490 = vbcast.lane.b32.xlu0 %v339_v43, 257 }
 0x10e   :  { %626 = vbcast.lane.b32.xlu1 %v353_v42, 258  ;;  %618 = vbcast.lane.b32.xlu0 %v339_v43, 258  ;;  %v10050_v43 = vrot.slane %v160_v30, %v9983_v58  ;;  %v768_v30 = vld [vmem:[#allocation3 + $0x40] sm:$0xff] }
 0x112   :  { %383 = vbcast.lane.b32.xlu1 %v381_v56, 256  ;;  %369 = vbcast.lane.b32.xlu0 %v367_v57, 256 }
 0x116   :  { %514 = vbcast.lane.b32.xlu1 %v381_v56, 257  ;;  %506 = vbcast.lane.b32.xlu0 %v367_v57, 257 }
 0x11a   :  { %642 = vbcast.lane.b32.xlu1 %v381_v56, 258  ;;  %634 = vbcast.lane.b32.xlu0 %v367_v57, 258  ;;  %v10068_v57 = vpack.c.bf16 %v765_v45, %v764_v44 }
 0x11e   :  { %306 = vbcast.lane.b32.xlu1 %v304_v60, 256  ;;  %292 = vbcast.lane.b32.xlu0 %v290_v59, 256 }
 0x122   :  { %470 = vbcast.lane.b32.xlu1 %v304_v60, 257  ;;  %462 = vbcast.lane.b32.xlu0 %v290_v59, 257 }
 0x126   :  { %598 = vbcast.lane.b32.xlu1 %v304_v60, 258  ;;  %590 = vbcast.lane.b32.xlu0 %v290_v59, 258 }
 0x12a   :  { %334 = vbcast.lane.b32.xlu1 %v332_v62, 256  ;;  %320 = vbcast.lane.b32.xlu0 %v318_v61, 256 }
 0x12e   :  { %486 = vbcast.lane.b32.xlu1 %v332_v62, 257  ;;  %478 = vbcast.lane.b32.xlu0 %v318_v61, 257 }
 0x132   :  { %614 = vbcast.lane.b32.xlu1 %v332_v62, 258  ;;  %606 = vbcast.lane.b32.xlu0 %v318_v61, 258 }
 0x136   :  { %362 = vbcast.lane.b32.xlu1 %v360_v63, 256  ;;  %348 = vbcast.lane.b32.xlu0 %v346_v0, 256 }
 0x13a   :  { %502 = vbcast.lane.b32.xlu1 %v360_v63, 257  ;;  %494 = vbcast.lane.b32.xlu0 %v346_v0, 257 }
 0x13e   :  { %630 = vbcast.lane.b32.xlu1 %v360_v63, 258  ;;  %622 = vbcast.lane.b32.xlu0 %v346_v0, 258  ;;  %v766_v63 = vld [vmem:[#allocation3 + $0x30] sm:$0xff]  ;;  %v767_v0 = vld [vmem:[#allocation3 + $0x38] sm:$0xff] }
 0x142   :  { %390 = vbcast.lane.b32.xlu1 %v388_v1, 256  ;;  %376 = vbcast.lane.b32.xlu0 %v374_v2, 256 }
 0x146   :  { %518 = vbcast.lane.b32.xlu1 %v388_v1, 257  ;;  %510 = vbcast.lane.b32.xlu0 %v374_v2, 257 }
 0x14a   :  { %646 = vbcast.lane.b32.xlu1 %v388_v1, 258  ;;  %638 = vbcast.lane.b32.xlu0 %v374_v2, 258  ;;  %v10076_v1 = vld [vmem:[%s11721_s14 + $0x3] ss:$0 sm:$0xff] }
 0x160   :  { %v459_v8 = vpop.permute.xlu1 %458  ;;  %v286_v12 = vpop.permute.xlu0 %285 }
 0x161   :  { %v424_v16 = vmul.f32 %v9999_v4, %v286_v12  ;;  %v552_v19 = vmul.f32 %v10008_v7, %v459_v8 }
 0x163   :  { %v440_v20 = vadd.f32 %v10013_v11, %v424_v16 }
 0x164   :  { %v300_v22 = vpop.permute.xlu1 %299  ;;  %v587_v23 = vpop.permute.xlu0 %586 }
 0x165   :  { %v426_v25 = vmul.f32 %v10017_v17, %v300_v22  ;;  %v568_v26 = vadd.f32 %v552_v19, %v440_v20  ;;  %v680_v27 = vmul.f32 %v10020_v18, %v587_v23  ;;  %v10085_v20 = vpack.c.bf16 %v767_v0, %v766_v63  ;;  %v163_v22 = vld [vmem:[%s11719_s1 + $0x14] sm:$0x7] }
 0x167   :  { %v442_v31 = vadd.f32 %v10027_v21, %v426_v25  ;;  %v696_v32 = vadd.f32 %v680_v27, %v568_v26  ;;  %11722 = vst [vmem:[#allocation21_spill] sm:$0xff] %v10085_v20  ;;  %v10095_v27 = vrot.slane %v161_v39, %v10002_v5  ;;  %v10107_v39 = vrot.slane %v163_v22, %v9928_v13 }
 0x168   :  { %v595_v34 = vpop.permute.xlu1 %594  ;;  %v467_v35 = vpop.permute.xlu0 %466 }
 0x169   :  { %v712_v36 = vmax.f32 %v696_v32, 0.0  ;;  %v554_v37 = vmul.f32 %v10032_v28, %v467_v35  ;;  %v682_v41 = vmul.f32 %v10039_v33, %v595_v34 }
 0x16b   :  { %v816_v40 = vrot.slane %v712_v36, 7  ;;  %v570_v42 = vadd.f32 %v554_v37, %v442_v31  ;;  %v769_v31 = vld [vmem:[#allocation3 + $0x48] sm:$0xff] }
 0x16c   :  { %v475_v46 = vpop.permute.xlu1 %474  ;;  %v314_v49 = vpop.permute.xlu0 %313  ;;  %v162_v36 = vld [vmem:[%s11719_s1 + $0x10] sm:$0x7] }
 0x16d   :  { %v849_v51 = vsel %vm848_vm3, 0.0, %v816_v40  ;;  %v698_v52 = vadd.f32 %v682_v41, %v570_v42  ;;  %v428_v54 = vmul.f32 %v10043_v38, %v314_v49  ;;  %v556_v60 = vmul.f32 %v10050_v43, %v475_v46 }
 0x16e   :  { %v10066_v56 = vsel %vm865_vm4, %v849_v51, 0.0  ;;  %v10110_v42 = vpack.c.bf16 %v769_v31, %v768_v30  ;;  %v10115_v49 = vrot.slane %v162_v36, %v9928_v13  ;;  %v770_v51 = vld [vmem:[#allocation3 + $0x50] sm:$0xff]  ;;  %v10124_v0 = vrot.slane %v162_v36, %v9983_v58 }
 0x16f   :  { %v714_v59 = vmax.f32 %v698_v52, 0.0  ;;  %v444_v61 = vadd.f32 %v10055_v47, %v428_v54  ;;  %v883_v62 = vrot.slane %v10066_v56, 1  ;;  %v771_v52 = vld [vmem:[#allocation3 + $0x58] sm:$0xff]  ;;  %v10147_v31 = vrot.slane %v163_v22, %v10002_v5 }
 0x170   :  { %v328_v2 = vpop.permute.xlu1 %327  ;;  %v603_v3 = vpop.permute.xlu0 %602  ;;  %11723 = vst [vmem:[#allocation22_spill] sm:$0xff] %v10110_v42 }
 0x171   :  { %v818_v8 = vrot.slane %v714_v59, 7  ;;  %v430_v12 = vmul.f32 %v10058_v50, %v328_v2  ;;  %v572_v16 = vadd.f32 %v556_v60, %v444_v61  ;;  %v684_v19 = vmul.f32 %v10063_v55, %v603_v3  ;;  %8350 = vmatmul.mubr.msk.f32.vlgmr.msra.gmra.mrb[0].mxu0 %vm884_vm5, %v883_v62  ;;  %v10129_v2 = vld [vmem:[%s11721_s14 + $0x5] ss:$0 sm:$0xff] }
 0x172   :  { %9120 = vmatpush3.bf16.msra.mxu0 %v10068_v57  ;;  %8360 = vmatprep.mubr.msk.f32.mxu0 %vm9674_vm2, %v11680_v29  ;;  %v10118_v60 = vrot.slane %v163_v22, %v9983_v58  ;;  %v10132_v3 = vpack.c.bf16 %v771_v52, %v770_v51  ;;  %v775_v51 = vld [vmem:[#allocation3 + $0x78] sm:$0xff] }
 0x173   :  { %v851_v23 = vsel %vm848_vm3, 0.0, %v818_v8  ;;  %v446_v25 = vadd.f32 %v10076_v1, %v430_v12  ;;  %v700_v26 = vadd.f32 %v684_v19, %v572_v16  ;;  %9121 = vmatprep.subr.bf16.mxu0 %v11688_v14  ;;  %v772_v16 = vld [vmem:[#allocation3 + $0x60] sm:$0xff]  ;;  %v773_v19 = vld [vmem:[#allocation3 + $0x68] sm:$0xff] }
 0x174   :  { %v10099_v32 = vsel %vm865_vm4, %v851_v23, 0.0  ;;  %v611_v34 = vpop.permute.xlu1 %610  ;;  %v483_v35 = vpop.permute.xlu0 %482  ;;  %11724 = vst [vmem:[#allocation23_spill] sm:$0xff] %v10132_v3 }
 0x175   :  { %v958_v37 = vrot.slane %v10099_v32, 1  ;;  %v716_v40 = vmax.f32 %v700_v26, 0.0  ;;  %v558_v41 = vmul.f32 %v10079_v6, %v483_v35  ;;  %v686_v45 = vmul.f32 %v10095_v27, %v611_v34 }
 0x176   :  { %9123 = vmatpush3.bf16.msra.mxu0 %v10085_v20  ;;  %v10150_v34 = vrot.slane %v162_v36, %v10002_v5 }
 0x177   :  { %v820_v44 = vrot.slane %v716_v40, 7  ;;  %v574_v46 = vadd.f32 %v558_v41, %v446_v25  ;;  %9124 = vmatprep.subr.bf16.mxu0 %v11688_v14  ;;  %v10144_v25 = vld [vmem:[%s11721_s14 + $0x4] ss:$0 sm:$0xff] }
 0x178   :  { %v356_v54 = vpop.permute.xlu1 %355  ;;  %v342_v59 = vpop.permute.xlu0 %341 }
 0x179   :  { %v853_v61 = vsel %vm848_vm3, 0.0, %v820_v44  ;;  %v702_v62 = vadd.f32 %v686_v45, %v574_v46  ;;  %v434_v63 = vmul.f32 %v10107_v39, %v356_v54  ;;  %8361 = vmatmul.mubr.msk.f32.vlgmr.msra.gmra.mrb[2].mxu0 %vm884_vm5, %v958_v37  ;;  %v432_v12 = vmul.f32 %v10115_v49, %v342_v59  ;;  %v165_v44 = vld [vmem:[%s11719_s1 + $0x1c] sm:$0x7]  ;;  %v774_v46 = vld [vmem:[#allocation3 + $0x70] sm:$0xff] }
 0x17a   :  { %9126 = vmatpush3.bf16.msra.mxu0 %v10110_v42  ;;  %8371 = vmatprep.mubr.msk.f32.mxu0 %vm9674_vm2, %v11680_v29  ;;  %v10139_v23 = vsel %vm865_vm4, %v853_v61, 0.0  ;;  %v10159_v45 = vpack.c.bf16 %v773_v19, %v772_v16  ;;  %v10166_v61 = vrot.slane %v165_v44, %v9928_v13  ;;  %v10175_v19 = vpack.c.bf16 %v775_v51, %v774_v46 }
 0x17b   :  { %v718_v8 = vmax.f32 %v702_v62, 0.0  ;;  %9127 = vmatprep.subr.bf16.mxu0 %v11688_v14  ;;  %v450_v37 = vadd.f32 %v10129_v2, %v434_v63  ;;  %v1032_v22 = vrot.slane %v10139_v23, 1  ;;  %v448_v36 = vadd.f32 %v10144_v25, %v432_v12  ;;  %v164_v62 = vld [vmem:[%s11719_s1 + $0x18] sm:$0x7] }
 0x17c   :  { %v499_v26 = vpop.permute.xlu1 %498  ;;  %v491_v30 = vpop.permute.xlu0 %490  ;;  %11725 = vst [vmem:[#allocation24_spill] sm:$0xff] %v10159_v45  ;;  %11726 = vst [vmem:[#allocation25_spill] sm:$0xff] %v10175_v19  ;;  %v10187_v46 = vrot.slane %v165_v44, %v9983_v58  ;;  %v10211_v53 = vrot.slane %v165_v44, %v10002_v5 }
 0x17d   :  { %v822_v35 = vrot.slane %v718_v8, 7  ;;  %v562_v40 = vmul.f32 %v10118_v60, %v499_v26  ;;  %v560_v41 = vmul.f32 %v10124_v0, %v491_v30 }
 0x17e   :  { %9129 = vmatpush3.bf16.msra.mxu0 %v10132_v3 }
 0x17f   :  { %9130 = vmatprep.subr.bf16.mxu0 %v11688_v14  ;;  %v855_v52 = vsel %vm848_vm3, 0.0, %v822_v35  ;;  %v578_v63 = vadd.f32 %v562_v40, %v450_v37  ;;  %v576_v8 = vadd.f32 %v560_v41, %v448_v36  ;;  %v10181_v35 = vrot.slane %v164_v62, %v9928_v13  ;;  %v776_v37 = vld [vmem:[#allocation3 + $0x80] sm:$0xff]  ;;  %v777_v40 = vld [vmem:[#allocation3 + $0x88] sm:$0xff] }
 0x180   :  { %v627_v54 = vpop.permute.xlu1 %626  ;;  %v619_v59 = vpop.permute.xlu0 %618  ;;  %v10184_v41 = vsel %vm865_vm4, %v855_v52, 0.0  ;;  %v10199_v52 = vpack.c.bf16 %v777_v40, %v776_v37  ;;  %v789_v13 = vld [vmem:[#allocation3 + $0xe8] sm:$0xff] }
 0x181   :  { %v690_v16 = vmul.f32 %v10147_v31, %v627_v54  ;;  %8372 = vmatmul.mubr.msk.f32.vlgmr.msra.gmra.mrb[4].mxu0 %vm884_vm5, %v1032_v22  ;;  %v688_v12 = vmul.f32 %v10150_v34, %v619_v59  ;;  %v10192_v59 = vld [vmem:[%s11721_s14 + $0x7] ss:$0 sm:$0xff] }
 0x182   :  { %9132 = vmatpush3.bf16.msra.mxu0 %v10159_v45  ;;  %8382 = vmatprep.mubr.msk.f32.mxu0 %vm9674_vm2, %v11680_v29  ;;  %11727 = vst [vmem:[#allocation26_spill] sm:$0xff] %v10199_v52  ;;  %v779_v29 = vld [vmem:[#allocation3 + $0x98] sm:$0xff] }
 0x183   :  { %v706_v26 = vadd.f32 %v690_v16, %v578_v63  ;;  %v704_v30 = vadd.f32 %v688_v12, %v576_v8  ;;  %9133 = vmatprep.subr.bf16.mxu0 %v11688_v14  ;;  %v10196_v8 = vrot.slane %v164_v62, %v9983_v58  ;;  %v778_v16 = vld [vmem:[#allocation3 + $0x90] sm:$0xff]  ;;  %v1106_v12 = vrot.slane %v10184_v41, 1  ;;  %v10208_v58 = vld [vmem:[%s11721_s14 + $0x6] ss:$0 sm:$0xff]  ;;  %s11740_s14 = sld [smem:[#allocation32_spill]] }
 0x184   :  { %v384_v22 = vpop.permute.xlu1 %383  ;;  %v370_v36 = vpop.permute.xlu0 %369  ;;  %v10225_v44 = vpack.c.bf16 %v779_v29, %v778_v16 }
 0x185   :  { %v722_v51 = vmax.f32 %v706_v26, 0.0  ;;  %v720_v54 = vmax.f32 %v704_v30, 0.0  ;;  %v438_v63 = vmul.f32 %v10166_v61, %v384_v22  ;;  %v436_v30 = vmul.f32 %v10181_v35, %v370_v36 }
 0x186   :  { %9135 = vmatpush3.bf16.msra.mxu0 %v10175_v19  ;;  %v11728_v19 = vmov 0.0  }
 0x187   :  { %v826_v9 = vrot.slane %v722_v51, 7  ;;  %v824_v26 = vrot.slane %v720_v54, 7  ;;  %9136 = vmatprep.subr.bf16.mxu0 %v11688_v14  ;;  %v454_v22 = vadd.f32 %v10192_v59, %v438_v63  ;;  %v10214_v51 = vrot.slane %v164_v62, %v10002_v5  ;;  %v784_v62 = vld [vmem:[#allocation3 + $0xc0] sm:$0xff]  ;;  %v790_v5 = vld [vmem:[#allocation3 + $0xf0] sm:$0xff] }
 0x188   :  { %v515_v37 = vpop.permute.xlu1 %514  ;;  %v507_v40 = vpop.permute.xlu0 %506 }
 0x189   :  { %v859_v36 = vsel %vm848_vm3, 0.0, %v826_v9  ;;  %v857_v54 = vsel %vm848_vm3, 0.0, %v824_v26  ;;  %v566_v14 = vmul.f32 %v10187_v46, %v515_v37  ;;  %8383 = vmatmul.mubr.msk.f32.vlgmr.msra.gmra.mrb[6].mxu0 %vm884_vm5, %v1106_v12  ;;  %v564_v63 = vmul.f32 %v10196_v8, %v507_v40  ;;  %v785_v40 = vld [vmem:[#allocation3 + $0xc8] sm:$0xff] }
 0x18a   :  { %v10222_v48 = vsel %vm865_vm4, %v859_v36, 0.0  ;;  %9138 = vmatpush3.bf16.msra.mxu0 %v10199_v52  ;;  %8393 = vmatprep.mubr.msk.f32.mxu0 %vm9674_vm2, %v11728_v19  ;;  %v10229_v9 = vpack.c.bf16 %v789_v13, %v788_v10  ;;  %v452_v26 = vadd.f32 %v10208_v58, %v436_v30  ;;  %v11729_v37 = vmov 0.0|0.0   ;;  %v791_v36 = vld [vmem:[#allocation3 + $0xf8] sm:$0xff] }
 0x18b   :  { %9139 = vmatprep.subr.bf16.mxu0 %v11729_v37  ;;  %v1254_v12 = vrot.slane %v10222_v48, 1  ;;  %v10235_v3 = vsel %vm865_vm4, %v857_v54, 0.0  ;;  %v582_v52 = vadd.f32 %v566_v14, %v454_v22  ;;  %v10241_v13 = vpack.c.bf16 %v785_v40, %v784_v62  ;;  %v786_v14 = vld [vmem:[#allocation3 + $0xd0] sm:$0xff]  ;;  %v787_v22 = vld [vmem:[#allocation3 + $0xd8] sm:$0xff] }
 0x18c   :  { %v643_v29 = vpop.permute.xlu1 %642  ;;  %v635_v16 = vpop.permute.xlu0 %634  ;;  %v580_v45 = vadd.f32 %v564_v63, %v452_v26  ;;  %v10244_v30 = vpack.c.bf16 %v791_v36, %v790_v5  ;;  %v1180_v54 = vrot.slane %v10235_v3, 1 }
 0x18d   :  { %v694_v42 = vmul.f32 %v10211_v53, %v643_v29  ;;  %v692_v10 = vmul.f32 %v10214_v51, %v635_v16  ;;  %8405 = vmatmul.mubr.msk.f32.vlgmr.msra.gmra.mrb[0].mxu1 %vm884_vm5, %v1254_v12  ;;  %v733_v29 = vld [vmem:[%s11730_s6 + $0x28] sm:$0xff] }
 0x18e   :  { %9141 = vmatpush3.bf16.msra.mxu0 %v10225_v44  ;;  %9156 = vmatpush3.bf16.msra.mxu1 %v10229_v9 }
 0x18f   :  { %v710_v20 = vadd.f32 %v694_v42, %v582_v52  ;;  %v708_v24 = vadd.f32 %v692_v10, %v580_v45  ;;  %9148 = vmatprep.subr.bf16.mxu0 %v11729_v37  ;;  %9157 = vmatprep.subr.bf16.mxu1 %v11729_v37  ;;  %v10255_v45 = vpack.c.bf16 %v787_v22, %v786_v14  ;;  %v728_v52 = vld [vmem:[%s11730_s6] sm:$0xff] }
 0x190   :  { %v307_v63 = vpop.permute.xlu1 %306  ;;  %v293_v26 = vpop.permute.xlu0 %292  ;;  %8426 = vmatprep.mubr.msk.f32.mxu1 %vm9674_vm2, %v11728_v19 }
 0x191   :  { %v726_v62 = vmax.f32 %v710_v20, 0.0  ;;  %v724_v12 = vmax.f32 %v708_v24, 0.0  ;;  %v427_v5 = vmul.f32 %v10017_v17, %v307_v63  ;;  %8394 = vmatmul.mubr.msk.f32.vlgmr.msra.gmra.mrb[8].mxu0 %vm884_vm5, %v1180_v54  ;;  %v425_v42 = vmul.f32 %v9999_v4, %v293_v26  ;;  %v729_v4 = vld [vmem:[%s11730_s6 + $0x8] sm:$0xff]  ;;  %v732_v20 = vld [vmem:[%s11730_s6 + $0x20] sm:$0xff] }
 0x192   :  { %9150 = vmatpush3.bf16.msra.mxu0 %v10241_v13  ;;  %9159 = vmatpush3.bf16.msra.mxu1 %v10244_v30  ;;  %v10287_v26 = vpack.c.bf16 %v729_v4, %v728_v52  ;;  %v734_v52 = vld [vmem:[%s11730_s6 + $0x30] sm:$0xff] }
 0x193   :  { %v830_v40 = vrot.slane %v726_v62, 7  ;;  %v828_v36 = vrot.slane %v724_v12, 7  ;;  %v443_v24 = vadd.f32 %v10027_v21, %v427_v5  ;;  %v441_v17 = vadd.f32 %v10013_v11, %v425_v42  ;;  %9151 = vmatprep.subr.bf16.mxu0 %v11729_v37  ;;  %9166 = vmatprep.subr.bf16.mxu1 %v11729_v37  ;;  %v730_v12 = vld [vmem:[%s11730_s6 + $0x10] sm:$0xff] }
 0x194   :  { %v471_v16 = vpop.permute.xlu1 %470  ;;  %v463_v21 = vpop.permute.xlu0 %462  ;;  %8415 = vmatprep.mubr.msk.f32.mxu0 %vm9674_vm2, %v11728_v19  ;;  %v10289_v62 = vpack.c.bf16 %v733_v29, %v732_v20 }
 0x195   :  { %v863_v11 = vsel %vm848_vm3, 0.0, %v830_v40  ;;  %v861_v10 = vsel %vm848_vm3, 0.0, %v828_v36  ;;  %v555_v54 = vmul.f32 %v10032_v28, %v471_v16  ;;  %v553_v14 = vmul.f32 %v10008_v7, %v463_v21  ;;  %v731_v40 = vld [vmem:[%s11730_s6 + $0x18] sm:$0xff]  ;;  %v736_v21 = vld [vmem:[%s11730_s6 + $0x40] sm:$0xff] }
 0x196   :  { %v10281_v22 = vsel %vm865_vm4, %v863_v11, 0.0  ;;  %v10284_v63 = vsel %vm865_vm4, %v861_v10, 0.0  ;;  %9153 = vmatpush3.bf16.msra.mxu0 %v10255_v45  ;;  %v735_v36 = vld [vmem:[%s11730_s6 + $0x38] sm:$0xff]  ;;  %v740_v10 = vld [vmem:[%s11730_s6 + $0x60] sm:$0xff] }
 0x197   :  { %v1402_v28 = vrot.slane %v10281_v22, 1  ;;  %v1328_v7 = vrot.slane %v10284_v63, 1  ;;  %v571_v5 = vadd.f32 %v555_v54, %v443_v24  ;;  %v569_v42 = vadd.f32 %v553_v14, %v441_v17  ;;  %9160 = vmatprep.subr.bf16.mxu0 %v11729_v37  ;;  %v741_v54 = vld [vmem:[%s11730_s6 + $0x68] sm:$0xff] }
 0x198   :  { %v599_v4 = vpop.permute.xlu1 %598  ;;  %v591_v20 = vpop.permute.xlu0 %590  ;;  %v10312_v17 = vpack.c.bf16 %v731_v40, %v730_v12  ;;  %v10314_v16 = vpack.c.bf16 %v735_v36, %v734_v52  ;;  %v738_v40 = vld [vmem:[%s11730_s6 + $0x50] sm:$0xff] }
 0x199   :  { %v683_v29 = vmul.f32 %v10039_v33, %v599_v4  ;;  %v681_v24 = vmul.f32 %v10020_v18, %v591_v20  ;;  %8416 = vmatmul.mubr.msk.f32.vlgmr.msra.gmra.mrb[10].mxu0 %vm884_vm5, %v1328_v7  ;;  %8427 = vmatmul.mubr.msk.f32.vlgmr.msra.gmra.mrb[2].mxu1 %vm884_vm5, %v1402_v28  ;;  %v737_v18 = vld [vmem:[%s11730_s6 + $0x48] sm:$0xff]  ;;  %v743_v4 = vld [vmem:[%s11730_s6 + $0x78] sm:$0xff] }
 0x19a   :  { %9162 = vmatpush3.bf16.msra.mxu0 %v10287_v26  ;;  %9168 = vmatpush3.bf16.msra.mxu1 %v10289_v62 }
 0x19b   :  { %v10319_v11 = vadd.f32 %v683_v29, %v571_v5  ;;  %v10321_v33 = vadd.f32 %v681_v24, %v569_v42  ;;  %9169 = vmatprep.subr.bf16.mxu1 %v11729_v37  ;;  %9163 = vmatprep.subr.bf16.mxu0 %v11729_v37  ;;  %v10342_v5 = vpack.c.bf16 %v737_v18, %v736_v21 }
 0x19c   :  { %v335_v14 = vpop.permute.xlu1 %334  ;;  %v321_v12 = vpop.permute.xlu0 %320  ;;  %8437 = vmatprep.mubr.msk.f32.mxu0 %vm9674_vm2, %v11728_v19  ;;  %8448 = vmatprep.mubr.msk.f32.mxu1 %vm9674_vm2, %v11728_v19  ;;  %v10344_v42 = vpack.c.bf16 %v741_v54, %v740_v10 }
 0x19d   :  { %v431_v28 = vmul.f32 %v10058_v50, %v335_v14  ;;  %v429_v7 = vmul.f32 %v10043_v38, %v321_v12  ;;  %v739_v38 = vld [vmem:[%s11730_s6 + $0x58] sm:$0xff]  ;;  %v742_v50 = vld [vmem:[%s11730_s6 + $0x70] sm:$0xff] }
 0x19e   :  { %9165 = vmatpush3.bf16.msra.mxu0 %v10312_v17  ;;  %9171 = vmatpush3.bf16.msra.mxu1 %v10314_v16  ;;  %v10370_v24 = vpack.c.bf16 %v739_v38, %v738_v40  ;;  %v10372_v21 = vpack.c.bf16 %v743_v4, %v742_v50  ;;  %v751_v50 = vld [vmem:[%s11730_s6 + $0xb8] sm:$0xff] }
 0x19f   :  { %v447_v52 = vadd.f32 %v10076_v1, %v431_v28  ;;  %v445_v36 = vadd.f32 %v10055_v47, %v429_v7  ;;  %9178 = vmatprep.subr.bf16.mxu1 %v11729_v37  ;;  %9172 = vmatprep.subr.bf16.mxu0 %v11729_v37 }
 0x1a0   :  { %v487_v20 = vpop.permute.xlu1 %486  ;;  %v479_v1 = vpop.permute.xlu0 %478 }
 0x1a1   :  { %v559_v47 = vmul.f32 %v10079_v6, %v487_v20  ;;  %8438 = vmatmul.mubr.msk.f32.vlgmr.msra.gmra.mrb[12].mxu0 %vm884_vm5, %v10066_v56  ;;  %8449 = vmatmul.mubr.msk.f32.vlgmr.msra.gmra.mrb[4].mxu1 %vm884_vm5, %v10099_v32  ;;  %v557_v29 = vmul.f32 %v10050_v43, %v479_v1  ;;  %v744_v6 = vld [vmem:[%s11730_s6 + $0x80] sm:$0xff]  ;;  %v745_v43 = vld [vmem:[%s11730_s6 + $0x88] sm:$0xff] }
 0x1a2   :  { %9174 = vmatpush3.bf16.msra.mxu0 %v10342_v5  ;;  %9180 = vmatpush3.bf16.msra.mxu1 %v10344_v42  ;;  %v748_v56 = vld [vmem:[%s11730_s6 + $0xa0] sm:$0xff]  ;;  %v749_v32 = vld [vmem:[%s11730_s6 + $0xa8] sm:$0xff]  ;;  %v10396_v7 = vpack.c.bf16 %v745_v43, %v744_v6 }
 0x1a3   :  { %v575_v18 = vadd.f32 %v559_v47, %v447_v52  ;;  %v573_v10 = vadd.f32 %v557_v29, %v445_v36  ;;  %9175 = vmatprep.subr.bf16.mxu0 %v11729_v37  ;;  %9181 = vmatprep.subr.bf16.mxu1 %v11729_v37  ;;  %v10398_v40 = vpack.c.bf16 %v749_v32, %v748_v56  ;;  %v746_v52 = vld [vmem:[%s11730_s6 + $0x90] sm:$0xff] }
 0x1a4   :  { %v615_v54 = vpop.permute.xlu1 %614  ;;  %v607_v14 = vpop.permute.xlu0 %606  ;;  %8459 = vmatprep.mubr.msk.f32.mxu0 %vm9674_vm2, %v11728_v19  ;;  %8470 = vmatprep.mubr.msk.f32.mxu1 %vm9674_vm2, %v11728_v19 }
 0x1a5   :  { %v687_v12 = vmul.f32 %v10095_v27, %v615_v54  ;;  %v685_v28 = vmul.f32 %v10063_v55, %v607_v14  ;;  %v747_v55 = vld [vmem:[%s11730_s6 + $0x98] sm:$0xff]  ;;  %v750_v27 = vld [vmem:[%s11730_s6 + $0xb0] sm:$0xff] }
 0x1a6   :  { %9177 = vmatpush3.bf16.msra.mxu0 %v10370_v24  ;;  %9183 = vmatpush3.bf16.msra.mxu1 %v10372_v21  ;;  %v10426_v29 = vpack.c.bf16 %v747_v55, %v746_v52  ;;  %v10428_v6 = vpack.c.bf16 %v751_v50, %v750_v27  ;;  %v754_v14 = vld [vmem:[%s11730_s6 + $0xd0] sm:$0xff]  ;;  %v759_v52 = vld [vmem:[%s11730_s6 + $0xf8] sm:$0xff]  ;;  %v715_v55 = vmax.f32 %v10319_v11, 0.0  ;;  %v713_v27 = vmax.f32 %v10321_v33, 0.0 }
 0x1a7   :  { %v10403_v36 = vadd.f32 %v687_v12, %v575_v18  ;;  %v10405_v38 = vadd.f32 %v685_v28, %v573_v10  ;;  %9184 = vmatprep.subr.bf16.mxu0 %v11729_v37  ;;  %9190 = vmatprep.subr.bf16.mxu1 %v11729_v37  ;;  %v757_v10 = vld [vmem:[%s11730_s6 + $0xe8] sm:$0xff] }
 0x1a8   :  { %v363_v4 = vpop.permute.xlu1 %362  ;;  %v349_v20 = vpop.permute.xlu0 %348 }
 0x1a9   :  { %v435_v1 = vmul.f32 %v10107_v39, %v363_v4  ;;  %8460 = vmatmul.mubr.msk.f32.vlgmr.msra.gmra.mrb[14].mxu0 %vm884_vm5, %v10139_v23  ;;  %8471 = vmatmul.mubr.msk.f32.vlgmr.msra.gmra.mrb[6].mxu1 %vm884_vm5, %v10184_v41  ;;  %v433_v47 = vmul.f32 %v10115_v49, %v349_v20  ;;  %v752_v39 = vld [vmem:[%s11730_s6 + $0xc0] sm:$0xff]  ;;  %v753_v49 = vld [vmem:[%s11730_s6 + $0xc8] sm:$0xff] }
 0x1aa   :  { %9186 = vmatpush3.bf16.msra.mxu0 %v10396_v7  ;;  %9192 = vmatpush3.bf16.msra.mxu1 %v10398_v40  ;;  %v756_v41 = vld [vmem:[%s11730_s6 + $0xe0] sm:$0xff]  ;;  %v10454_v32 = vpack.c.bf16 %v753_v49, %v752_v39 }
 0x1ab   :  { %v451_v18 = vadd.f32 %v10129_v2, %v435_v1  ;;  %v449_v23 = vadd.f32 %v10144_v25, %v433_v47  ;;  %9187 = vmatprep.subr.bf16.mxu0 %v11729_v37  ;;  %9193 = vmatprep.subr.bf16.mxu1 %v11729_v37  ;;  %v10456_v54 = vpack.c.bf16 %v757_v10, %v756_v41 }
 0x1ac   :  { %v503_v43 = vpop.permute.xlu1 %502  ;;  %v495_v2 = vpop.permute.xlu0 %494  ;;  %8481 = vmatprep.mubr.msk.f32.mxu0 %vm9674_vm2, %v11728_v19  ;;  %8492 = vmatprep.mubr.msk.f32.mxu1 %vm9674_vm2, %v11728_v19 }
 0x1ad   :  { %v563_v25 = vmul.f32 %v10118_v60, %v503_v43  ;;  %v561_v56 = vmul.f32 %v10124_v0, %v495_v2  ;;  %v755_v60 = vld [vmem:[%s11730_s6 + $0xd8] sm:$0xff]  ;;  %v758_v0 = vld [vmem:[%s11730_s6 + $0xf0] sm:$0xff] }
 0x1ae   :  { %9189 = vmatpush3.bf16.msra.mxu0 %v10426_v29  ;;  %9195 = vmatpush3.bf16.msra.mxu1 %v10428_v6  ;;  %v10482_v47 = vpack.c.bf16 %v755_v60, %v754_v14  ;;  %v10484_v11 = vpack.c.bf16 %v759_v52, %v758_v0 }
 0x1af   :  { %v579_v12 = vadd.f32 %v563_v25, %v451_v18  ;;  %v577_v28 = vadd.f32 %v561_v56, %v449_v23  ;;  %9196 = vmatprep.subr.bf16.mxu0 %v11729_v37  ;;  %9202 = vmatprep.subr.bf16.mxu1 %v11729_v37  ;;  %v717_v25 = vmax.f32 %v10405_v38, 0.0 }
 0x1b0   :  { %v631_v50 = vpop.permute.xlu1 %630  ;;  %v623_v4 = vpop.permute.xlu0 %622 }
 0x1b1   :  { %v691_v20 = vmul.f32 %v10147_v31, %v631_v50  ;;  %8482 = vmatmul.mubr.msk.f32.vlgmr.msra.gmra.mrb[16].mxu0 %vm884_vm5, %v10235_v3  ;;  %8493 = vmatmul.mubr.msk.f32.vlgmr.msra.gmra.mrb[8].mxu1 %vm884_vm5, %v10222_v48  ;;  %v689_v1 = vmul.f32 %v10150_v34, %v623_v4  ;;  %v819_v3 = vrot.slane %v715_v55, 7  ;;  %v817_v48 = vrot.slane %v713_v27, 7  ;;  %v11733_v4 = vld [vmem:[#allocation22_spill] sm:$0xff] }
 0x1b2   :  { %9198 = vmatpush3.bf16.msra.mxu0 %v10454_v32  ;;  %9204 = vmatpush3.bf16.msra.mxu1 %v10456_v54 }
 0x1b3   :  { %v10486_v33 = vadd.f32 %v691_v20, %v579_v12  ;;  %v10488_v39 = vadd.f32 %v689_v1, %v577_v28  ;;  %9199 = vmatprep.subr.bf16.mxu0 %v11729_v37  ;;  %9205 = vmatprep.subr.bf16.mxu1 %v11729_v37  ;;  %v852_v10 = vsel %vm848_vm3, 0.0, %v819_v3  ;;  %v850_v43 = vsel %vm848_vm3, 0.0, %v817_v48  ;;  %v11731_v12 = vld [vmem:[#allocation16_spill] sm:$0xff]  ;;  %v11732_v28 = vld [vmem:[#allocation21_spill] sm:$0xff]  ;;  %v11735_v48 = vld [vmem:[#allocation23_spill] sm:$0xff] }
 0x1b4   :  { %v391_v31 = vpop.permute.xlu1 %390  ;;  %v377_v34 = vpop.permute.xlu0 %376  ;;  %8503 = vmatprep.mubr.msk.f32.mxu0 %vm9674_vm2, %v11728_v19  ;;  %8514 = vmatprep.mubr.msk.f32.mxu1 %vm9674_vm2, %v11728_v19  ;;  %v11734_v20 = vld [vmem:[#allocation24_spill] sm:$0xff] }
 0x1b5   :  { %v439_v18 = vmul.f32 %v10166_v61, %v391_v31  ;;  %v437_v23 = vmul.f32 %v10181_v35, %v377_v34  ;;  %v719_v35 = vmax.f32 %v10403_v36, 0.0  ;;  %v721_v50 = vmax.f32 %v10488_v39, 0.0  ;;  %v11736_v31 = vld [vmem:[#allocation25_spill] sm:$0xff] }
 0x1b6   :  { %9201 = vmatpush3.bf16.msra.mxu0 %v10482_v47  ;;  %9207 = vmatpush3.bf16.msra.mxu1 %v10484_v11 }
 0x1b7   :  { %v455_v49 = vadd.f32 %v10192_v59, %v439_v18  ;;  %v453_v41 = vadd.f32 %v10208_v58, %v437_v23  ;;  %9208 = vmatprep.subr.bf16.mxu0 %v11729_v37  ;;  %9214 = vmatprep.subr.bf16.mxu1 %v11729_v37  ;;  %v825_v39 = vrot.slane %v721_v50, 7 }
 0x1b8   :  { %v519_v2 = vpop.permute.xlu1 %518  ;;  %v511_v61 = vpop.permute.xlu0 %510 }
 0x1b9   :  { %v567_v56 = vmul.f32 %v10187_v46, %v519_v2  ;;  %8504 = vmatmul.mubr.msk.f32.vlgmr.msra.gmra.mrb[18].mxu0 %vm884_vm5, %v10284_v63  ;;  %8515 = vmatmul.mubr.msk.f32.vlgmr.msra.gmra.mrb[10].mxu1 %vm884_vm5, %v10281_v22  ;;  %v565_v58 = vmul.f32 %v10196_v8, %v511_v61  ;;  %v10519_v46 = vsel %vm865_vm4, %v852_v10, 0.0  ;;  %v10522_v63 = vsel %vm865_vm4, %v850_v43, 0.0  ;;  %v11737_v43 = vld [vmem:[#allocation26_spill] sm:$0xff]  ;;  %v11738_v2 = vld [vmem:[#allocation17_spill] sm:$0xff] }
 0x1ba   :  { %9210 = vmatpush3.bf16.msra.mxu0 %v9931_v15  ;;  %9216 = vmatpush3.bf16.msra.mxu1 %v10068_v57  ;;  %v823_v15 = vrot.slane %v719_v35, 7  ;;  %v821_v57 = vrot.slane %v717_v25, 7  ;;  %v2256_v60 = vrot.slane %v10519_v46, 1  ;;  %v2182_v0 = vrot.slane %v10522_v63, 1 }
 0x1bb   :  { %v583_v59 = vadd.f32 %v567_v56, %v455_v49  ;;  %v581_v14 = vadd.f32 %v565_v58, %v453_v41  ;;  %9211 = vmatprep.subr.bf16.mxu0 %v11729_v37  ;;  %9217 = vmatprep.subr.bf16.mxu1 %v11729_v37  ;;  %v858_v49 = vsel %vm848_vm3, 0.0, %v825_v39  ;;  %v11739_v58 = vld [vmem:[#allocation18_spill] sm:$0xff] }
 0x1bc   :  { %v647_v36 = vpop.permute.xlu1 %646  ;;  %v639_v22 = vpop.permute.xlu0 %638  ;;  %8525 = vmatprep.mubr.msk.f32.mxu0 %vm9674_vm2, %v11728_v19  ;;  %8536 = vmatprep.mubr.msk.f32.mxu1 %vm9674_vm2, %v11728_v19  ;;  %v856_v27 = vsel %vm848_vm3, 0.0, %v823_v15  ;;  %v10574_v35 = vsel %vm865_vm4, %v858_v49, 0.0  ;;  %v7910_v39 = vld [vmem:[%s11653_s10 + $0x3] ss:$0 sm:$0xff] }
 0x1bd   :  { %v695_v8 = vmul.f32 %v10211_v53, %v647_v36  ;;  %v693_v38 = vmul.f32 %v10214_v51, %v639_v22  ;;  %v854_v53 = vsel %vm848_vm3, 0.0, %v821_v57  ;;  %v723_v51 = vmax.f32 %v10486_v33, 0.0 }
 0x1be   :  { %9213 = vmatpush3.bf16.msra.mxu0 %v11731_v12  ;;  %9219 = vmatpush3.bf16.msra.mxu1 %v11732_v28  ;;  %v10547_v1 = vsel %vm865_vm4, %v856_v27, 0.0  ;;  %v10550_v3 = vsel %vm865_vm4, %v854_v53, 0.0  ;;  %v9676_v28 = vmov 0   ;;  %v7908_v27 = vld [vmem:[%s11653_s10 + $0x1] ss:$0 sm:$0xff] }
 0x1bf   :  { %v711_v52 = vadd.f32 %v695_v8, %v583_v59  ;;  %v709_v55 = vadd.f32 %v693_v38, %v581_v14  ;;  %9220 = vmatprep.subr.bf16.mxu0 %v11729_v37  ;;  %9226 = vmatprep.subr.bf16.mxu1 %v11729_v37  ;;  %v827_v33 = vrot.slane %v723_v51, 7  ;;  %v2404_v34 = vrot.slane %v10547_v1, 1  ;;  %v7923_v38 = vld [vmem:[%s11654_s11 + $0x2] ss:$0 sm:$0xff]  ;;  %v7925_v53 = vld [vmem:[%s11654_s11 + $0x4] ss:$0 sm:$0xff] }
 0x1c0   :  { %v2330_v18 = vrot.slane %v10550_v3, 1  ;;  %v2478_v14 = vrot.slane %v10574_v35, 1  ;;  %9516 = vset.pattern.permute.xlu1 %v9676_v28  ;;  %9515 = vset.pattern.permute.xlu0 %v9676_v28 }
 0x1c1   :  { %8526 = vmatmul.mubr.msk.f32.vlgmr.msra.gmra.mrb[20].mxu0 %vm884_vm5, %v2182_v0  ;;  %8537 = vmatmul.mubr.msk.f32.vlgmr.msra.gmra.mrb[12].mxu1 %vm884_vm5, %v2256_v60  ;;  %v860_v23 = vsel %vm848_vm3, 0.0, %v827_v33  ;;  %v727_v41 = vmax.f32 %v711_v52, 0.0  ;;  %v725_v10 = vmax.f32 %v709_v55, 0.0  ;;  %v7922_v60 = vld [vmem:[%s11654_s11 + $0x1] ss:$0 sm:$0xff] }
 0x1c2   :  { %9222 = vmatpush3.bf16.msra.mxu0 %v11733_v4  ;;  %9228 = vmatpush3.bf16.msra.mxu1 %v11734_v20  ;;  %v10571_v61 = vsel %vm865_vm4, %v860_v23, 0.0  ;;  %v7921_v52 = vld [vmem:[%s11654_s11] ss:$0 sm:$0xff]  ;;  %v7924_v55 = vld [vmem:[%s11654_s11 + $0x3] ss:$0 sm:$0xff] }
 0x1c3   :  { %9223 = vmatprep.subr.bf16.mxu0 %v11729_v37  ;;  %9229 = vmatprep.subr.bf16.mxu1 %v11729_v37  ;;  %v831_v25 = vrot.slane %v727_v41, 7  ;;  %v829_v56 = vrot.slane %v725_v10, 7  ;;  %v2552_v59 = vrot.slane %v10571_v61, 1  ;;  %v7907_v33 = vld [vmem:[%s11653_s10] ss:$0 sm:$0xff] }
 0x1c4   :  { %8547 = vmatprep.mubr.msk.f32.mxu0 %vm9674_vm2, %v11728_v19  ;;  %8558 = vmatprep.mubr.msk.f32.mxu1 %vm9674_vm2, %v11728_v19  ;;  %v7927_v41 = vld [vmem:[%s11654_s11 + $0x6] ss:$0 sm:$0xff]  ;;  %v7911_v10 = vld [vmem:[%s11653_s10 + $0x4] ss:$0 sm:$0xff] }
 0x1c5   :  { %v864_v36 = vsel %vm848_vm3, 0.0, %v831_v25  ;;  %v862_v22 = vsel %vm848_vm3, 0.0, %v829_v56  ;;  %4265 = vperm.xlu1 %9516, %v7923_v38   ;;  %4261 = vperm.xlu0 %9515, %v7922_v60  }
 0x1c6   :  { %9225 = vmatpush3.bf16.msra.mxu0 %v11735_v48  ;;  %9231 = vmatpush3.bf16.msra.mxu1 %v11736_v31  ;;  %v879_v15 = vsel %vm865_vm4, %v862_v22, 0.0 }
 0x1c7   :  { %9232 = vmatprep.subr.bf16.mxu0 %v11729_v37  ;;  %9238 = vmatprep.subr.bf16.mxu1 %v11729_v37 }
 0x1c9   :  { %8548 = vmatmul.mubr.msk.f32.vlgmr.msra.gmra.mrb[22].mxu0 %vm884_vm5, %v2330_v18  ;;  %8559 = vmatmul.mubr.msk.f32.vlgmr.msra.gmra.mrb[14].mxu1 %vm884_vm5, %v2404_v34 }
 0x1ca   :  { %9234 = vmatpush3.bf16.msra.mxu0 %v11737_v43  ;;  %9240 = vmatpush3.bf16.msra.mxu1 %v11738_v2  ;;  %v7912_v43 = vld [vmem:[%s11653_s10 + $0x5] ss:$0 sm:$0xff]  ;;  %v7913_v2 = vld [vmem:[%s11653_s10 + $0x6] ss:$0 sm:$0xff] }
 0x1cb   :  { %9235 = vmatprep.subr.bf16.mxu0 %v11729_v37  ;;  %9241 = vmatprep.subr.bf16.mxu1 %v11729_v37 }
 0x1cc   :  { %8569 = vmatprep.mubr.msk.f32.mxu0 %vm9674_vm2, %v11728_v19  ;;  %8580 = vmatprep.mubr.msk.f32.mxu1 %vm9674_vm2, %v11728_v19 }
 0x1cd   :  { %4257 = vperm.xlu1 %9516, %v7921_v52   ;;  %4269 = vperm.xlu0 %9515, %v7924_v55  }
 0x1ce   :  { %9237 = vmatpush3.bf16.msra.mxu0 %v10225_v44  ;;  %9243 = vmatpush3.bf16.msra.mxu1 %v11739_v58  ;;  %v881_v44 = vsel %vm865_vm4, %v864_v36, 0.0 }
 0x1cf   :  { %9244 = vmatprep.subr.bf16.mxu0 %v11729_v37  ;;  %9250 = vmatprep.subr.bf16.mxu1 %v11729_v37 }
 0x1d1   :  { %8570 = vmatmul.mubr.msk.f32.vlgmr.msra.gmra.mrb[24].mxu0 %vm884_vm5, %v2478_v14  ;;  %8581 = vmatmul.mubr.msk.f32.vlgmr.msra.gmra.mrb[16].mxu1 %vm884_vm5, %v2552_v59 }
 0x1d2   :  { %9246 = vmatpush3.bf16.msra.mxu0 %v10241_v13  ;;  %9252 = vmatpush3.bf16.msra.mxu1 %v10229_v9  ;;  %v2700_v13 = vrot.slane %v881_v44, 1  ;;  %v2626_v9 = vrot.slane %v879_v15, 1 }
 0x1d3   :  { %9247 = vmatprep.subr.bf16.mxu0 %v11729_v37  ;;  %9253 = vmatprep.subr.bf16.mxu1 %v11729_v37 }
 0x1d4   :  { %8591 = vmatprep.mubr.msk.f32.mxu0 %vm9674_vm2, %v11728_v19  ;;  %8602 = vmatprep.mubr.msk.f32.mxu1 %vm9674_vm2, %v11728_v19 }
 0x1d5   :  { %4128 = vperm.xlu1 %9516, %v7908_v27   ;;  %4273 = vperm.xlu0 %9515, %v7925_v53  }
 0x1d6   :  { %9249 = vmatpush3.bf16.msra.mxu0 %v10255_v45  ;;  %9255 = vmatpush3.bf16.msra.mxu1 %v10244_v30  ;;  %v3437_v30 = vld [vmem:[#allocation5] sm:$0xff]  ;;  %v3438_v45 = vld [vmem:[#allocation5 + $0x8] sm:$0xff] }
 0x1d7   :  { %9256 = vmatprep.subr.bf16.mxu0 %v11729_v37  ;;  %9262 = vmatprep.subr.bf16.mxu1 %v11729_v37 }
 0x1d9   :  { %8592 = vmatmul.mubr.msk.f32.vlgmr.msra.gmra.mrb[26].mxu0 %vm884_vm5, %v2626_v9  ;;  %8603 = vmatmul.mubr.msk.f32.vlgmr.msra.gmra.mrb[18].mxu1 %vm884_vm5, %v2700_v13 }
 0x1da   :  { %9258 = vmatpush3.bf16.msra.mxu0 %v10287_v26  ;;  %9264 = vmatpush3.bf16.msra.mxu1 %v10289_v62  ;;  %v9305_v26 = vpack.c.bf16 %v3438_v45, %v3437_v30 }
 0x1db   :  { %9259 = vmatprep.subr.bf16.mxu0 %v11729_v37  ;;  %9265 = vmatprep.subr.bf16.mxu1 %v11729_v37 }
 0x1dc   :  { %8613 = vmatprep.mubr.msk.f32.mxu0 %vm9674_vm2, %v11728_v19  ;;  %8624 = vmatprep.mubr.msk.f32.mxu1 %vm9674_vm2, %v11728_v19 }
 0x1de   :  { %9261 = vmatpush3.bf16.msra.mxu0 %v10312_v17  ;;  %9267 = vmatpush3.bf16.msra.mxu1 %v10314_v16  ;;  %v3439_v16 = vld [vmem:[#allocation5 + $0x10] sm:$0xff] }
 0x1df   :  { %9268 = vmatprep.subr.bf16.mxu0 %v11729_v37  ;;  %9274 = vmatprep.subr.bf16.mxu1 %v11729_v37 }
 0x1e1   :  { %8614 = vmatmul.mubr.msk.f32.vlgmr.msra.gmra.mrb[28].mxu0 %vm884_vm5, %v10522_v63  ;;  %8625 = vmatmul.mubr.msk.f32.vlgmr.msra.gmra.mrb[20].mxu1 %vm884_vm5, %v10519_v46 }
 0x1e2   :  { %9270 = vmatpush3.bf16.msra.mxu0 %v10342_v5  ;;  %9276 = vmatpush3.bf16.msra.mxu1 %v10344_v42  ;;  %v3440_v5 = vld [vmem:[#allocation5 + $0x18] sm:$0xff] }
 0x1e3   :  { %9271 = vmatprep.subr.bf16.mxu0 %v11729_v37  ;;  %9277 = vmatprep.subr.bf16.mxu1 %v11729_v37  ;;  %v9308_v42 = vpack.c.bf16 %v3440_v5, %v3439_v16 }
 0x1e4   :  { %8635 = vmatprep.mubr.msk.f32.mxu0 %vm9674_vm2, %v11728_v19  ;;  %8646 = vmatprep.mubr.msk.f32.mxu1 %vm9674_vm2, %v11728_v19 }
 0x1e6   :  { %9273 = vmatpush3.bf16.msra.mxu0 %v10370_v24  ;;  %9279 = vmatpush3.bf16.msra.mxu1 %v10372_v21  ;;  %v3441_v24 = vld [vmem:[#allocation5 + $0x20] sm:$0xff]  ;;  %v3442_v21 = vld [vmem:[#allocation5 + $0x28] sm:$0xff] }
 0x1e7   :  { %9280 = vmatprep.subr.bf16.mxu0 %v11729_v37  ;;  %9286 = vmatprep.subr.bf16.mxu1 %v11729_v37 }
 0x1e9   :  { %8636 = vmatmul.mubr.msk.f32.vlgmr.msra.gmra.mrb[30].mxu0 %vm884_vm5, %v10550_v3  ;;  %8647 = vmatmul.mubr.msk.f32.vlgmr.msra.gmra.mrb[22].mxu1 %vm884_vm5, %v10547_v1  ;;  %v7909_v1 = vld [vmem:[%s11653_s10 + $0x2] ss:$0 sm:$0xff]  ;;  %v7926_v3 = vld [vmem:[%s11654_s11 + $0x5] ss:$0 sm:$0xff]  ;;  %s11745_s11 = sld [smem:[#allocation36_spill]] }
 0x1ea   :  { %9282 = vmatpush3.bf16.msra.mxu0 %v10396_v7  ;;  %9288 = vmatpush3.bf16.msra.mxu1 %v10398_v40  ;;  %v9311_v7 = vpack.c.bf16 %v3442_v21, %v3441_v24  ;;  %v10725_v21 = vld [vmem:[%s11740_s14] ss:$0 sm:$0xff] }
 0x1eb   :  { %9283 = vmatprep.subr.bf16.mxu0 %v11729_v37  ;;  %9289 = vmatprep.subr.bf16.mxu1 %v11729_v37 }
 0x1ec   :  { %8657 = vmatprep.mubr.msk.f32.mxu0 %vm9674_vm2, %v11728_v19  ;;  %8668 = vmatprep.mubr.msk.f32.mxu1 %vm9674_vm2, %v11728_v19 }
 0x1ed   :  { %4132 = vperm.xlu1 %9516, %v7909_v1   ;;  %4277 = vperm.xlu0 %9515, %v7926_v3  }
 0x1ee   :  { %9285 = vmatpush3.bf16.msra.mxu0 %v10426_v29  ;;  %9291 = vmatpush3.bf16.msra.mxu1 %v10428_v6  ;;  %v3443_v6 = vld [vmem:[#allocation5 + $0x30] sm:$0xff] }
 0x1ef   :  { %9292 = vmatprep.subr.bf16.mxu0 %v11729_v37  ;;  %9298 = vmatprep.subr.bf16.mxu1 %v11729_v37 }
 0x1f1   :  { %8658 = vmatmul.mubr.msk.f32.vlgmr.msra.gmra.mrb[32].mxu0 %vm884_vm5, %v10574_v35  ;;  %8669 = vmatmul.mubr.msk.f32.vlgmr.msra.gmra.mrb[24].mxu1 %vm884_vm5, %v10571_v61 }
 0x1f2   :  { %9294 = vmatpush3.bf16.msra.mxu0 %v10454_v32  ;;  %9300 = vmatpush3.bf16.msra.mxu1 %v10456_v54  ;;  %v3444_v32 = vld [vmem:[#allocation5 + $0x38] sm:$0xff] }
 0x1f3   :  { %9295 = vmatprep.subr.bf16.mxu0 %v11729_v37  ;;  %9301 = vmatprep.subr.bf16.mxu1 %v11729_v37  ;;  %v9314_v54 = vpack.c.bf16 %v3444_v32, %v3443_v6 }
 0x1f4   :  { %8679 = vmatprep.mubr.msk.f32.mxu0 %vm9674_vm2, %v11728_v19  ;;  %8690 = vmatprep.mubr.msk.f32.mxu1 %vm9674_vm2, %v11728_v19 }
 0x1f5   :  { %4124 = vperm.xlu1 %9516, %v7907_v33   ;;  %4136 = vperm.xlu0 %9515, %v7910_v39   ;;  %v10761_v33 = vld [vmem:[%s11740_s14 + $0x4] ss:$0 sm:$0xff]  ;;  %v10766_v39 = vld [vmem:[%s11740_s14 + $0x5] ss:$0 sm:$0xff] }
 0x1f6   :  { %9297 = vmatpush3.bf16.msra.mxu0 %v10482_v47  ;;  %9303 = vmatpush3.bf16.msra.mxu1 %v10484_v11 }
 0x1f7   :  { %9304 = vmatprep.subr.bf16.mxu0 %v11729_v37  ;;  %9310 = vmatprep.subr.bf16.mxu1 %v11729_v37 }
 0x1f9   :  { %8680 = vmatmul.mubr.msk.f32.vlgmr.msra.gmra.mrb[34].mxu0 %vm884_vm5, %v879_v15  ;;  %8691 = vmatmul.mubr.msk.f32.vlgmr.msra.gmra.mrb[26].mxu1 %vm884_vm5, %v881_v44 }
 0x1fa   :  { %8701 = vmatprep.mubr.msk.f32.mxu0 %vm9674_vm2, %v11728_v19  ;;  %8712 = vmatprep.mubr.msk.f32.mxu1 %vm9674_vm2, %v11728_v19 }
 0x1fb   :  { %9306 = vmatpush3.bf16.msra.mxu0 %v9305_v26  ;;  %9312 = vmatpush3.bf16.msra.mxu1 %v9311_v7  ;;  %v10730_v7 = vld [vmem:[%s11740_s14 + $0x1] ss:$0 sm:$0xff] }
 0x1fc   :  { %9307 = vmatprep.subr.bf16.mxu0 %v11729_v37  ;;  %9313 = vmatprep.subr.bf16.mxu1 %v11729_v37 }
 0x1fd   :  { %4281 = vperm.xlu1 %9516, %v7927_v41   ;;  %4140 = vperm.xlu0 %9515, %v7911_v10  }
 0x1ff   :  { %9309 = vmatpush3.bf16.msra.mxu0 %v9308_v42  ;;  %9315 = vmatpush3.bf16.msra.mxu1 %v9314_v54 }
 0x200   :  { %9316 = vmatprep.subr.bf16.mxu0 %v11729_v37  ;;  %9322 = vmatprep.subr.bf16.mxu1 %v11729_v37 }
 0x201   :  { %4144 = vperm.xlu1 %9516, %v7912_v43   ;;  %4148 = vperm.xlu0 %9515, %v7913_v2  }
 0x244   :  { %v953_v62 = vpop.f32.mrb[0].mxu0 }
 0x245   :  { %v8351_v17 = vpop.f32.mrb[1].mxu0 }
 0x24c   :  { %v1027_v40 = vpop.f32.mrb[2].mxu0 }
 0x24d   :  { %v8362_v29 = vpop.f32.mrb[3].mxu0 }
 0x254   :  { %v1101_v47 = vpop.f32.mrb[4].mxu0 }
 0x255   :  { %v8373_v11 = vpop.f32.mrb[5].mxu0 }
 0x256   :  { %v10741_v11 = vld [vmem:[%s11740_s14 + $0x2] ss:$0 sm:$0xff] }
 0x25c   :  { %v1175_v46 = vpop.f32.mrb[6].mxu0 }
 0x25d   :  { %v8384_v63 = vpop.f32.mrb[7].mxu0 }
 0x260   :  { %v1323_v57 = vpop.f32.mrb[0].mxu1 }
 0x261   :  { %v8406_v8 = vpop.f32.mrb[1].mxu1 }
 0x264   :  { %v1249_v12 = vpop.f32.mrb[8].mxu0 }
 0x265   :  { %v8395_v0 = vpop.f32.mrb[9].mxu0 }
 0x26c   :  { %v1397_v51 = vpop.f32.mrb[10].mxu0  ;;  %v1471_v50 = vpop.f32.mrb[2].mxu1 }
 0x26d   :  { %v8417_v4 = vpop.f32.mrb[11].mxu0  ;;  %v8428_v20 = vpop.f32.mrb[3].mxu1 }
 0x274   :  { %v1543_v48 = vpop.f32.mrb[12].mxu0  ;;  %v1615_v31 = vpop.f32.mrb[4].mxu1 }
 0x275   :  { %v1544_v34 = vadd.f32 %v1543_v48, %v953_v62  ;;  %v1616_v18 = vadd.f32 %v1615_v31, %v1027_v40  ;;  %v8439_v23 = vpop.f32.mrb[13].mxu0  ;;  %v8450_v49 = vpop.f32.mrb[5].mxu1 }
 0x277   :  { %v2099_v6 = vadd.f32 %v10725_v21, %v1544_v34  ;;  %v2100_v32 = vadd.f32 %v10730_v7, %v1616_v18 }
 0x279   :  { %v2107_v63 = vmax.f32 %v2099_v6, 0.0 }
 0x27b   :  { %v2116_v60 = vsel %vm2115_vm6, %v2107_v63, 0.0 }
 0x27c   :  { %v1687_v61 = vpop.f32.mrb[14].mxu0  ;;  %v1759_v35 = vpop.f32.mrb[6].mxu1 }
 0x27d   :  { %v1688_v25 = vadd.f32 %v1687_v61, %v1101_v47  ;;  %v1760_v56 = vadd.f32 %v1759_v35, %v1175_v46  ;;  %v8461_v58 = vpop.f32.mrb[15].mxu0  ;;  %v8472_v59 = vpop.f32.mrb[7].mxu1  ;;  %v10746_v46 = vld [vmem:[%s11740_s14 + $0x3] ss:$0 sm:$0xff] }
 0x27e   :  { %v10776_v59 = vld [vmem:[#allocation5 + $0x48] sm:$0xff] }
 0x27f   :  { %v2101_v8 = vadd.f32 %v10741_v11, %v1688_v25  ;;  %v2102_v38 = vadd.f32 %v10746_v46, %v1760_v56  ;;  %v10774_v25 = vld [vmem:[#allocation5 + $0x40] sm:$0xff] }
 0x280   :  { %v9317_v63 = vpack.c.bf16 %v10776_v59, %v10774_v25 }
 0x281   :  { %v2109_v27 = vmax.f32 %v2101_v8, 0.0  ;;  %v2110_v53 = vmax.f32 %v2102_v38, 0.0  ;;  %v10794_v8 = vld [vmem:[#allocation5 + $0x70] sm:$0xff] }
 0x283   :  { %v2130_v4 = vsel %vm2115_vm6, %v2109_v27, 0.0  ;;  %v2137_v20 = vsel %vm2115_vm6, %v2110_v53, 0.0 }
 0x284   :  { %v1831_v14 = vpop.f32.mrb[16].mxu0  ;;  %v1903_v36 = vpop.f32.mrb[8].mxu1  ;;  %v2131_v34 = vrot.slane %v2130_v4, 4  ;;  %v2138_v18 = vrot.slane %v2137_v20, 4 }
 0x285   :  { %v1832_v22 = vadd.f32 %v1831_v14, %v1249_v12  ;;  %v1904_v44 = vadd.f32 %v1903_v36, %v1323_v57  ;;  %v8483_v15 = vpop.f32.mrb[17].mxu0  ;;  %v8494_v13 = vpop.f32.mrb[9].mxu1  ;;  %v2108_v57 = vmax.f32 %v2100_v32, 0.0  ;;  %v10778_v14 = vld [vmem:[#allocation5 + $0x50] sm:$0xff]  ;;  %v10780_v36 = vld [vmem:[#allocation5 + $0x58] sm:$0xff] }
 0x286   :  { %v2132_v61 = vadd.f32 %v2131_v34, %v2130_v4  ;;  %v2139_v35 = vadd.f32 %v2138_v18, %v2137_v20 }
 0x287   :  { %v2123_v0 = vsel %vm2115_vm6, %v2108_v57, 0.0  ;;  %v2103_v41 = vadd.f32 %v10761_v33, %v1832_v22  ;;  %v2104_v10 = vadd.f32 %v10766_v39, %v1904_v44  ;;  %v10784_v44 = vld [vmem:[#allocation5 + $0x68] sm:$0xff]  ;;  %v9320_v57 = vpack.c.bf16 %v10780_v36, %v10778_v14  ;;  %v3461_v36 = vld [vmem:[#allocation5 + $0xc0] sm:$0xff] }
 0x288   :  { %v3458_v14 = vld [vmem:[#allocation5 + $0xa8] sm:$0xff] }
 0x289   :  { %v2111_v56 = vmax.f32 %v2103_v41, 0.0  ;;  %v2112_v58 = vmax.f32 %v2104_v10, 0.0 }
 0x28b   :  { %v2144_v38 = vsel %vm2115_vm6, %v2111_v56, 0.0 }
 0x28c   :  { %v1975_v9 = vpop.f32.mrb[18].mxu0  ;;  %v2047_v30 = vpop.f32.mrb[10].mxu1  ;;  %v2145_v34 = vrot.slane %v2144_v38, 4 }
 0x28d   :  { %v10718_v45 = vadd.f32 %v1975_v9, %v1397_v51  ;;  %v10720_v26 = vadd.f32 %v2047_v30, %v1471_v50  ;;  %v8505_v62 = vpop.f32.mrb[19].mxu0  ;;  %v8516_v17 = vpop.f32.mrb[11].mxu1  ;;  %v2117_v51 = vrot.slane %v2116_v60, 4  ;;  %v2124_v50 = vrot.slane %v2123_v0, 4  ;;  %v10782_v30 = vld [vmem:[#allocation5 + $0x60] sm:$0xff] }
 0x28e   :  { %v2133_v62 = vrot.slane %v2132_v61, 2  ;;  %v2140_v17 = vrot.slane %v2139_v35, 2 }
 0x28f   :  { %v2118_v1 = vadd.f32 %v2117_v51, %v2116_v60  ;;  %v2125_v3 = vadd.f32 %v2124_v50, %v2123_v0  ;;  %v2151_v60 = vsel %vm2115_vm6, %v2112_v58, 0.0  ;;  %v10800_v0 = vld [vmem:[#allocation5 + $0x78] sm:$0xff]  ;;  %v10809_v51 = vld [vmem:[%s11740_s14 + $0x6] ss:$0 sm:$0xff]  ;;  %v10814_v50 = vld [vmem:[%s11740_s14 + $0x7] ss:$0 sm:$0xff] }
 0x290   :  { %v2134_v4 = vadd.f32 %v2133_v62, %v2132_v61  ;;  %v2141_v20 = vadd.f32 %v2140_v17, %v2139_v35  ;;  %v2152_v18 = vrot.slane %v2151_v60, 4  ;;  %v2105_v41 = vadd.f32 %v10809_v51, %v10718_v45 }
 0x291   :  { %v2119_v43 = vrot.slane %v2118_v1, 2  ;;  %v2126_v2 = vrot.slane %v2125_v3, 2  ;;  %v2106_v10 = vadd.f32 %v10814_v50, %v10720_v26 }
 0x292   :  { %v2135_v62 = vrot.slane %v2134_v4, 1  ;;  %v2142_v17 = vrot.slane %v2141_v20, 1  ;;  %v2153_v26 = vadd.f32 %v2152_v18, %v2151_v60 }
 0x293   :  { %v2120_v15 = vadd.f32 %v2119_v43, %v2118_v1  ;;  %v2127_v13 = vadd.f32 %v2126_v2, %v2125_v3 }
 0x294   :  { %v2251_v16 = vpop.f32.mrb[20].mxu0  ;;  %v2325_v5 = vpop.f32.mrb[12].mxu1 }
 0x295   :  { %v8527_v42 = vpop.f32.mrb[21].mxu0  ;;  %v8538_v24 = vpop.f32.mrb[13].mxu1  ;;  %v2121_v27 = vrot.slane %v2120_v15, 1  ;;  %v2128_v53 = vrot.slane %v2127_v13, 1 }
 0x297   :  { %v2122_v61 = vadd.f32 %v2121_v27, %v2120_v15  ;;  %v2129_v35 = vadd.f32 %v2128_v53, %v2127_v13 }
 0x29c   :  { %v10732_v40 = vpop.f32.mrb[22].mxu0  ;;  %v10734_v29 = vpop.f32.mrb[14].mxu1 }
 0x29d   :  { %v8549_v54 = vpop.f32.mrb[23].mxu0  ;;  %v8560_v47 = vpop.f32.mrb[15].mxu1 }
 0x29e   :  { %v10786_v54 = vld [vmem:[#allocation5 + $0x80] sm:$0xff]  ;;  %v10788_v47 = vld [vmem:[#allocation5 + $0x88] sm:$0xff] }
 0x2a4   :  { %v10750_v12 = vpop.f32.mrb[24].mxu0  ;;  %v10752_v28 = vpop.f32.mrb[16].mxu1 }
 0x2a5   :  { %v8571_v52 = vpop.f32.mrb[25].mxu0  ;;  %v8582_v55 = vpop.f32.mrb[17].mxu1 }
 0x2a6   :  { %v10802_v52 = vld [vmem:[#allocation5 + $0x90] sm:$0xff]  ;;  %v10804_v55 = vld [vmem:[#allocation5 + $0x98] sm:$0xff] }
 0x2ac   :  { %v10768_v48 = vpop.f32.mrb[26].mxu0  ;;  %v10770_v31 = vpop.f32.mrb[18].mxu1 }
 0x2ad   :  { %v8593_v23 = vpop.f32.mrb[27].mxu0  ;;  %v8604_v49 = vpop.f32.mrb[19].mxu1 }
 0x2ae   :  { %v2174_v49 = vmul.f32 0.16666667, %v2129_v35  ;;  %v2173_v23 = vmul.f32 0.16666667, %v2122_v61 }
 0x2b4   :  { %v2841_v9 = vpop.f32.mrb[28].mxu0  ;;  %v2913_v22 = vpop.f32.mrb[20].mxu1 }
 0x2b5   :  { %v2842_v42 = vadd.f32 %v2841_v9, %v2251_v16  ;;  %v2914_v24 = vadd.f32 %v2913_v22, %v2325_v5  ;;  %v8615_v6 = vpop.f32.mrb[29].mxu0  ;;  %v8626_v32 = vpop.f32.mrb[21].mxu1 }
 0x2b6   :  { %v2146_v32 = vadd.f32 %v2145_v34, %v2144_v38 }
 0x2b7   :  { %v3349_v16 = vadd.f32 %v10725_v21, %v2842_v42  ;;  %v3350_v5 = vadd.f32 %v10730_v7, %v2914_v24  ;;  %v9323_v21 = vpack.c.bf16 %v10784_v44, %v10782_v30  ;;  %v2136_v7 = vadd.f32 %v2135_v62, %v2134_v4  ;;  %v3460_v30 = vld [vmem:[#allocation5 + $0xb8] sm:$0xff] }
 0x2b9   :  { %v3357_v1 = vmax.f32 %v3349_v16, 0.0  ;;  %v3358_v3 = vmax.f32 %v3350_v5, 0.0  ;;  %v10840_v62 = vmul.f32 0.16666667, %v2136_v7 }
 0x2bb   :  { %v3365_v43 = vsel %vm2115_vm6, %v3357_v1, 0.0  ;;  %v3372_v2 = vsel %vm2115_vm6, %v3358_v3, 0.0  ;;  %v2113_v1 = vmax.f32 %v2105_v41, 0.0  ;;  %v2114_v3 = vmax.f32 %v2106_v10, 0.0 }
 0x2bc   :  { %v3366_v56 = vrot.slane %v3365_v43, 4  ;;  %v3373_v58 = vrot.slane %v3372_v2, 4  ;;  %v2985_v9 = vpop.f32.mrb[30].mxu0  ;;  %v3057_v22 = vpop.f32.mrb[22].mxu1 }
 0x2bd   :  { %v2986_v42 = vadd.f32 %v2985_v9, %v10732_v40  ;;  %v3058_v24 = vadd.f32 %v3057_v22, %v10734_v29  ;;  %v8637_v45 = vpop.f32.mrb[31].mxu0  ;;  %v8648_v6 = vpop.f32.mrb[23].mxu1  ;;  %v2143_v40 = vadd.f32 %v2142_v17, %v2141_v20  ;;  %v2147_v22 = vrot.slane %v2146_v32, 2 }
 0x2be   :  { %v3367_v16 = vadd.f32 %v3366_v56, %v3365_v43  ;;  %v3374_v5 = vadd.f32 %v3373_v58, %v3372_v2  ;;  %v2154_v45 = vrot.slane %v2153_v26, 2  ;;  %v2158_v34 = vsel %vm2115_vm6, %v2113_v1, 0.0 }
 0x2bf   :  { %v3351_v15 = vadd.f32 %v10741_v11, %v2986_v42  ;;  %v3352_v13 = vadd.f32 %v10746_v46, %v3058_v24  ;;  %v2165_v18 = vsel %vm2115_vm6, %v2114_v3, 0.0  ;;  %v10842_v17 = vmul.f32 0.16666667, %v2143_v40 }
 0x2c0   :  { %v3368_v27 = vrot.slane %v3367_v16, 2  ;;  %v3375_v53 = vrot.slane %v3374_v5, 2  ;;  %v2166_v1 = vrot.slane %v2165_v18, 4 }
 0x2c1   :  { %v3359_v9 = vmax.f32 %v3351_v15, 0.0  ;;  %v3360_v29 = vmax.f32 %v3352_v13, 0.0 }
 0x2c2   :  { %v3369_v38 = vadd.f32 %v3368_v27, %v3367_v16  ;;  %v3376_v60 = vadd.f32 %v3375_v53, %v3374_v5  ;;  %v2159_v5 = vrot.slane %v2158_v34, 4  ;;  %v2148_v53 = vadd.f32 %v2147_v22, %v2146_v32 }
 0x2c3   :  { %v3379_v11 = vsel %vm2115_vm6, %v3359_v9, 0.0  ;;  %v3386_v46 = vsel %vm2115_vm6, %v3360_v29, 0.0  ;;  %v2155_v9 = vadd.f32 %v2154_v45, %v2153_v26 }
 0x2c4   :  { %v3370_v41 = vrot.slane %v3369_v38, 1  ;;  %v3377_v10 = vrot.slane %v3376_v60, 1  ;;  %v3380_v43 = vrot.slane %v3379_v11, 4  ;;  %v3387_v2 = vrot.slane %v3386_v46, 4  ;;  %v3129_v4 = vpop.f32.mrb[32].mxu0  ;;  %v3201_v20 = vpop.f32.mrb[24].mxu1 }
 0x2c5   :  { %v3130_v61 = vadd.f32 %v3129_v4, %v10750_v12  ;;  %v3202_v35 = vadd.f32 %v3201_v20, %v10752_v28  ;;  %v8659_v56 = vpop.f32.mrb[33].mxu0  ;;  %v8670_v58 = vpop.f32.mrb[25].mxu1 }
 0x2c6   :  { %v3371_v42 = vadd.f32 %v3370_v41, %v3369_v38  ;;  %v3378_v24 = vadd.f32 %v3377_v10, %v3376_v60  ;;  %v3381_v6 = vadd.f32 %v3380_v43, %v3379_v11  ;;  %v3388_v16 = vadd.f32 %v3387_v2, %v3386_v46 }
 0x2c7   :  { %v3353_v3 = vadd.f32 %v10761_v33, %v3130_v61  ;;  %v3354_v15 = vadd.f32 %v10766_v39, %v3202_v35  ;;  %v2160_v11 = vadd.f32 %v2159_v5, %v2158_v34  ;;  %v2167_v33 = vadd.f32 %v2166_v1, %v2165_v18 }
 0x2c8   :  { %v3382_v13 = vrot.slane %v3381_v6, 2  ;;  %v3389_v12 = vrot.slane %v3388_v16, 2  ;;  %v3422_v27 = vmul.f32 0.16666667, %v3378_v24  ;;  %v3421_v28 = vmul.f32 0.16666667, %v3371_v42 }
 0x2c9   :  { %v3361_v7 = vmax.f32 %v3353_v3, 0.0  ;;  %v3362_v29 = vmax.f32 %v3354_v15, 0.0  ;;  %v2161_v58 = vrot.slane %v2160_v11, 2  ;;  %v2168_v25 = vrot.slane %v2167_v33, 2  ;;  %v3457_v3 = vld [vmem:[#allocation5 + $0xa0] sm:$0xff] }
 0x2ca   :  { %v3383_v40 = vadd.f32 %v3382_v13, %v3381_v6  ;;  %v3390_v4 = vadd.f32 %v3389_v12, %v3388_v16  ;;  %v10847_v38 = vsel %vm848_vm3, %v2174_v49, %v3422_v27  ;;  %v10850_v60 = vsel %vm848_vm3, %v2173_v23, %v3421_v28 }
 0x2cb   :  { %v3393_v39 = vsel %vm2115_vm6, %v3361_v7, 0.0  ;;  %v3400_v46 = vsel %vm2115_vm6, %v3362_v29, 0.0  ;;  %8702 = vmatmul.mubr.msk.f32.vlgmr.msra.gmra.mrb[36].mxu0 %vm884_vm5, %v10847_v38  ;;  %v2149_v23 = vrot.slane %v2148_v53, 1  ;;  %v2156_v49 = vrot.slane %v2155_v9, 1 }
 0x2cc   :  { %v3384_v32 = vrot.slane %v3383_v40, 1  ;;  %v3391_v26 = vrot.slane %v3390_v4, 1  ;;  %v3394_v22 = vrot.slane %v3393_v39, 4  ;;  %v3401_v45 = vrot.slane %v3400_v46, 4  ;;  %v3273_v41 = vpop.f32.mrb[34].mxu0  ;;  %v3345_v10 = vpop.f32.mrb[26].mxu1  ;;  %9318 = vmatpush3.bf16.msra.mxu0 %v9317_v63  ;;  %8723 = vmatprep.mubr.msk.f32.mxu0 %vm9674_vm2, %v11728_v19 }
 0x2cd   :  { %v3274_v34 = vadd.f32 %v3273_v41, %v10768_v48  ;;  %v3346_v18 = vadd.f32 %v3345_v10, %v10770_v31  ;;  %v8681_v43 = vpop.f32.mrb[35].mxu0  ;;  %v8692_v2 = vpop.f32.mrb[27].mxu1  ;;  %9319 = vmatprep.subr.bf16.mxu0 %v11729_v37  ;;  %v2150_v6 = vadd.f32 %v2149_v23, %v2148_v53  ;;  %v2157_v16 = vadd.f32 %v2156_v49, %v2155_v9  ;;  %v3463_v49 = vld [vmem:[#allocation5 + $0xd0] sm:$0xff] }
 0x2ce   :  { %v3385_v20 = vadd.f32 %v3384_v32, %v3383_v40  ;;  %v3392_v61 = vadd.f32 %v3391_v26, %v3390_v4  ;;  %v3395_v35 = vadd.f32 %v3394_v22, %v3393_v39  ;;  %v3402_v56 = vadd.f32 %v3401_v45, %v3400_v46  ;;  %v3459_v32 = vld [vmem:[#allocation5 + $0xb0] sm:$0xff] }
 0x2cf   :  { %v3355_v59 = vadd.f32 %v10809_v51, %v3274_v34  ;;  %v3356_v63 = vadd.f32 %v10814_v50, %v3346_v18  ;;  %v2162_v12 = vadd.f32 %v2161_v58, %v2160_v11  ;;  %v2169_v27 = vadd.f32 %v2168_v25, %v2167_v33  ;;  %v3464_v34 = vld [vmem:[#allocation5 + $0xd8] sm:$0xff] }
 0x2d0   :  { %v3396_v42 = vrot.slane %v3395_v35, 2  ;;  %v3403_v24 = vrot.slane %v3402_v56, 2  ;;  %9321 = vmatpush3.bf16.msra.mxu0 %v9320_v57  ;;  %v3423_v48 = vmul.f32 0.16666667, %v3385_v20  ;;  %v3424_v31 = vmul.f32 0.16666667, %v3392_v61 }
 0x2d1   :  { %v3363_v5 = vmax.f32 %v3355_v59, 0.0  ;;  %v3364_v1 = vmax.f32 %v3356_v63, 0.0  ;;  %9328 = vmatprep.subr.bf16.mxu0 %v11729_v37  ;;  %v3462_v57 = vld [vmem:[#allocation5 + $0xc8] sm:$0xff]  ;;  %v11741_v29 = vpack.c.bf16 %v10788_v47, %v10786_v54  ;;  %v9335_v40 = vpack.c.bf16 %v3458_v14, %v3457_v3  ;;  %v7886_v3 = vld [vmem:[%s11744_s8] ss:$0 sm:$0xff] }
 0x2d2   :  { %v3397_v15 = vadd.f32 %v3396_v42, %v3395_v35  ;;  %v3404_v13 = vadd.f32 %v3403_v24, %v3402_v56  ;;  %v10872_v51 = vsel %vm848_vm3, %v10840_v62, %v3423_v48  ;;  %v10876_v50 = vsel %vm848_vm3, %v10842_v17, %v3424_v31  ;;  %v4266_v31 = vpop.permute.xlu1 %4265  ;;  %v7914_v14 = vld [vmem:[%s11745_s11] ss:$0 sm:$0xff] }
 0x2d3   :  { %v3407_v28 = vsel %vm2115_vm6, %v3363_v5, 0.0  ;;  %v3414_v53 = vsel %vm2115_vm6, %v3364_v1, 0.0  ;;  %8713 = vmatmul.mubr.msk.f32.vlgmr.msra.gmra.mrb[28].mxu1 %vm884_vm5, %v10872_v51  ;;  %8724 = vmatmul.mubr.msk.f32.vlgmr.msra.gmra.mrb[38].mxu0 %vm884_vm5, %v10876_v50  ;;  %v9341_v4 = vpack.c.bf16 %v3462_v57, %v3461_v36  ;;  %v2163_v44 = vrot.slane %v2162_v12, 1  ;;  %v7900_v36 = vld [vmem:[%s11746_s26] ss:$0 sm:$0xff] }
 0x2d4   :  { %v3398_v62 = vrot.slane %v3397_v15, 1  ;;  %v3405_v9 = vrot.slane %v3404_v13, 1  ;;  %v3408_v7 = vrot.slane %v3407_v28, 4  ;;  %v3415_v17 = vrot.slane %v3414_v53, 4  ;;  %9324 = vmatpush3.bf16.msra.mxu1 %v9323_v21  ;;  %9330 = vmatpush3.bf16.msra.mxu0 %v11741_v29 }
 0x2d5   :  { %9325 = vmatprep.subr.bf16.mxu1 %v11729_v37  ;;  %9331 = vmatprep.subr.bf16.mxu0 %v11729_v37  ;;  %v2170_v21 = vrot.slane %v2169_v27, 1  ;;  %v2177_v54 = vmul.f32 0.16666667, %v2150_v6  ;;  %v2178_v47 = vmul.f32 0.16666667, %v2157_v16  ;;  %v11742_v45 = vpack.c.bf16 %v10800_v0, %v10794_v8  ;;  %v4262_v16 = vpop.permute.xlu0 %4261 }
 0x2d6   :  { %v3399_v11 = vadd.f32 %v3398_v62, %v3397_v15  ;;  %v3406_v33 = vadd.f32 %v3405_v9, %v3404_v13  ;;  %v3409_v39 = vadd.f32 %v3408_v7, %v3407_v28  ;;  %v3416_v46 = vadd.f32 %v3415_v17, %v3414_v53  ;;  %8734 = vmatprep.mubr.msk.f32.mxu1 %vm9674_vm2, %v11728_v19  ;;  %v4258_v6 = vpop.permute.xlu1 %4257  ;;  %v7887_v9 = vld [vmem:[%s11744_s8 + $0x1] ss:$0 sm:$0xff]  ;;  %v7888_v7 = vld [vmem:[%s11744_s8 + $0x2] ss:$0 sm:$0xff] }
 0x2d7   :  { %8745 = vmatprep.mubr.msk.f32.mxu0 %vm9674_vm2, %v11728_v19  ;;  %v11743_v41 = vpack.c.bf16 %v10804_v55, %v10802_v52  ;;  %v2164_v0 = vadd.f32 %v2163_v44, %v2162_v12  ;;  %v9338_v52 = vpack.c.bf16 %v3460_v30, %v3459_v32  ;;  %v2171_v55 = vadd.f32 %v2170_v21, %v2169_v27  ;;  %v10977_v32 = vld [vmem:[#allocation8 + $0x18] sm:$0xff]  ;;  %v7902_v21 = vld [vmem:[%s11746_s26 + $0x2] ss:$0 sm:$0xff] }
 0x2d8   :  { %v3410_v26 = vrot.slane %v3409_v39, 2  ;;  %v3417_v22 = vrot.slane %v3416_v46, 2  ;;  %9327 = vmatpush3.bf16.msra.mxu1 %v11742_v45  ;;  %v3425_v10 = vmul.f32 0.16666667, %v3399_v11  ;;  %v3426_v23 = vmul.f32 0.16666667, %v3406_v33 }
 0x2d9   :  { %9333 = vmatpush3.bf16.msra.mxu0 %v11743_v41  ;;  %9334 = vmatprep.subr.bf16.mxu1 %v11729_v37  ;;  %v9344_v35 = vpack.c.bf16 %v3464_v34, %v3463_v49  ;;  %v2179_v25 = vmul.f32 0.16666667, %v2164_v0  ;;  %v2180_v63 = vmul.f32 0.16666667, %v2171_v55  ;;  %v10936_v1 = vpop.permute.xlu0 %4269  ;;  %v10968_v11 = vld [vmem:[#allocation8 + $0x8] sm:$0xff] }
 0x2da   :  { %9340 = vmatprep.subr.bf16.mxu0 %v11729_v37  ;;  %v3411_v18 = vadd.f32 %v3410_v26, %v3409_v39  ;;  %v3418_v43 = vadd.f32 %v3417_v22, %v3416_v46  ;;  %v10905_v2 = vsel %vm848_vm3, %v2177_v54, %v3425_v10  ;;  %v10908_v8 = vsel %vm848_vm3, %v2178_v47, %v3426_v23  ;;  %v4129_v5 = vpop.permute.xlu1 %4128  ;;  %v7915_v39 = vld [vmem:[%s11745_s11 + $0x1] ss:$0 sm:$0xff]  ;;  %v10975_v46 = vld [vmem:[#allocation8 + $0x10] sm:$0xff]  ;;  %v7916_v22 = vld [vmem:[%s11745_s11 + $0x2] ss:$0 sm:$0xff] }
 0x2db   :  { %8735 = vmatmul.mubr.msk.f32.vlgmr.msra.gmra.mrb[30].mxu1 %vm884_vm5, %v10905_v2 }
 0x2dc   :  { %8746 = vmatmul.mubr.msk.f32.vlgmr.msra.gmra.mrb[40].mxu0 %vm884_vm5, %v10908_v8  ;;  %v3412_v20 = vrot.slane %v3411_v18, 1  ;;  %v3419_v61 = vrot.slane %v3418_v43, 1  ;;  %9336 = vmatpush3.bf16.msra.mxu1 %v9335_v40  ;;  %v7901_v40 = vld [vmem:[%s11746_s26 + $0x1] ss:$0 sm:$0xff] }
 0x2dd   :  { %9342 = vmatpush3.bf16.msra.mxu0 %v9341_v4  ;;  %9337 = vmatprep.subr.bf16.mxu1 %v11729_v37  ;;  %v10949_v12 = vpop.permute.xlu0 %4273  ;;  %v10966_v4 = vld [vmem:[#allocation8] sm:$0xff] }
 0x2de   :  { %9343 = vmatprep.subr.bf16.mxu0 %v11729_v37  ;;  %v3413_v56 = vadd.f32 %v3412_v20, %v3411_v18  ;;  %v3420_v58 = vadd.f32 %v3419_v61, %v3418_v43  ;;  %8756 = vmatprep.mubr.msk.f32.mxu1 %vm9674_vm2, %v11728_v19  ;;  %v4133_v15 = vpop.permute.xlu1 %4132  ;;  %v9347_v10 = vpack.c.bf16 %v10968_v11, %v10966_v4 }
 0x2df   :  { %8767 = vmatprep.mubr.msk.f32.mxu0 %vm9674_vm2, %v11728_v19 }
 0x2e0   :  { %9339 = vmatpush3.bf16.msra.mxu1 %v9338_v52  ;;  %v3427_v59 = vmul.f32 0.16666667, %v3413_v56  ;;  %v3428_v42 = vmul.f32 0.16666667, %v3420_v58 }
 0x2e1   :  { %9345 = vmatpush3.bf16.msra.mxu0 %v9344_v35  ;;  %8770 = vmatprep.subr.mxu1 %v11728_v19  ;;  %v10970_v33 = vpop.permute.xlu0 %4277 }
 0x2e2   :  { %8780 = vmatprep.subr.mxu0 %v11728_v19  ;;  %v10923_v24 = vsel %vm848_vm3, %v2179_v25, %v3427_v59  ;;  %v10926_v48 = vsel %vm848_vm3, %v2180_v63, %v3428_v42  ;;  %v4125_v62 = vpop.permute.xlu1 %4124 }
 0x2e3   :  { %8757 = vmatmul.mubr.msk.f32.vlgmr.msra.gmra.mrb[32].mxu1 %vm884_vm5, %v10923_v24 }
 0x2e4   :  { %8768 = vmatmul.mubr.msk.f32.vlgmr.msra.gmra.mrb[42].mxu0 %vm884_vm5, %v10926_v48  ;;  %8772 = vmatprep.mubr.msk.f32.mxu1 %vm9674_vm2, %v11728_v19 }
 0x2e5   :  { %8782 = vmatprep.mubr.msk.f32.mxu0 %vm9674_vm2, %v11728_v19 }
 0x39e   :  { %v3583_v13 = vpop.f32.mrb[36].mxu0 }
 0x39f   :  { %v10947_v57 = vadd.f32 %v7886_v3, %v3583_v13  ;;  %v8703_v27 = vpop.f32.mrb[37].mxu0  ;;  %v7889_v3 = vld [vmem:[%s11744_s8 + $0x3] ss:$0 sm:$0xff] }
 0x3a0   :  { %v7903_v13 = vld [vmem:[%s11746_s26 + $0x3] ss:$0 sm:$0xff] }
 0x3a1   :  { %v4207_v28 = vmul.f32 %v7914_v14, %v10947_v57  ;;  %v4074_v53 = vmul.f32 %v7900_v36, %v10947_v57  ;;  %v4826_v54 = vrot.slane %v10947_v57, 1  ;;  %v4137_v36 = vpop.permute.xlu0 %4136  ;;  %v7917_v27 = vld [vmem:[%s11745_s11 + $0x3] ss:$0 sm:$0xff] }
 0x3a3   :  { %v10959_v17 = vadd.f32 %v4258_v6, %v4207_v28  ;;  %v10961_v29 = vadd.f32 %v4125_v62, %v4074_v53  ;;  %v7904_v28 = vld [vmem:[%s11746_s26 + $0x4] ss:$0 sm:$0xff] }
 0x3a5   :  { %v4682_v23 = vrot.slane %v10959_v17, 1  ;;  %v10995_v49 = vmul.f32 %v10961_v29, %v10961_v29  ;;  %v4670_v34 = vrot.slane %v10961_v29, 1  ;;  %v4336_v59 = vmul.f32 %v10959_v17, %v10959_v17 }
 0x3a6   :  { %v3656_v30 = vpop.f32.mrb[28].mxu1  ;;  %v3729_v44 = vpop.f32.mrb[38].mxu0 }
 0x3a7   :  { %v10983_v47 = vadd.f32 %v7887_v9, %v3656_v30  ;;  %v10985_v26 = vadd.f32 %v7888_v7, %v3729_v44  ;;  %v8714_v45 = vpop.f32.mrb[29].mxu1  ;;  %v8725_v41 = vpop.f32.mrb[39].mxu0 }
 0x3a9   :  { %v4075_v43 = vmul.f32 %v7901_v40, %v10983_v47  ;;  %v4208_v0 = vmul.f32 %v7915_v39, %v10983_v47  ;;  %v4545_v52 = vrot.slane %v10983_v47, 7  ;;  %v4827_v55 = vsel %vm4307_vm7, %v10983_v47, %v4826_v54 }
 0x3aa   :  { %v4076_v20 = vmul.f32 %v7902_v21, %v10985_v26  ;;  %v4209_v61 = vmul.f32 %v7916_v22, %v10985_v26  ;;  %v4547_v35 = vrot.slane %v10985_v26, 6  ;;  %v4828_v56 = vrot.slane %v10985_v26, 7  ;;  %v7918_v22 = vld [vmem:[%s11745_s11 + $0x4] ss:$0 sm:$0xff] }
 0x3ab   :  { %v11009_v58 = vadd.f32 %v4129_v5, %v4075_v43  ;;  %v4285_v25 = vadd.f32 %v4262_v16, %v4208_v0  ;;  %v4546_v63 = vsel %vm4307_vm7, %v4545_v52, %v10947_v57  ;;  %v7890_v16 = vld [vmem:[%s11744_s8 + $0x4] ss:$0 sm:$0xff] }
 0x3ac   :  { %v11015_v42 = vadd.f32 %v4133_v15, %v4076_v20  ;;  %v4286_v6 = vadd.f32 %v4266_v31, %v4209_v61  ;;  %v11027_v5 = vsel %vm4310_vm8, %v4547_v35, %v4546_v63  ;;  %v11030_v14 = vsel %vm4310_vm8, %v4828_v56, %v4827_v55 }
 0x3ad   :  { %v4380_v31 = vrot.slane %v11009_v58, 7  ;;  %v4399_v15 = vrot.slane %v4285_v25, 7  ;;  %v4683_v53 = vsel %vm4307_vm7, %v4285_v25, %v4682_v23  ;;  %v4337_v62 = vmul.f32 %v4285_v25, %v4285_v25 }
 0x3ae   :  { %v3802_v9 = vpop.f32.mrb[30].mxu1  ;;  %v4401_v40 = vrot.slane %v4286_v6, 6  ;;  %v4684_v39 = vrot.slane %v4286_v6, 7  ;;  %v4338_v30 = vmul.f32 %v4286_v6, %v4286_v6  ;;  %v4382_v44 = vrot.slane %v11015_v42, 6 }
 0x3af   :  { %v3875_v7 = vpop.f32.mrb[40].mxu0  ;;  %v11041_v21 = vadd.f32 %v7889_v3, %v3802_v9  ;;  %v8736_v45 = vpop.f32.mrb[31].mxu1  ;;  %v4400_v23 = vsel %vm4307_vm7, %v4399_v15, %v10959_v17  ;;  %v4350_v43 = vrot.slane %v4337_v62, 7  ;;  %v4381_v20 = vsel %vm4307_vm7, %v4380_v31, %v10961_v29 }
 0x3b0   :  { %v11043_v54 = vadd.f32 %v7890_v16, %v3875_v7  ;;  %v8747_v41 = vpop.f32.mrb[41].mxu0  ;;  %v4402_v0 = vsel %vm4310_vm8, %v4401_v40, %v4400_v23  ;;  %v4685_v52 = vsel %vm4310_vm8, %v4684_v39, %v4683_v53  ;;  %v4352_v55 = vrot.slane %v4338_v30, 6  ;;  %v4141_v16 = vpop.permute.xlu0 %4140  ;;  %v7892_v7 = vld [vmem:[%s11744_s8 + $0x6] ss:$0 sm:$0xff] }
 0x3b1   :  { %v4077_v61 = vmul.f32 %v7903_v13, %v11041_v21  ;;  %v4210_v35 = vmul.f32 %v7917_v27, %v11041_v21  ;;  %v4549_v56 = vrot.slane %v11041_v21, 5  ;;  %v7891_v13 = vld [vmem:[%s11744_s8 + $0x5] ss:$0 sm:$0xff]  ;;  %v4653_v27 = vsel %vm4310_vm8, %v4350_v43, %v4336_v59  ;;  %v7920_v39 = vld [vmem:[%s11745_s11 + $0x6] ss:$0 sm:$0xff] }
 0x3b2   :  { %v4078_v17 = vmul.f32 %v7904_v28, %v11043_v54  ;;  %v4211_v63 = vmul.f32 %v7918_v22, %v11043_v54  ;;  %v4551_v6 = vrot.slane %v11043_v54, 4  ;;  %v4351_v53 = vsel %vm4307_vm7, %v4350_v43, %v4336_v59  ;;  %v4282_v28 = vpop.permute.xlu1 %4281 }
 0x3b3   :  { %v11062_v15 = vadd.f32 %v4137_v36, %v4077_v61  ;;  %v4287_v31 = vadd.f32 %v10936_v1, %v4210_v35  ;;  %v7905_v36 = vld [vmem:[%s11746_s26 + $0x5] ss:$0 sm:$0xff]  ;;  %v4654_v40 = vsel %vm4313_vm9, %v4352_v55, %v4653_v27  ;;  %v4353_v59 = vsel %vm4310_vm8, %v4352_v55, %v4351_v53 }
 0x3b4   :  { %v11070_v62 = vadd.f32 %v4141_v16, %v4078_v17  ;;  %v4288_v9 = vadd.f32 %v10949_v12, %v4211_v63  ;;  %v7919_v1 = vld [vmem:[%s11745_s11 + $0x5] ss:$0 sm:$0xff]  ;;  %v7906_v12 = vld [vmem:[%s11746_s26 + $0x6] ss:$0 sm:$0xff]  ;;  %v4383_v41 = vsel %vm4310_vm8, %v4382_v44, %v4381_v20 }
 0x3b5   :  { %v4403_v30 = vrot.slane %v4287_v31, 5  ;;  %v4686_v22 = vrot.slane %v4287_v31, 6  ;;  %v4339_v45 = vmul.f32 %v4287_v31, %v4287_v31  ;;  %v4384_v55 = vrot.slane %v11062_v15, 5 }
 0x3b6   :  { %v3948_v23 = vpop.f32.mrb[32].mxu1  ;;  %v4405_v61 = vrot.slane %v4288_v9, 4  ;;  %v4688_v35 = vrot.slane %v4288_v9, 5  ;;  %v4340_v17 = vmul.f32 %v4288_v9, %v4288_v9  ;;  %v4674_v29 = vrot.slane %v11062_v15, 6 }
 0x3b7   :  { %v4021_v43 = vpop.f32.mrb[42].mxu0  ;;  %v11092_v63 = vadd.f32 %v7891_v13, %v3948_v23  ;;  %v8758_v27 = vpop.f32.mrb[33].mxu1  ;;  %v4404_v18 = vsel %vm4313_vm9, %v4403_v30, %v4402_v0  ;;  %v4687_v31 = vsel %vm4313_vm9, %v4686_v22, %v4685_v52  ;;  %v4354_v3 = vrot.slane %v4339_v45, 5 }
 0x3b8   :  { %v11094_v16 = vadd.f32 %v7892_v7, %v4021_v43  ;;  %v8769_v53 = vpop.f32.mrb[43].mxu0  ;;  %v4406_v44 = vsel %vm4316_vm10, %v4405_v61, %v4404_v18  ;;  %v4689_v20 = vsel %vm4316_vm10, %v4688_v35, %v4687_v31  ;;  %v4356_v25 = vrot.slane %v4340_v17, 4  ;;  %v4145_v0 = vpop.permute.xlu1 %4144 }
 0x3b9   :  { %v4079_v9 = vmul.f32 %v7905_v36, %v11092_v63  ;;  %v4212_v13 = vmul.f32 %v7919_v1, %v11092_v63  ;;  %v4655_v52 = vsel %vm4316_vm10, %v4354_v3, %v4654_v40  ;;  %v4355_v18 = vsel %vm4313_vm9, %v4354_v3, %v4353_v59  ;;  %v4149_v45 = vpop.permute.xlu0 %4148 }
 0x3ba   :  { %v4080_v7 = vmul.f32 %v7906_v12, %v11094_v16  ;;  %v4213_v23 = vmul.f32 %v7920_v39, %v11094_v16  ;;  %v4385_v30 = vsel %vm4313_vm9, %v4384_v55, %v4383_v41  ;;  %v4386_v22 = vrot.slane %v11070_v62, 4 }
 0x3bb   :  { %v4156_v43 = vadd.f32 %v4145_v0, %v4079_v9  ;;  %v4289_v36 = vadd.f32 %v10970_v33, %v4212_v13  ;;  %v4656_v12 = vsel %vm4319_vm11, %v4356_v25, %v4655_v52  ;;  %v4357_v39 = vsel %vm4316_vm10, %v4356_v25, %v4355_v18 }
 0x3bc   :  { %v4290_v1 = vadd.f32 %v4282_v28, %v4213_v23  ;;  %v4157_v61 = vadd.f32 %v4149_v45, %v4080_v7  ;;  %v4387_v35 = vsel %vm4316_vm10, %v4386_v22, %v4385_v30  ;;  %v4671_v3 = vsel %vm4307_vm7, %v11009_v58, %v4670_v34 }
 0x3bd   :  { %v4407_v40 = vrot.slane %v4289_v36, 3  ;;  %v4690_v41 = vrot.slane %v4289_v36, 4  ;;  %v4341_v55 = vmul.f32 %v4289_v36, %v4289_v36  ;;  %v4388_v33 = vrot.slane %v4156_v43, 3 }
 0x3be   :  { %v4409_v59 = vrot.slane %v4290_v1, 2  ;;  %v4692_v17 = vrot.slane %v4290_v1, 3  ;;  %v4342_v27 = vmul.f32 %v4290_v1, %v4290_v1  ;;  %v4390_v28 = vrot.slane %v4157_v61, 2 }
 0x3bf   :  { %v4408_v53 = vsel %vm4319_vm11, %v4407_v40, %v4406_v44  ;;  %v4691_v25 = vsel %vm4319_vm11, %v4690_v41, %v4689_v20  ;;  %v4672_v31 = vrot.slane %v11015_v42, 7  ;;  %v4358_v13 = vrot.slane %v4341_v55, 3 }
 0x3c0   :  { %v4410_v9 = vsel %vm4322_vm12, %v4409_v59, %v4408_v53  ;;  %v4693_v34 = vsel %vm4322_vm12, %v4692_v17, %v4691_v25  ;;  %v4360_v7 = vrot.slane %v4342_v27, 2  ;;  %v4389_v23 = vsel %vm4319_vm11, %v4388_v33, %v4387_v35 }
 0x3c1   :  { %8771 = vmatpush3.xpose.msk.msra.mxu1 %vm884_vm5, %v4410_v9  ;;  %8781 = vmatpush3.xpose.msk.msra.mxu0 %vm884_vm5, %v4693_v34  ;;  %v4673_v44 = vsel %vm4310_vm8, %v4672_v31, %v4671_v3  ;;  %v4676_v20 = vrot.slane %v11070_v62, 5  ;;  %v4678_v0 = vrot.slane %v4156_v43, 4  ;;  %v4657_v52 = vsel %vm4322_vm12, %v4358_v13, %v4656_v12  ;;  %v5097_v9 = vld [vmem:[#allocation8 + $0x48] sm:$0xff] }
 0x3c2   :  { %8775 = vmatprep.subr.mxu1 %v11728_v19  ;;  %9346 = vmatprep.subr.bf16.mxu0 %v11729_v37  ;;  %v4359_v18 = vsel %vm4319_vm11, %v4358_v13, %v4357_v39  ;;  %v4391_v30 = vsel %vm4322_vm12, %v4390_v28, %v4389_v23  ;;  %v4680_v22 = vrot.slane %v4157_v61, 3  ;;  %v4658_v45 = vsel %vm4639_vm13, %v4360_v7, %v4657_v52 }
 0x3c3   :  { %v4361_v36 = vsel %vm4322_vm12, %v4360_v7, %v4359_v18  ;;  %v4675_v1 = vsel %vm4313_vm9, %v4674_v29, %v4673_v44  ;;  %v4550_v35 = vsel %vm4313_vm9, %v4549_v56, %v11027_v5  ;;  %v4660_v3 = vsel %vm4642_vm14, %v4658_v45, 0.0 }
 0x3c4   :  { %v4363_v12 = vsel %vm4325_vm15, %v4361_v36, 0.0  ;;  %8773 = vmatmul.mubr.msk.f32.vlgmr.msra.gmra.mrb[34].mxu1 %vm884_vm5, %v4391_v30  ;;  %v4677_v39 = vsel %vm4316_vm10, %v4676_v20, %v4675_v1  ;;  %v4552_v40 = vsel %vm4316_vm10, %v4551_v6, %v4550_v35  ;;  %4661 = vadd.xlane.f32.xlu0 %v4660_v3  ;;  %v4553_v41 = vrot.slane %v11092_v63, 3 }
 0x3c5   :  { %4364 = vadd.xlane.f32.xlu1 %v4363_v12  ;;  %v4679_v59 = vsel %vm4319_vm11, %v4678_v0, %v4677_v39  ;;  %v4555_v5 = vrot.slane %v11094_v16, 2  ;;  %v4293_v56 = vmul.f32 %v11009_v58, %v11009_v58  ;;  %v4294_v55 = vmul.f32 %v11015_v42, %v11015_v42  ;;  %8777 = vmatprep.mubr.msk.f32.mxu1 %vm9674_vm2, %v11728_v19  ;;  %v5098_v12 = vld [vmem:[#allocation8 + $0x50] sm:$0xff]  ;;  %v5099_v39 = vld [vmem:[#allocation8 + $0x58] sm:$0xff] }
 0x3c6   :  { %v4681_v17 = vsel %vm4322_vm12, %v4680_v22, %v4679_v59  ;;  %v4295_v27 = vmul.f32 %v11062_v15, %v11062_v15  ;;  %v4296_v6 = vmul.f32 %v11070_v62, %v11070_v62  ;;  %v4554_v33 = vsel %vm4319_vm11, %v4553_v41, %v4552_v40  ;;  %v5104_v59 = vld [vmem:[#allocation8 + $0x80] sm:$0xff]  ;;  %v5105_v41 = vld [vmem:[#allocation8 + $0x88] sm:$0xff] }
 0x3c7   :  { %8783 = vmatmul.mubr.msk.f32.vlgmr.msra.gmra.mrb[44].mxu0 %vm884_vm5, %v4681_v17  ;;  %v4297_v28 = vmul.f32 %v4156_v43, %v4156_v43  ;;  %v4298_v58 = vmul.f32 %v4157_v61, %v4157_v61  ;;  %v4306_v53 = vrot.slane %v4293_v56, 7  ;;  %v4556_v25 = vsel %vm4322_vm12, %v4555_v5, %v4554_v33  ;;  %v5106_v56 = vld [vmem:[#allocation8 + $0x90] sm:$0xff]  ;;  %v5107_v17 = vld [vmem:[#allocation8 + $0x98] sm:$0xff] }
 0x3c8   :  { %9348 = vmatpush3.bf16.msra.mxu0 %v9347_v10  ;;  %v4309_v42 = vrot.slane %v4294_v55, 6  ;;  %v4312_v15 = vrot.slane %v4295_v27, 5  ;;  %v4315_v31 = vrot.slane %v4296_v6, 4  ;;  %8798 = vmatprep.mubr.msk.f32.mxu0 %vm9674_vm2, %v11728_v19  ;;  %v5096_v10 = vld [vmem:[#allocation8 + $0x40] sm:$0xff]  ;;  %v11747_v34 = vrot.slane %v11041_v21, 6  ;;  %v5113_v27 = vld [vmem:[#allocation8 + $0xc8] sm:$0xff] }
 0x3c9   :  { %8776 = vmatpush3.msk.msra.mxu1 %vm4561_vm0, %v4556_v25  ;;  %9349 = vmatprep.subr.bf16.mxu0 %v11729_v37  ;;  %v4318_v62 = vrot.slane %v4297_v28, 3  ;;  %v4321_v43 = vrot.slane %v4298_v58, 2  ;;  %v4634_v61 = vsel %vm4310_vm8, %v4306_v53, %v10995_v49  ;;  %v4308_v29 = vsel %vm4307_vm7, %v4306_v53, %v10995_v49  ;;  %v5112_v55 = vld [vmem:[#allocation8 + $0xc0] sm:$0xff]  ;;  %v5114_v33 = vld [vmem:[#allocation8 + $0xd0] sm:$0xff]  ;;  %v5115_v28 = vld [vmem:[#allocation8 + $0xd8] sm:$0xff] }
 0x3ca   :  { %v4635_v4 = vsel %vm4313_vm9, %v4309_v42, %v4634_v61  ;;  %v4311_v11 = vsel %vm4310_vm8, %v4309_v42, %v4308_v29  ;;  %8785 = vmatprep.subr.mxu1 %v11728_v19  ;;  %v4831_v13 = vsel %vm4313_vm9, %v11747_v34, %v11030_v14  ;;  %v4834_v7 = vrot.slane %v11092_v63, 4  ;;  %v5064_v58 = vld [vmem:[#allocation7 + $0x20] sm:$0xff]  ;;  %v5065_v53 = vld [vmem:[#allocation7 + $0x28] sm:$0xff]  ;;  %v5066_v42 = vld [vmem:[#allocation7 + $0x30] sm:$0xff] }
 0x3cb   :  { %v4636_v23 = vsel %vm4316_vm10, %v4312_v15, %v4635_v4  ;;  %v4314_v44 = vsel %vm4313_vm9, %v4312_v15, %v4311_v11  ;;  %v11748_v49 = vrot.slane %v11043_v54, 5  ;;  %v4836_v0 = vrot.slane %v11094_v16, 3  ;;  %v5067_v15 = vld [vmem:[#allocation7 + $0x38] sm:$0xff]  ;;  %v5074_v61 = vld [vmem:[#allocation7 + $0x70] sm:$0xff]  ;;  %v5080_v4 = vld [vmem:[#allocation7 + $0xa0] sm:$0xff] }
 0x3cc   :  { %v4637_v52 = vsel %vm4319_vm11, %v4315_v31, %v4636_v23  ;;  %v4317_v18 = vsel %vm4316_vm10, %v4315_v31, %v4314_v44  ;;  %v11749_v30 = vpack.c.bf16 %v10977_v32, %v10975_v46  ;;  %v9359_v36 = vpack.c.bf16 %v5097_v9, %v5096_v10  ;;  %v5072_v31 = vld [vmem:[#allocation7 + $0x60] sm:$0xff]  ;;  %v5075_v29 = vld [vmem:[#allocation7 + $0x78] sm:$0xff]  ;;  %v5081_v11 = vld [vmem:[#allocation7 + $0xa8] sm:$0xff] }
 0x3cd   :  { %v4833_v20 = vsel %vm4316_vm10, %v11748_v49, %v4831_v13  ;;  %v4638_v22 = vsel %vm4322_vm12, %v4318_v62, %v4637_v52  ;;  %v4320_v45 = vsel %vm4319_vm11, %v4318_v62, %v4317_v18  ;;  %v9362_v40 = vpack.c.bf16 %v5099_v39, %v5098_v12  ;;  %v5073_v62 = vld [vmem:[#allocation7 + $0x68] sm:$0xff]  ;;  %v5082_v9 = vld [vmem:[#allocation7 + $0xb0] sm:$0xff]  ;;  %v5083_v34 = vld [vmem:[#allocation7 + $0xb8] sm:$0xff] }
 0x3ce   :  { %9351 = vmatpush3.bf16.msra.mxu0 %v11749_v30  ;;  %v4835_v14 = vsel %vm4319_vm11, %v4834_v7, %v4833_v20  ;;  %v4640_v35 = vsel %vm4639_vm13, %v4321_v43, %v4638_v22  ;;  %v4323_v3 = vsel %vm4322_vm12, %v4321_v43, %v4320_v45  ;;  %v9371_v5 = vpack.c.bf16 %v5105_v41, %v5104_v59 }
 0x3cf   :  { %9358 = vmatprep.subr.bf16.mxu0 %v11729_v37  ;;  %v11198_v1 = vsel %vm4322_vm12, %v4836_v0, %v4835_v14  ;;  %v4643_v46 = vsel %vm4642_vm14, %v4640_v35, 0.0  ;;  %v4326_v32 = vsel %vm4325_vm15, %v4323_v3, 0.0  ;;  %v9383_v6 = vpack.c.bf16 %v5113_v27, %v5112_v55 }
 0x3d0   :  { %4644 = vadd.xlane.f32.xlu1 %v4643_v46  ;;  %4327 = vadd.xlane.f32.xlu0 %v4326_v32  ;;  %v9395_v25 = vpack.c.bf16 %v5065_v53, %v5064_v58  ;;  %v9407_v43 = vpack.c.bf16 %v5073_v62, %v5072_v31  ;;  %v9419_v10 = vpack.c.bf16 %v5081_v11, %v5080_v4 }
 0x3d1   :  { %8799 = vmatmul.mubr.msk.f32.vlgmr.msra.gmra.mrb[46].mxu0 %vm884_vm5, %v10947_v57  ;;  %v9374_v57 = vpack.c.bf16 %v5107_v17, %v5106_v56 }
 0x3d2   :  { %9360 = vmatpush3.bf16.msra.mxu0 %v9359_v36  ;;  %8820 = vmatprep.mubr.msk.f32.mxu0 %vm9674_vm2, %v11728_v19 }
 0x3d3   :  { %9361 = vmatprep.subr.bf16.mxu0 %v11729_v37 }
 0x3d6   :  { %9363 = vmatpush3.bf16.msra.mxu0 %v9362_v40 }
 0x3d7   :  { %9370 = vmatprep.subr.bf16.mxu0 %v11729_v37 }
 0x3d9   :  { %8821 = vmatmul.mubr.msk.f32.vlgmr.msra.gmra.mrb[48].mxu0 %vm884_vm5, %v10985_v26  ;;  %v9386_v26 = vpack.c.bf16 %v5115_v28, %v5114_v33 }
 0x3da   :  { %9372 = vmatpush3.bf16.msra.mxu0 %v9371_v5  ;;  %8842 = vmatprep.mubr.msk.f32.mxu0 %vm9674_vm2, %v11728_v19 }
 0x3db   :  { %9373 = vmatprep.subr.bf16.mxu0 %v11729_v37 }
 0x3de   :  { %9375 = vmatpush3.bf16.msra.mxu0 %v9374_v57 }
 0x3df   :  { %9382 = vmatprep.subr.bf16.mxu0 %v11729_v37 }
 0x3e1   :  { %8843 = vmatmul.mubr.msk.f32.vlgmr.msra.gmra.mrb[50].mxu0 %vm884_vm5, %v11043_v54  ;;  %v9398_v54 = vpack.c.bf16 %v5067_v15, %v5066_v42 }
 0x3e2   :  { %9384 = vmatpush3.bf16.msra.mxu0 %v9383_v6  ;;  %8864 = vmatprep.mubr.msk.f32.mxu0 %vm9674_vm2, %v11728_v19 }
 0x3e3   :  { %9385 = vmatprep.subr.bf16.mxu0 %v11729_v37 }
 0x3e6   :  { %9387 = vmatpush3.bf16.msra.mxu0 %v9386_v26 }
 0x3e7   :  { %9394 = vmatprep.subr.bf16.mxu0 %v11729_v37 }
 0x3e9   :  { %8865 = vmatmul.mubr.msk.f32.vlgmr.msra.gmra.mrb[52].mxu0 %vm884_vm5, %v11094_v16  ;;  %v9410_v16 = vpack.c.bf16 %v5075_v29, %v5074_v61 }
 0x3ea   :  { %9396 = vmatpush3.bf16.msra.mxu0 %v9395_v25  ;;  %8886 = vmatprep.mubr.msk.f32.mxu0 %vm9674_vm2, %v11728_v19 }
 0x3eb   :  { %9397 = vmatprep.subr.bf16.mxu0 %v11729_v37 }
 0x3ee   :  { %9399 = vmatpush3.bf16.msra.mxu0 %v9398_v54  ;;  %v11750_v54 = vld [vmem:[#allocation15_spill] sm:$0xff] }
 0x3ef   :  { %9406 = vmatprep.subr.bf16.mxu0 %v11729_v37 }
 0x3f1   :  { %8887 = vmatmul.mubr.msk.f32.vlgmr.msra.gmra.mrb[54].mxu0 %vm884_vm5, %v10872_v51  ;;  %v9422_v51 = vpack.c.bf16 %v5083_v34, %v5082_v9 }
 0x3f2   :  { %9408 = vmatpush3.bf16.msra.mxu0 %v9407_v43  ;;  %8908 = vmatprep.mubr.msk.f32.mxu0 %vm9674_vm2, %v11728_v19 }
 0x3f3   :  { %9409 = vmatprep.subr.bf16.mxu0 %v11729_v37 }
 0x3f6   :  { %9411 = vmatpush3.bf16.msra.mxu0 %v9410_v16 }
 0x3f7   :  { %9418 = vmatprep.subr.bf16.mxu0 %v11729_v37 }
 0x3f9   :  { %8909 = vmatmul.mubr.msk.f32.vlgmr.msra.gmra.mrb[56].mxu0 %vm884_vm5, %v10905_v2 }
 0x3fa   :  { %9420 = vmatpush3.bf16.msra.mxu0 %v9419_v10  ;;  %8930 = vmatprep.mubr.msk.f32.mxu0 %vm9674_vm2, %v11728_v19 }
 0x3fb   :  { %9421 = vmatprep.subr.bf16.mxu0 %v11729_v37 }
 0x3fe   :  { %9423 = vmatpush3.bf16.msra.mxu0 %v9422_v51 }
 0x3ff   :  { %9430 = vmatprep.subr.bf16.mxu0 %v11729_v37 }
 0x401   :  { %8931 = vmatmul.mubr.msk.f32.vlgmr.msra.gmra.mrb[58].mxu0 %vm884_vm5, %v10923_v24 }
 0x402   :  { %8952 = vmatprep.mubr.msk.f32.mxu0 %vm9674_vm2, %v11728_v19 }
 0x451   :  { %v4662_v7 = vpop.xlane.xlu0 %4661 }
 0x452   :  { %v4365_v13 = vpop.xlane.xlu1 %4364  ;;  %vm4665_vm6 = vcmp.eq.f32.partialorder %v4662_v7, inf  ;;  %v4668_v52 = vand.u32 2147483648, %v4662_v7  ;;  %vm4667_vm13 = vcmp.eq.f32.partialorder %v4662_v7, 0.0 }
 0x453   :  { %9517 = vrsqrt.f32 %v4365_v13  ;;  %vm4368_vm1 = vcmp.eq.f32.partialorder %v4365_v13, inf  ;;  %v4371_v49 = vand.u32 2147483648, %v4365_v13  ;;  %vm4370_vm4 = vcmp.eq.f32.partialorder %v4365_v13, 0.0 }
 0x454   :  { %9519 = vrsqrt.f32 %v4662_v7 }
 0x45d   :  { %v9518_v2 = vpop.eup %9517  ;;  %v4328_v55 = vpop.xlane.xlu0 %4327 }
 0x45e   :  { %v9520_v23 = vpop.eup %9519  ;;  %v4367_v44 = vmul.f32 %v9518_v2, %v4365_v13  ;;  %v4645_v27 = vpop.xlane.xlu1 %4644  ;;  %9521 = vrsqrt.f32 %v4328_v55  ;;  %vm4331_vm14 = vcmp.eq.f32.partialorder %v4328_v55, inf  ;;  %v4334_v42 = vand.u32 2147483648, %v4328_v55 }
 0x45f   :  { %v4664_v20 = vmul.f32 %v9520_v23, %v4662_v7  ;;  %9523 = vrsqrt.f32 %v4645_v27  ;;  %vm4333_vm15 = vcmp.eq.f32.partialorder %v4328_v55, 0.0  ;;  %v4651_v29 = vand.u32 2147483648, %v4645_v27 }
 0x460   :  { %v4369_v0 = vsel %vm4368_vm1, %v4365_v13, %v4367_v44  ;;  %vm4648_vm1 = vcmp.eq.f32.partialorder %v4645_v27, inf }
 0x461   :  { %v4372_v18 = vsel %vm4370_vm4, %v4371_v49, %v4369_v0  ;;  %v4666_v30 = vsel %vm4665_vm6, %v4662_v7, %v4664_v20  ;;  %vm4650_vm4 = vcmp.eq.f32.partialorder %v4645_v27, 0.0  ;;  %v4291_v7 = vld [vmem:[%s11655_s12] sm:$0x7f]  ;;  %vm4526_vm6 = vcmask 55296  }
 0x462   :  { %4485 = vxpose.xlu0.b32.start.end [1/1] (short) (narrow) %v4372_v18, 8  ;;  %v4669_v24 = vsel %vm4667_vm13, %v4668_v52, %v4666_v30  ;;  %vm4557_vm13 = vcmask 56320  }
 0x463   :  { %v4769_v14 = vrot.slane %v4669_v24, 1 }
 0x465   :  { %4771 = vxpose.xlu1.b32.start.end [1/1] (short) (narrow) %v4769_v14, 8 }
 0x468   :  { %v9522_v28 = vpop.eup %9521 }
 0x469   :  { %v9524_v26 = vpop.eup %9523  ;;  %v4330_v58 = vmul.f32 %v9522_v28, %v4328_v55 }
 0x46a   :  { %v4647_v53 = vmul.f32 %v9524_v26, %v4645_v27 }
 0x46b   :  { %v4332_v25 = vsel %vm4331_vm14, %v4328_v55, %v4330_v58  ;;  %v5092_v55 = vld [vmem:[#allocation8 + $0x20] sm:$0xff]  ;;  %v5094_v58 = vld [vmem:[#allocation8 + $0x30] sm:$0xff]  ;;  %vm6949_vm14 = vcmask 39936  }
 0x46c   :  { %v4335_v62 = vsel %vm4333_vm15, %v4334_v42, %v4332_v25  ;;  %v4649_v43 = vsel %vm4648_vm1, %v4645_v27, %v4647_v53  ;;  %v5093_v27 = vld [vmem:[#allocation8 + $0x28] sm:$0xff]  ;;  %v5095_v53 = vld [vmem:[#allocation8 + $0x38] sm:$0xff] }
 0x46d   :  { %v4652_v10 = vsel %vm4650_vm4, %v4651_v29, %v4649_v43  ;;  %v9353_v28 = vpack.c.bf16 %v5093_v27, %v5092_v55  ;;  %v9356_v25 = vpack.c.bf16 %v5095_v53, %v5094_v58  ;;  %v5101_v42 = vld [vmem:[#allocation8 + $0x68] sm:$0xff]  ;;  %v6116_v55 = vld [vmem:[#allocation10 + $0x30] sm:$0xff]  ;;  %v6117_v27 = vld [vmem:[#allocation10 + $0x38] sm:$0xff] }
 0x46e   :  { %v5109_v29 = vld [vmem:[#allocation8 + $0xa8] sm:$0xff]  ;;  %v11751_v53 = vld [vmem:[#allocation14_spill] sm:$0xff] }
 0x497   :  { %v4481_v22 = vpop.f32.mrb[34].mxu1 }
 0x498   :  { %v8774_v45 = vpop.f32.mrb[35].mxu1 }
 0x49a   :  { %v4764_v36 = vpop.f32.mrb[44].mxu0 }
 0x49b   :  { %v8784_v35 = vpop.f32.mrb[45].mxu0 }
 0x4a4   :  { %v11244_v3 = vpop.f32.mrb[46].mxu0 }
 0x4a5   :  { %v8800_v12 = vpop.f32.mrb[47].mxu0 }
 0x4ac   :  { %v11246_v39 = vpop.f32.mrb[48].mxu0 }
 0x4ad   :  { %v8822_v46 = vpop.f32.mrb[49].mxu0 }
 0x4b4   :  { %v11248_v32 = vpop.f32.mrb[50].mxu0 }
 0x4b5   :  { %v8844_v40 = vpop.f32.mrb[51].mxu0 }
 0x4bc   :  { %v11250_v59 = vpop.f32.mrb[52].mxu0 }
 0x4bd   :  { %v8866_v41 = vpop.f32.mrb[53].mxu0 }
 0x4c4   :  { %v11252_v5 = vpop.f32.mrb[54].mxu0 }
 0x4c5   :  { %v8888_v56 = vpop.f32.mrb[55].mxu0 }
 0x4cc   :  { %v11254_v17 = vpop.f32.mrb[56].mxu0 }
 0x4cd   :  { %v8910_v57 = vpop.f32.mrb[57].mxu0 }
 0x4d4   :  { %v11256_v6 = vpop.f32.mrb[58].mxu0 }
 0x4d5   :  { %v8932_v33 = vpop.f32.mrb[59].mxu0 }
 0x4e2   :  { %v4501_v15 = vpop.trf.xlu0 }
 0x4e3   :  { %v4520_v31 = vrot.slane %v4501_v15, %v11750_v54 }
 0x4e5   :  { %v4521_v61 = vmul.f32 %v4520_v31, %v4335_v62  ;;  %v4787_v16 = vpop.trf.xlu1  ;;  %v5102_v31 = vld [vmem:[#allocation8 + $0x70] sm:$0xff]  ;;  %v5103_v62 = vld [vmem:[#allocation8 + $0x78] sm:$0xff] }
 0x4e6   :  { %v4806_v4 = vrot.slane %v4787_v16, %v11750_v54  ;;  %v9368_v43 = vpack.c.bf16 %v5103_v62, %v5102_v31 }
 0x4e7   :  { %v4522_v11 = vadd.f32 1e-08, %v4521_v61  ;;  %v5108_v61 = vld [vmem:[#allocation8 + $0xa0] sm:$0xff] }
 0x4e8   :  { %v4807_v9 = vmul.f32 %v4806_v4, %v4652_v10  ;;  %v9377_v16 = vpack.c.bf16 %v5109_v29, %v5108_v61  ;;  %v5110_v4 = vld [vmem:[#allocation8 + $0xb0] sm:$0xff]  ;;  %v5060_v10 = vld [vmem:[#allocation7] sm:$0xff] }
 0x4e9   :  { %9525 = vrcp.f32 %v4522_v11  ;;  %v5111_v11 = vld [vmem:[#allocation8 + $0xb8] sm:$0xff]  ;;  %v6118_v29 = vld [vmem:[#allocation10 + $0x40] sm:$0xff] }
 0x4ea   :  { %v4808_v34 = vadd.f32 1e-08, %v4807_v9  ;;  %v5061_v9 = vld [vmem:[#allocation7 + $0x8] sm:$0xff] }
 0x4ec   :  { %v4810_v51 = vrot.slane %v4808_v34, 1  ;;  %v9389_v34 = vpack.c.bf16 %v5061_v9, %v5060_v10  ;;  %v6123_v9 = vld [vmem:[#allocation10 + $0x68] sm:$0xff] }
 0x4ee   :  { %9527 = vrcp.f32 %v4810_v51  ;;  %v5062_v51 = vld [vmem:[#allocation7 + $0x10] sm:$0xff] }
 0x4f3   :  { %v9526_v13 = vpop.eup %9525 }
 0x4f4   :  { %v4524_v2 = vmul.f32 %v9526_v13, %v4481_v22  ;;  %v5063_v13 = vld [vmem:[#allocation7 + $0x18] sm:$0xff] }
 0x4f6   :  { %v4525_v23 = vadd.f32 %v4524_v2, %v4291_v7  ;;  %v5069_v2 = vld [vmem:[#allocation7 + $0x48] sm:$0xff] }
 0x4f8   :  { %v9528_v44 = vpop.eup %9527  ;;  %v4527_v49 = vsel %vm4526_vm6, %v4525_v23, -inf }
 0x4f9   :  { %4528 = vmax.xlane.f32.xlu0 %v4527_v49  ;;  %v4813_v20 = vmul.f32 %v9528_v44, %v4764_v36  ;;  %v5070_v44 = vld [vmem:[#allocation7 + $0x50] sm:$0xff]  ;;  %v5071_v49 = vld [vmem:[#allocation7 + $0x58] sm:$0xff] }
 0x4fb   :  { %v4814_v0 = vadd.f32 %v4813_v20, %v4291_v7  ;;  %v5068_v7 = vld [vmem:[#allocation7 + $0x40] sm:$0xff] }
 0x4fc   :  { %v5076_v20 = vld [vmem:[#allocation7 + $0x80] sm:$0xff] }
 0x4fd   :  { %v4815_v52 = vsel %vm4526_vm6, %v4814_v0, -inf }
 0x4fe   :  { %4816 = vmax.xlane.f32.xlu1 %v4815_v52 }
 0x586   :  { %v4529_v18 = vpop.xlane.xlu0 %4528 }
 0x587   :  { %v4530_v30 = vsub.f32 %v4525_v23, %v4529_v18  ;;  %v9401_v23 = vpack.c.bf16 %v5069_v2, %v5068_v7  ;;  %v5078_v18 = vld [vmem:[#allocation7 + $0x90] sm:$0xff] }
 0x589   :  { %v4531_v24 = vmul.f32 1.442695, %v4530_v30  ;;  %v5079_v30 = vld [vmem:[#allocation7 + $0x98] sm:$0xff] }
 0x58b   :  { %9529 = vpow2.f32 %v4531_v24  ;;  %v4817_v14 = vpop.xlane.xlu1 %4816  ;;  %v5084_v24 = vld [vmem:[#allocation7 + $0xc0] sm:$0xff] }
 0x58c   :  { %v4818_v45 = vsub.f32 %v4814_v0, %v4817_v14  ;;  %v5077_v0 = vld [vmem:[#allocation7 + $0x88] sm:$0xff] }
 0x58d   :  { %v9413_v52 = vpack.c.bf16 %v5077_v0, %v5076_v20  ;;  %v5085_v14 = vld [vmem:[#allocation7 + $0xc8] sm:$0xff] }
 0x58e   :  { %v4819_v35 = vmul.f32 1.442695, %v4818_v45  ;;  %v9425_v45 = vpack.c.bf16 %v5085_v14, %v5084_v24 }
 0x590   :  { %9531 = vpow2.f32 %v4819_v35  ;;  %v5086_v35 = vld [vmem:[#allocation7 + $0xd0] sm:$0xff] }
 0x595   :  { %v9530_v22 = vpop.eup %9529 }
 0x596   :  { %v4533_v12 = vsel %vm4526_vm6, %v9530_v22, 0.0 }
 0x597   :  { %4534 = vadd.xlane.f32.xlu0 %v4533_v12  ;;  %v6110_v12 = vld [vmem:[#allocation10] sm:$0xff] }
 0x59a   :  { %v9532_v46 = vpop.eup %9531 }
 0x59b   :  { %v4821_v40 = vsel %vm4526_vm6, %v9532_v46, 0.0 }
 0x59c   :  { %4822 = vadd.xlane.f32.xlu1 %v4821_v40  ;;  %v6114_v40 = vld [vmem:[#allocation10 + $0x20] sm:$0xff] }
 0x624   :  { %v4535_v36 = vpop.xlane.xlu0 %4534 }
 0x625   :  { %9533 = vrcp.f32 %v4535_v36  ;;  %v6115_v36 = vld [vmem:[#allocation10 + $0x28] sm:$0xff] }
 0x629   :  { %v4823_v41 = vpop.xlane.xlu1 %4822 }
 0x62a   :  { %9535 = vrcp.f32 %v4823_v41  ;;  %v6112_v41 = vld [vmem:[#allocation10 + $0x10] sm:$0xff] }
 0x62f   :  { %v9534_v56 = vpop.eup %9533 }
 0x630   :  { %v4537_v57 = vmul.f32 %v9534_v56, %v9530_v22  ;;  %v5087_v22 = vld [vmem:[#allocation7 + $0xd8] sm:$0xff] }
 0x631   :  { %v6113_v56 = vld [vmem:[#allocation10 + $0x18] sm:$0xff] }
 0x632   :  { %8778 = vmatmul.mubr.msk.f32.vlgmr.msra.gmra.mrb[36].mxu1 %vm4557_vm13, %v4537_v57  ;;  %v9437_v57 = vpack.c.bf16 %v6115_v36, %v6114_v40 }
 0x633   :  { %8786 = vmatpush3.msk.msra.mxu1 %vm4561_vm0, %v11198_v1  ;;  %8787 = vmatprep.mubr.msk.f32.mxu1 %vm9674_vm2, %v11728_v19  ;;  %v5100_v1 = vld [vmem:[#allocation8 + $0x60] sm:$0xff] }
 0x634   :  { %v9536_v33 = vpop.eup %9535  ;;  %9352 = vmatprep.subr.bf16.mxu1 %v11729_v37  ;;  %v9365_v15 = vpack.c.bf16 %v5101_v42, %v5100_v1 }
 0x635   :  { %v4825_v26 = vmul.f32 %v9536_v33, %v9532_v46  ;;  %v6111_v46 = vld [vmem:[#allocation10 + $0x8] sm:$0xff]  ;;  %v9434_v33 = vpack.c.bf16 %v6113_v56, %v6112_v41 }
 0x637   :  { %8788 = vmatmul.mubr.msk.f32.vlgmr.msra.gmra.mrb[38].mxu1 %vm4557_vm13, %v4825_v26 }
 0x638   :  { %9354 = vmatpush3.bf16.msra.mxu1 %v9353_v28  ;;  %8809 = vmatprep.mubr.msk.f32.mxu1 %vm9674_vm2, %v11728_v19  ;;  %v9440_v28 = vpack.c.bf16 %v6117_v27, %v6116_v55 }
 0x639   :  { %9355 = vmatprep.subr.bf16.mxu1 %v11729_v37 }
 0x63c   :  { %9357 = vmatpush3.bf16.msra.mxu1 %v9356_v25 }
 0x63d   :  { %9364 = vmatprep.subr.bf16.mxu1 %v11729_v37 }
 0x63f   :  { %8810 = vmatmul.mubr.msk.f32.vlgmr.msra.gmra.mrb[40].mxu1 %vm884_vm5, %v10983_v47  ;;  %v9380_v47 = vpack.c.bf16 %v5111_v11, %v5110_v4  ;;  %v6122_v4 = vld [vmem:[#allocation10 + $0x60] sm:$0xff] }
 0x640   :  { %9366 = vmatpush3.bf16.msra.mxu1 %v9365_v15  ;;  %8831 = vmatprep.mubr.msk.f32.mxu1 %vm9674_vm2, %v11728_v19  ;;  %v9449_v20 = vpack.c.bf16 %v6123_v9, %v6122_v4  ;;  %v6128_v4 = vld [vmem:[#allocation10 + $0x90] sm:$0xff] }
 0x641   :  { %9367 = vmatprep.subr.bf16.mxu1 %v11729_v37 }
 0x644   :  { %9369 = vmatpush3.bf16.msra.mxu1 %v9368_v43 }
 0x645   :  { %9376 = vmatprep.subr.bf16.mxu1 %v11729_v37 }
 0x647   :  { %8832 = vmatmul.mubr.msk.f32.vlgmr.msra.gmra.mrb[42].mxu1 %vm884_vm5, %v11041_v21  ;;  %v9392_v21 = vpack.c.bf16 %v5063_v13, %v5062_v51  ;;  %v6121_v51 = vld [vmem:[#allocation10 + $0x58] sm:$0xff] }
 0x648   :  { %9378 = vmatpush3.bf16.msra.mxu1 %v9377_v16  ;;  %8853 = vmatprep.mubr.msk.f32.mxu1 %vm9674_vm2, %v11728_v19  ;;  %v6119_v16 = vld [vmem:[#allocation10 + $0x48] sm:$0xff] }
 0x649   :  { %9379 = vmatprep.subr.bf16.mxu1 %v11729_v37 }
 0x64c   :  { %9381 = vmatpush3.bf16.msra.mxu1 %v9380_v47 }
 0x64d   :  { %9388 = vmatprep.subr.bf16.mxu1 %v11729_v37 }
 0x64f   :  { %8854 = vmatmul.mubr.msk.f32.vlgmr.msra.gmra.mrb[44].mxu1 %vm884_vm5, %v11092_v63  ;;  %v9404_v63 = vpack.c.bf16 %v5071_v49, %v5070_v44 }
 0x650   :  { %9390 = vmatpush3.bf16.msra.mxu1 %v9389_v34  ;;  %8875 = vmatprep.mubr.msk.f32.mxu1 %vm9674_vm2, %v11728_v19  ;;  %v6120_v34 = vld [vmem:[#allocation10 + $0x50] sm:$0xff] }
 0x651   :  { %9391 = vmatprep.subr.bf16.mxu1 %v11729_v37  ;;  %v9446_v0 = vpack.c.bf16 %v6121_v51, %v6120_v34  ;;  %v6132_v51 = vld [vmem:[#allocation10 + $0xb0] sm:$0xff] }
 0x654   :  { %9393 = vmatpush3.bf16.msra.mxu1 %v9392_v21 }
 0x655   :  { %9400 = vmatprep.subr.bf16.mxu1 %v11729_v37 }
 0x657   :  { %8876 = vmatmul.mubr.msk.f32.vlgmr.msra.gmra.mrb[46].mxu1 %vm884_vm5, %v10847_v38  ;;  %v9416_v38 = vpack.c.bf16 %v5079_v30, %v5078_v18 }
 0x658   :  { %9402 = vmatpush3.bf16.msra.mxu1 %v9401_v23  ;;  %8897 = vmatprep.mubr.msk.f32.mxu1 %vm9674_vm2, %v11728_v19 }
 0x659   :  { %9403 = vmatprep.subr.bf16.mxu1 %v11729_v37 }
 0x65c   :  { %9405 = vmatpush3.bf16.msra.mxu1 %v9404_v63  ;;  %v9443_v63 = vpack.c.bf16 %v6119_v16, %v6118_v29  ;;  %v6131_v29 = vld [vmem:[#allocation10 + $0xa8] sm:$0xff] }
 0x65d   :  { %9412 = vmatprep.subr.bf16.mxu1 %v11729_v37 }
 0x65f   :  { %8898 = vmatmul.mubr.msk.f32.vlgmr.msra.gmra.mrb[48].mxu1 %vm884_vm5, %v10876_v50  ;;  %v9428_v50 = vpack.c.bf16 %v5087_v22, %v5086_v35 }
 0x660   :  { %9414 = vmatpush3.bf16.msra.mxu1 %v9413_v52  ;;  %8919 = vmatprep.mubr.msk.f32.mxu1 %vm9674_vm2, %v11728_v19 }
 0x661   :  { %9415 = vmatprep.subr.bf16.mxu1 %v11729_v37 }
 0x664   :  { %9417 = vmatpush3.bf16.msra.mxu1 %v9416_v38 }
 0x665   :  { %9424 = vmatprep.subr.bf16.mxu1 %v11729_v37 }
 0x667   :  { %8920 = vmatmul.mubr.msk.f32.vlgmr.msra.gmra.mrb[50].mxu1 %vm884_vm5, %v10908_v8  ;;  %v9431_v8 = vpack.c.bf16 %v6111_v46, %v6110_v12 }
 0x668   :  { %9426 = vmatpush3.bf16.msra.mxu1 %v9425_v45  ;;  %8941 = vmatprep.mubr.msk.f32.mxu1 %vm9674_vm2, %v11728_v19 }
 0x669   :  { %9427 = vmatprep.subr.bf16.mxu1 %v11729_v37  ;;  %9432 = vmatpush3.bf16.msra.mxu0 %v9431_v8 }
 0x66a   :  { %9433 = vmatprep.subr.bf16.mxu0 %v11729_v37 }
 0x66c   :  { %9429 = vmatpush3.bf16.msra.mxu1 %v9428_v50 }
 0x66d   :  { %9436 = vmatprep.subr.bf16.mxu1 %v11729_v37  ;;  %9435 = vmatpush3.bf16.msra.mxu0 %v9434_v33 }
 0x66e   :  { %9442 = vmatprep.subr.bf16.mxu0 %v11729_v37 }
 0x66f   :  { %8942 = vmatmul.mubr.msk.f32.vlgmr.msra.gmra.mrb[52].mxu1 %vm884_vm5, %v10926_v48  ;;  %v9677_v48 = vmov 1966171168  }
 0x670   :  { %8963 = vmatprep.mubr.msk.f32.mxu1 %vm9674_vm2, %v11728_v19  ;;  %9438 = vmatpush3.bf16.msra.mxu1 %v9437_v57  ;;  %v4916_v26 = vunpack.c.l.s4 %v9677_v48  ;;  %v6124_v48 = vld [vmem:[#allocation10 + $0x70] sm:$0xff] }
 0x671   :  { %9439 = vmatprep.subr.bf16.mxu1 %v11729_v37 }
 0x672   :  { %v4917_v58 = vunpack.c.0.s8 %v4916_v26  ;;  %v6125_v26 = vld [vmem:[#allocation10 + $0x78] sm:$0xff] }
 0x674   :  { %9441 = vmatpush3.bf16.msra.mxu1 %v9440_v28  ;;  %v4920_v25 = vsub.s32 %v4917_v58, %v11751_v53 }
 0x675   :  { %9448 = vmatprep.subr.bf16.mxu1 %v11729_v37 }
 0x705   :  { %v4630_v1 = vpop.f32.mrb[36].mxu1 }
 0x706   :  { %v4914_v42 = vcombine.high %v4630_v1, %v4630_v1  ;;  %v4921_v15 = vrot.slane %v4630_v1, %v4920_v25  ;;  %v8779_v31 = vpop.f32.mrb[37].mxu1 }
 0x708   :  { %v4928_v62 = vrot.slane %v4914_v42, %v4920_v25  ;;  %v4929_v43 = vcombine.high %v4921_v15, %v4921_v15  ;;  %v4937_v21 = vrot.slane %v4921_v15, %v4920_v25  ;;  %v6127_v42 = vld [vmem:[#allocation10 + $0x88] sm:$0xff] }
 0x70a   :  { %v4909_v61 = vpop.f32.mrb[38].mxu1  ;;  %v4930_v13 = vcombine.high %v4928_v62, %v4928_v62  ;;  %v4944_v7 = vrot.slane %v4928_v62, %v4920_v25  ;;  %v4951_v49 = vrot.slane %v4929_v43, %v4920_v25  ;;  %v4959_v14 = vcombine.high %v4937_v21, %v4937_v21 }
 0x70b   :  { %v4970_v11 = vcombine.high %v4909_v61, %v4909_v61  ;;  %v4977_v47 = vrot.slane %v4909_v61, %v4920_v25  ;;  %v8789_v10 = vpop.f32.mrb[39].mxu1  ;;  %v9452_v43 = vpack.c.bf16 %v6125_v26, %v6124_v48  ;;  %v6130_v61 = vld [vmem:[#allocation10 + $0xa0] sm:$0xff]  ;;  %v7553_v48 = vld [vmem:[%s11662_s19 + $0x10] sm:$0xff]  ;;  %v7554_v26 = vld [vmem:[%s11662_s19 + $0x18] sm:$0xff] }
 0x70c   :  { %v4958_v24 = vrot.slane %v4930_v13, %v4920_v25  ;;  %v4960_v45 = vcombine.high %v4944_v7, %v4944_v7  ;;  %v4961_v40 = vcombine.high %v4951_v49, %v4951_v49  ;;  %v9461_v10 = vpack.c.bf16 %v6131_v29, %v6130_v61  ;;  %v6133_v13 = vld [vmem:[#allocation10 + $0xb8] sm:$0xff] }
 0x70d   :  { %v4984_v2 = vrot.slane %v4970_v11, %v4920_v25  ;;  %v4985_v23 = vcombine.high %v4977_v47, %v4977_v47  ;;  %v4993_v44 = vrot.slane %v4977_v47, %v4920_v25  ;;  %v6129_v11 = vld [vmem:[#allocation10 + $0x98] sm:$0xff] }
 0x70e   :  { %v7957_v29 = vld [vmem:[%s11659_s16] ss:$0 sm:$0xff] }
 0x70f   :  { %v4986_v52 = vcombine.high %v4984_v2, %v4984_v2  ;;  %v5000_v18 = vrot.slane %v4984_v2, %v4920_v25  ;;  %v5007_v30 = vrot.slane %v4985_v23, %v4920_v25  ;;  %v5015_v38 = vcombine.high %v4993_v44, %v4993_v44  ;;  %v6135_v2 = vld [vmem:[#allocation10 + $0xc8] sm:$0xff] }
 0x710   :  { %v5021_v35 = vrot.slane %v4993_v44, %v11750_v54  ;;  %v6136_v44 = vld [vmem:[#allocation10 + $0xd0] sm:$0xff] }
 0x711   :  { %v5014_v22 = vrot.slane %v4986_v52, %v4920_v25  ;;  %v5016_v50 = vcombine.high %v5000_v18, %v5000_v18  ;;  %v5017_v12 = vcombine.high %v5007_v30, %v5007_v30  ;;  %v5025_v46 = vrot.slane %v5007_v30, %v11750_v54  ;;  %v6941_v52 = vld [vmem:[%s11663_s20] sm:$0x1f] }
 0x712   :  { %v5029_v8 = vrot.slane %v5015_v38, %v11750_v54  ;;  %v5037_v36 = vrot.slane %v5000_v18, %v11750_v54  ;;  %v5256_v41 = vpop.f32.mrb[40].mxu1  ;;  %v5053_v56 = vsel %vm848_vm3, %v4937_v21, %v5021_v35  ;;  %v9458_v21 = vpack.c.bf16 %v6129_v11, %v6128_v4  ;;  %v9541_v30 = vld [vmem:[%s11712_s28] sm:$0x3]  ;;  %v6943_v38 = vld [vmem:[%s11663_s20 + $0x10] sm:$0x1f] }
 0x713   :  { %v5033_v57 = vrot.slane %v5017_v12, %v11750_v54  ;;  %v5041_v55 = vrot.slane %v5014_v22, %v11750_v54  ;;  %v5045_v27 = vrot.slane %v5016_v50, %v11750_v54  ;;  %v11332_v33 = vadd.f32 %v11252_v5, %v5256_v41  ;;  %v8811_v28 = vpop.f32.mrb[41].mxu1  ;;  %8953 = vmatmul.mubr.msk.f32.vlgmr.msra.gmra.mrb[60].mxu0 %vm884_vm5, %v5053_v56  ;;  %v6126_v5 = vld [vmem:[#allocation10 + $0x80] sm:$0xff]  ;;  %v6944_v35 = vld [vmem:[%s11663_s20 + $0x18] sm:$0x1f] }
 0x714   :  { %9444 = vmatpush3.bf16.msra.mxu0 %v9443_v63  ;;  %v5054_v58 = vsel %vm848_vm3, %v4951_v49, %v5025_v46  ;;  %8974 = vmatprep.mubr.msk.f32.mxu0 %vm9674_vm2, %v11728_v19  ;;  %v5055_v25 = vsel %vm848_vm3, %v4959_v14, %v5029_v8  ;;  %v5057_v1 = vsel %vm848_vm3, %v4944_v7, %v5037_v36  ;;  %v6134_v7 = vld [vmem:[#allocation10 + $0xc0] sm:$0xff]  ;;  %v6137_v49 = vld [vmem:[#allocation10 + $0xd8] sm:$0xff] }
 0x715   :  { %8964 = vmatmul.mubr.msk.f32.vlgmr.msra.gmra.mrb[54].mxu1 %vm884_vm5, %v5054_v58  ;;  %9445 = vmatprep.subr.bf16.mxu0 %v11729_v37  ;;  %v5056_v15 = vsel %vm848_vm3, %v4961_v40, %v5033_v57  ;;  %v5058_v31 = vsel %vm848_vm3, %v4958_v24, %v5041_v55  ;;  %v11345_v62 = vsel %vm848_vm3, %v4960_v45, %v5045_v27  ;;  %vm6952_vm3 = vcmask 1044480   ;;  %v6945_v22 = vld [vmem:[%s11663_s20 + $0x20] sm:$0x1f]  ;;  %v6946_v12 = vld [vmem:[%s11663_s20 + $0x28] sm:$0x1f] }
 0x716   :  { %9450 = vmatpush3.bf16.msra.mxu1 %v9449_v20  ;;  %8985 = vmatprep.mubr.msk.f32.mxu1 %vm9674_vm2, %v11728_v19  ;;  %v9455_v16 = vpack.c.bf16 %v6127_v42, %v6126_v5  ;;  %v9467_v23 = vpack.c.bf16 %v6135_v2, %v6134_v7  ;;  %v9470_v18 = vpack.c.bf16 %v6137_v49, %v6136_v44  ;;  %v9543_v50 = vld [vmem:[%s11712_s28 + $0x4] sm:$0x3]  ;;  %v9544_v46 = vld [vmem:[%s11712_s28 + $0x6] sm:$0x3]  ;;  %v6947_v40 = vld [vmem:[%s11663_s20 + $0x30] sm:$0x1f] }
 0x717   :  { %9451 = vmatprep.subr.bf16.mxu1 %v11729_v37  ;;  %v7551_v8 = vld [vmem:[%s11662_s19] sm:$0xff]  ;;  %v7552_v36 = vld [vmem:[%s11662_s19 + $0x8] sm:$0xff]  ;;  %v6948_v27 = vld [vmem:[%s11663_s20 + $0x38] sm:$0x1f] }
 0x718   :  { %9447 = vmatpush3.bf16.msra.mxu0 %v9446_v0  ;;  %v9545_v57 = vld [vmem:[%s11712_s28 + $0x8] sm:$0x3]  ;;  %v9473_v28 = vpack.c.bf16 %v7552_v36, %v7551_v8  ;;  %v9547_v58 = vld [vmem:[%s11712_s28 + $0xc] sm:$0x3]  ;;  %v7962_v36 = vld [vmem:[%s11659_s16 + $0x5] ss:$0 sm:$0xff] }
 0x719   :  { %9454 = vmatprep.subr.bf16.mxu0 %v11729_v37 }
 0x71a   :  { %9453 = vmatpush3.bf16.msra.mxu1 %v9452_v43  ;;  %v5400_v47 = vpop.f32.mrb[42].mxu1 }
 0x71b   :  { %v11352_v9 = vadd.f32 %v11254_v17, %v5400_v47  ;;  %8975 = vmatmul.mubr.msk.f32.vlgmr.msra.gmra.mrb[62].mxu0 %vm884_vm5, %v5055_v25  ;;  %v8833_v34 = vpop.f32.mrb[43].mxu1  ;;  %9460 = vmatprep.subr.bf16.mxu1 %v11729_v37  ;;  %v9464_v17 = vpack.c.bf16 %v6133_v13, %v6132_v51  ;;  %v9476_v25 = vpack.c.bf16 %v7554_v26, %v7553_v48  ;;  %v7965_v13 = vld [vmem:[%s11660_s17 + $0x1] ss:$0 sm:$0xff]  ;;  %v7969_v26 = vld [vmem:[%s11660_s17 + $0x5] ss:$0 sm:$0xff] }
 0x71c   :  { %9456 = vmatpush3.bf16.msra.mxu0 %v9455_v16  ;;  %8996 = vmatprep.mubr.msk.f32.mxu0 %vm9674_vm2, %v11728_v19 }
 0x71d   :  { %8986 = vmatmul.mubr.msk.f32.vlgmr.msra.gmra.mrb[56].mxu1 %vm884_vm5, %v5056_v15  ;;  %9457 = vmatprep.subr.bf16.mxu0 %v11729_v37 }
 0x71e   :  { %9462 = vmatpush3.bf16.msra.mxu1 %v9461_v10  ;;  %9007 = vmatprep.mubr.msk.f32.mxu1 %vm9674_vm2, %v11728_v19 }
 0x71f   :  { %9463 = vmatprep.subr.bf16.mxu1 %v11729_v37 }
 0x720   :  { %9459 = vmatpush3.bf16.msra.mxu0 %v9458_v21 }
 0x721   :  { %9466 = vmatprep.subr.bf16.mxu0 %v11729_v37 }
 0x722   :  { %9465 = vmatpush3.bf16.msra.mxu1 %v9464_v17  ;;  %v5544_v63 = vpop.f32.mrb[44].mxu1  ;;  %v7959_v17 = vld [vmem:[%s11659_s16 + $0x2] ss:$0 sm:$0xff] }
 0x723   :  { %v11365_v20 = vadd.f32 %v11256_v6, %v5544_v63  ;;  %8997 = vmatmul.mubr.msk.f32.vlgmr.msra.gmra.mrb[64].mxu0 %vm884_vm5, %v5057_v1  ;;  %v8855_v0 = vpop.f32.mrb[45].mxu1  ;;  %9021 = vmatprep.subr.mxu1 %v11728_v19  ;;  %v6942_v6 = vld [vmem:[%s11663_s20 + $0x8] sm:$0x1f]  ;;  %v9548_v1 = vld [vmem:[%s11712_s28 + $0xe] sm:$0x3] }
 0x724   :  { %9468 = vmatpush3.bf16.msra.mxu0 %v9467_v23  ;;  %9018 = vmatprep.mubr.msk.f32.mxu0 %vm9674_vm2, %v11728_v19  ;;  %v7960_v0 = vld [vmem:[%s11659_s16 + $0x3] ss:$0 sm:$0xff] }
 0x725   :  { %9008 = vmatmul.mubr.msk.f32.vlgmr.msra.gmra.mrb[58].mxu1 %vm884_vm5, %v5058_v31  ;;  %9469 = vmatprep.subr.bf16.mxu0 %v11729_v37 }
 0x726   :  { %9022 = vmatpush3.msk.msra.mxu1 %vm6952_vm3, %v6941_v52  ;;  %9023 = vmatprep.mubr.msk.f32.mxu1 %vm9674_vm2, %v11728_v19 }
 0x727   :  { %9026 = vmatprep.subr.mxu1 %v11728_v19 }
 0x728   :  { %9471 = vmatpush3.bf16.msra.mxu0 %v9470_v18 }
 0x729   :  { %9024 = vmatmul.mubr.msk.f32.vlgmr.msra.gmra.mrb[60].mxu1 %vm6949_vm14, %v9541_v30  ;;  %9031 = vmatprep.subr.mxu0 %v11728_v19 }
 0x72a   :  { %v5686_v24 = vpop.f32.mrb[46].mxu1  ;;  %9027 = vmatpush3.msk.msra.mxu1 %vm6952_vm3, %v6942_v6  ;;  %9028 = vmatprep.mubr.msk.f32.mxu1 %vm9674_vm2, %v11728_v19 }
 0x72b   :  { %v11395_v14 = vadd.f32 %v5686_v24, %v11244_v3  ;;  %9019 = vmatmul.mubr.msk.f32.vlgmr.msra.gmra.mrb[66].mxu0 %vm884_vm5, %v11345_v62  ;;  %v8877_v45 = vpop.f32.mrb[47].mxu1  ;;  %9036 = vmatprep.subr.mxu1 %v11728_v19  ;;  %v9542_v3 = vld [vmem:[%s11712_s28 + $0x2] sm:$0x3] }
 0x72c   :  { %9032 = vmatpush3.msk.msra.mxu0 %vm6952_vm3, %v6943_v38  ;;  %9033 = vmatprep.mubr.msk.f32.mxu0 %vm9674_vm2, %v11728_v19  ;;  %v7966_v38 = vld [vmem:[%s11660_s17 + $0x2] ss:$0 sm:$0xff]  ;;  %v7967_v45 = vld [vmem:[%s11660_s17 + $0x3] ss:$0 sm:$0xff] }
 0x72d   :  { %9029 = vmatmul.mubr.msk.f32.vlgmr.msra.gmra.mrb[62].mxu1 %vm6949_vm14, %v9542_v3  ;;  %9041 = vmatprep.subr.mxu0 %v11728_v19 }
 0x72e   :  { %9037 = vmatpush3.msk.msra.mxu1 %vm6952_vm3, %v6944_v35  ;;  %9038 = vmatprep.mubr.msk.f32.mxu1 %vm9674_vm2, %v11728_v19 }
 0x72f   :  { %9034 = vmatmul.mubr.msk.f32.vlgmr.msra.gmra.mrb[68].mxu0 %vm6949_vm14, %v9543_v50  ;;  %9046 = vmatprep.subr.mxu1 %v11728_v19 }
 0x730   :  { %9042 = vmatpush3.msk.msra.mxu0 %vm6952_vm3, %v6945_v22  ;;  %9043 = vmatprep.mubr.msk.f32.mxu0 %vm9674_vm2, %v11728_v19 }
 0x731   :  { %9039 = vmatmul.mubr.msk.f32.vlgmr.msra.gmra.mrb[64].mxu1 %vm6949_vm14, %v9544_v46  ;;  %9051 = vmatprep.subr.mxu0 %v11728_v19 }
 0x732   :  { %v5826_v41 = vpop.f32.mrb[48].mxu1  ;;  %9047 = vmatpush3.msk.msra.mxu1 %vm6952_vm3, %v6946_v12  ;;  %9048 = vmatprep.mubr.msk.f32.mxu1 %vm9674_vm2, %v11728_v19 }
 0x733   :  { %v5827_v56 = vadd.f32 %v5826_v41, %v11246_v39  ;;  %9044 = vmatmul.mubr.msk.f32.vlgmr.msra.gmra.mrb[70].mxu0 %vm6949_vm14, %v9545_v57  ;;  %v8899_v55 = vpop.f32.mrb[49].mxu1  ;;  %9056 = vmatprep.subr.mxu1 %v11728_v19  ;;  %v9546_v39 = vld [vmem:[%s11712_s28 + $0xa] sm:$0x3] }
 0x734   :  { %9052 = vmatpush3.msk.msra.mxu0 %vm6952_vm3, %v6947_v40  ;;  %9053 = vmatprep.mubr.msk.f32.mxu0 %vm9674_vm2, %v11728_v19 }
 0x735   :  { %9472 = vmatprep.subr.bf16.mxu0 %v11729_v37  ;;  %9049 = vmatmul.mubr.msk.f32.vlgmr.msra.gmra.mrb[66].mxu1 %vm6949_vm14, %v9546_v39 }
 0x736   :  { %9057 = vmatpush3.msk.msra.mxu1 %vm6952_vm3, %v6948_v27  ;;  %9058 = vmatprep.mubr.msk.f32.mxu1 %vm9674_vm2, %v11728_v19  ;;  %v7968_v27 = vld [vmem:[%s11660_s17 + $0x4] ss:$0 sm:$0xff] }
 0x737   :  { %9054 = vmatmul.mubr.msk.f32.vlgmr.msra.gmra.mrb[72].mxu0 %vm6949_vm14, %v9547_v58  ;;  %9072 = vmatprep.subr.mxu1 %v11728_v19 }
 0x738   :  { %9474 = vmatpush3.bf16.msra.mxu0 %v9473_v28  ;;  %9069 = vmatprep.mubr.msk.f32.mxu0 %vm9674_vm2, %v11728_v19 }
 0x739   :  { %9475 = vmatprep.subr.bf16.mxu0 %v11729_v37  ;;  %9059 = vmatmul.mubr.msk.f32.vlgmr.msra.gmra.mrb[68].mxu1 %vm6949_vm14, %v9548_v1 }
 0x73a   :  { %v5966_v5 = vpop.f32.mrb[50].mxu1  ;;  %9074 = vmatprep.mubr.msk.f32.mxu1 %vm9674_vm2, %v11728_v19 }
 0x73b   :  { %v5967_v42 = vadd.f32 %v5966_v5, %v11248_v32  ;;  %v8921_v15 = vpop.f32.mrb[51].mxu1  ;;  %v7958_v32 = vld [vmem:[%s11659_s16 + $0x1] ss:$0 sm:$0xff] }
 0x73c   :  { %9477 = vmatpush3.bf16.msra.mxu0 %v9476_v25 }
 0x73f   :  { %9070 = vmatmul.mubr.msk.f32.vlgmr.msra.gmra.mrb[74].mxu0 %vm884_vm5, %v10850_v60  ;;  %vm6775_vm5 = vcmask 1041408  }
 0x742   :  { %v6106_v31 = vpop.f32.mrb[52].mxu1 }
 0x743   :  { %v11489_v62 = vadd.f32 %v6106_v31, %v11250_v59  ;;  %v8943_v43 = vpop.f32.mrb[53].mxu1  ;;  %v7964_v59 = vld [vmem:[%s11660_s17] ss:$0 sm:$0xff] }
 0x7e6   :  { %v6207_v61 = vpop.f32.mrb[60].mxu0 }
 0x7e7   :  { %v6649_v16 = vadd.f32 %v6207_v61, %v11395_v14  ;;  %v8954_v4 = vpop.f32.mrb[61].mxu0 }
 0x7e8   :  { %v6280_v11 = vpop.f32.mrb[54].mxu1 }
 0x7e9   :  { %v6705_v47 = vadd.f32 %v7957_v29, %v6649_v16  ;;  %v6650_v60 = vadd.f32 %v6280_v11, %v11332_v33  ;;  %v8965_v10 = vpop.f32.mrb[55].mxu1 }
 0x7ea   :  { %v7970_v10 = vld [vmem:[%s11660_s17 + $0x6] ss:$0 sm:$0xff] }
 0x7eb   :  { %v6712_v34 = vmax.f32 %v6705_v47, 0.0  ;;  %v6706_v51 = vadd.f32 %v7958_v32, %v6650_v60 }
 0x7ed   :  { %v6713_v21 = vmax.f32 %v6706_v51, 0.0  ;;  %v6768_v7 = vmul.f32 %v7964_v59, %v6712_v34 }
 0x7ee   :  { %v6353_v2 = vpop.f32.mrb[62].mxu0 }
 0x7ef   :  { %v6651_v33 = vadd.f32 %v6353_v2, %v5827_v56  ;;  %v8976_v23 = vpop.f32.mrb[63].mxu0  ;;  %v6776_v44 = vsel %vm6775_vm5, %v6768_v7, 0.0  ;;  %v6769_v49 = vmul.f32 %v7965_v13, %v6713_v21 }
 0x7f0   :  { %v6426_v63 = vpop.f32.mrb[56].mxu1  ;;  %6777 = vadd.xlane.f32.xlu0 %v6776_v44 }
 0x7f1   :  { %v6707_v52 = vadd.f32 %v7959_v17, %v6651_v33  ;;  %v6652_v18 = vadd.f32 %v6426_v63, %v11352_v9  ;;  %v8987_v6 = vpop.f32.mrb[57].mxu1  ;;  %v6779_v30 = vsel %vm6775_vm5, %v6769_v49, 0.0  ;;  %v7961_v9 = vld [vmem:[%s11659_s16 + $0x4] ss:$0 sm:$0xff] }
 0x7f2   :  { %6780 = vadd.xlane.f32.xlu1 %v6779_v30 }
 0x7f3   :  { %v6714_v24 = vmax.f32 %v6707_v52, 0.0  ;;  %v6708_v14 = vadd.f32 %v7960_v0, %v6652_v18 }
 0x7f5   :  { %v6715_v35 = vmax.f32 %v6708_v14, 0.0  ;;  %v6770_v3 = vmul.f32 %v7966_v38, %v6714_v24 }
 0x7f6   :  { %v6499_v22 = vpop.f32.mrb[64].mxu0 }
 0x7f7   :  { %v6653_v50 = vadd.f32 %v6499_v22, %v5967_v42  ;;  %v8998_v12 = vpop.f32.mrb[65].mxu0  ;;  %v6782_v46 = vsel %vm6775_vm5, %v6770_v3, 0.0  ;;  %v6771_v40 = vmul.f32 %v7967_v45, %v6715_v35  ;;  %v7963_v42 = vld [vmem:[%s11659_s16 + $0x6] ss:$0 sm:$0xff] }
 0x7f8   :  { %6783 = vadd.xlane.f32.xlu0 %v6782_v46  ;;  %v6572_v8 = vpop.f32.mrb[58].mxu1 }
 0x7f9   :  { %v6709_v41 = vadd.f32 %v7961_v9, %v6653_v50  ;;  %v6654_v56 = vadd.f32 %v6572_v8, %v11365_v20  ;;  %v9009_v57 = vpop.f32.mrb[59].mxu1  ;;  %v6785_v55 = vsel %vm6775_vm5, %v6771_v40, 0.0  ;;  %v6797_v9 = vld [vmem:[%s11661_s18] sm:$0x7f] }
 0x7fa   :  { %6786 = vadd.xlane.f32.xlu1 %v6785_v55  ;;  %v11752_v55 = vld [vmem:[#allocation19_spill] sm:$0xff] }
 0x7fb   :  { %v6716_v28 = vmax.f32 %v6709_v41, 0.0  ;;  %v6710_v39 = vadd.f32 %v7962_v36, %v6654_v56  ;;  %v6816_v41 = vsub.s32 3, %v11751_v53 }
 0x7fc   :  { %v7022_v48 = vpop.f32.mrb[60].mxu1 }
 0x7fd   :  { %v6717_v58 = vmax.f32 %v6710_v39, 0.0  ;;  %v6772_v25 = vmul.f32 %v7968_v27, %v6716_v28  ;;  %v7555_v1 = vsel %vm6775_vm5, %v7022_v48, 0.0  ;;  %v9025_v20 = vpop.f32.mrb[61].mxu1  ;;  %v6820_v39 = vsub.s32 4, %v11751_v53 }
 0x7fe   :  { %v6645_v5 = vpop.f32.mrb[66].mxu0  ;;  %v6824_v48 = vsub.s32 5, %v11751_v53 }
 0x7ff   :  { %v6655_v15 = vadd.f32 %v6645_v5, %v11489_v62  ;;  %v9020_v31 = vpop.f32.mrb[67].mxu0  ;;  %v6788_v43 = vsel %vm6775_vm5, %v6772_v25, 0.0  ;;  %v6773_v61 = vmul.f32 %v7969_v26, %v6717_v58  ;;  %v11753_v25 = vld [vmem:[#allocation20_spill] sm:$0xff] }
 0x800   :  { %6789 = vadd.xlane.f32.xlu0 %v6788_v43  ;;  %v7097_v29 = vpop.f32.mrb[62].mxu1 }
 0x801   :  { %v6711_v16 = vadd.f32 %v7963_v42, %v6655_v15  ;;  %v6791_v4 = vsel %vm6775_vm5, %v6773_v61, 0.0  ;;  %v7556_v11 = vsel %vm6775_vm5, %v7097_v29, 0.0  ;;  %v9030_v32 = vpop.f32.mrb[63].mxu1  ;;  %v6828_v42 = vsub.s32 6, %v11751_v53 }
 0x802   :  { %6792 = vadd.xlane.f32.xlu1 %v6791_v4  ;;  %v7557_v47 = vadd.f32 %v7556_v11, %v7555_v1  ;;  %v7172_v60 = vpop.f32.mrb[68].mxu0 }
 0x803   :  { %v6718_v62 = vmax.f32 %v6711_v16, 0.0  ;;  %v7558_v59 = vsel %vm6775_vm5, %v7172_v60, 0.0  ;;  %v9035_v34 = vpop.f32.mrb[69].mxu0  ;;  %v11754_v60 = vlaneseq }
 0x804   :  { %v7559_v51 = vadd.f32 %v7558_v59, %v7557_v47  ;;  %v7247_v13 = vpop.f32.mrb[64].mxu1  ;;  %v7643_v47 = vld [vmem:[%s11664_s21] sm:$0x7f] }
 0x805   :  { %v7560_v21 = vsel %vm6775_vm5, %v7247_v13, 0.0  ;;  %v6774_v7 = vmul.f32 %v7970_v10, %v6718_v62  ;;  %v9040_v2 = vpop.f32.mrb[65].mxu1  ;;  %9073 = vmatpush3.msk.msra.mxu1 %vm4561_vm0, %v7643_v47  ;;  %v6873_v10 = vand.u32 127, %v11754_v60 }
 0x806   :  { %v7561_v17 = vadd.f32 %v7560_v21, %v7559_v51  ;;  %v7322_v33 = vpop.f32.mrb[70].mxu0  ;;  %9478 = vmatprep.subr.bf16.mxu1 %v11729_v37 }
 0x807   :  { %v7562_v23 = vsel %vm6775_vm5, %v7322_v33, 0.0  ;;  %v6794_v44 = vsel %vm6775_vm5, %v6774_v7, 0.0  ;;  %v9045_v49 = vpop.f32.mrb[71].mxu0  ;;  %v6876_v62 = vsub.s32 %v6873_v10, %v11751_v53 }
 0x808   :  { %v7563_v63 = vadd.f32 %v7562_v23, %v7561_v17  ;;  %6795 = vadd.xlane.f32.xlu0 %v6794_v44  ;;  %v7397_v0 = vpop.f32.mrb[66].mxu1 }
 0x809   :  { %v7564_v52 = vsel %vm6775_vm5, %v7397_v0, 0.0  ;;  %v9050_v18 = vpop.f32.mrb[67].mxu1 }
 0x80a   :  { %v7565_v6 = vadd.f32 %v7564_v52, %v7563_v63  ;;  %v7472_v30 = vpop.f32.mrb[72].mxu0 }
 0x80b   :  { %v7566_v38 = vsel %vm6775_vm5, %v7472_v30, 0.0  ;;  %v9055_v24 = vpop.f32.mrb[73].mxu0 }
 0x80c   :  { %v7567_v14 = vadd.f32 %v7566_v38, %v7565_v6  ;;  %v7547_v45 = vpop.f32.mrb[68].mxu1  ;;  %v7730_v24 = vld [vmem:[%s11666_s23] sm:$0xff] }
 0x80d   :  { %v7568_v35 = vsel %vm6775_vm5, %v7547_v45, 0.0  ;;  %v9060_v3 = vpop.f32.mrb[69].mxu1 }
 0x80e   :  { %v7569_v22 = vadd.f32 %v7568_v35, %v7567_v14  ;;  %v7731_v14 = vld [vmem:[%s11666_s23 + $0x8] sm:$0xff]  ;;  %v7732_v35 = vld [vmem:[%s11666_s23 + $0x10] sm:$0xff]  ;;  %v7733_v3 = vld [vmem:[%s11666_s23 + $0x18] sm:$0xff] }
 0x80f   :  { %v9479_v45 = vpack.c.bf16 %v7731_v14, %v7730_v24 }
 0x812   :  { %v7639_v50 = vpop.f32.mrb[74].mxu0 }
 0x813   :  { %v11556_v12 = vadd.f32 %v7639_v50, %v7569_v22  ;;  %v9071_v46 = vpop.f32.mrb[75].mxu0  ;;  %6800 = vperm.xlu1 %9516, %v6797_v9   ;;  %v9482_v9 = vpack.c.bf16 %v7733_v3, %v7732_v35  ;;  %v7734_v50 = vld [vmem:[%s11666_s23 + $0x20] sm:$0xff] }
 0x814   :  { %v7735_v46 = vld [vmem:[%s11666_s23 + $0x28] sm:$0xff] }
 0x87d   :  { %v6778_v56 = vpop.xlane.xlu0 %6777 }
 0x87f   :  { %v6781_v40 = vpop.xlane.xlu1 %6780 }
 0x885   :  { %v6784_v5 = vpop.xlane.xlu0 %6783 }
 0x887   :  { %v6787_v8 = vpop.xlane.xlu1 %6786 }
 0x88d   :  { %v6790_v29 = vpop.xlane.xlu0 %6789 }
 0x88f   :  { %v6793_v36 = vpop.xlane.xlu1 %6792 }
 0x893   :  { %v6801_v57 = vpop.permute.xlu1 %6800 }
 0x894   :  { %v6809_v27 = vrot.slane %v6801_v57, %v11752_v55  ;;  %v6805_v28 = vrot.slane %v6801_v57, %v11750_v54  ;;  %v6813_v1 = vrot.slane %v6801_v57, %v11753_v25  ;;  %v6817_v20 = vrot.slane %v6801_v57, %v6816_v41  ;;  %v7738_v41 = vld [vmem:[%s11666_s23 + $0x40] sm:$0xff]  ;;  %v7740_v55 = vld [vmem:[%s11666_s23 + $0x50] sm:$0xff]  ;;  %v7745_v25 = vld [vmem:[%s11666_s23 + $0x78] sm:$0xff] }
 0x895   :  { %v6821_v43 = vrot.slane %v6801_v57, %v6820_v39  ;;  %v6825_v61 = vrot.slane %v6801_v57, %v6824_v48  ;;  %v6829_v54 = vrot.slane %v6801_v57, %v6828_v42  ;;  %v6796_v11 = vpop.xlane.xlu0 %6795  ;;  %v7742_v39 = vld [vmem:[%s11666_s23 + $0x60] sm:$0xff]  ;;  %v7743_v48 = vld [vmem:[%s11666_s23 + $0x68] sm:$0xff] }
 0x896   :  { %v6838_v26 = vadd.f32 %v6809_v27, %v6781_v40  ;;  %v6837_v58 = vadd.f32 %v6805_v28, %v6778_v56  ;;  %v6839_v15 = vadd.f32 %v6813_v1, %v6784_v5  ;;  %v6840_v31 = vadd.f32 %v6817_v20, %v6787_v8  ;;  %v7736_v8 = vld [vmem:[%s11666_s23 + $0x30] sm:$0xff]  ;;  %v7739_v56 = vld [vmem:[%s11666_s23 + $0x48] sm:$0xff]  ;;  %v7741_v27 = vld [vmem:[%s11666_s23 + $0x58] sm:$0xff] }
 0x897   :  { %v6841_v16 = vadd.f32 %v6821_v43, %v6790_v29  ;;  %v6842_v4 = vadd.f32 %v6825_v61, %v6793_v36  ;;  %v6843_v32 = vadd.f32 %v6829_v54, %v6796_v11  ;;  %v9485_v40 = vpack.c.bf16 %v7735_v46, %v7734_v50  ;;  %v7990_v5 = vld [vmem:[%s11665_s22] ss:$0 sm:$0xff]  ;;  %s11755_s22 = sld [smem:[#allocation37_spill]] }
 0x898   :  { %6855 = vperm.xlu1 %9516, %v6838_v26   ;;  %6852 = vperm.xlu0 %9515, %v6837_v58   ;;  %v9491_v57 = vpack.c.bf16 %v7739_v56, %v7738_v41  ;;  %v9494_v28 = vpack.c.bf16 %v7741_v27, %v7740_v55  ;;  %v7744_v26 = vld [vmem:[%s11666_s23 + $0x70] sm:$0xff]  ;;  %v9497_v58 = vpack.c.bf16 %v7743_v48, %v7742_v39  ;;  %v7991_v61 = vld [vmem:[#allocation2] ss:$0 sm:$0xff] }
 0x899   :  { %v9500_v1 = vpack.c.bf16 %v7745_v25, %v7744_v26 }
 0x89c   :  { %6858 = vperm.xlu1 %9516, %v6839_v15   ;;  %6861 = vperm.xlu0 %9515, %v6840_v31  }
 0x8a0   :  { %6864 = vperm.xlu1 %9516, %v6841_v16   ;;  %6867 = vperm.xlu0 %9515, %v6842_v4  }
 0x8a4   :  { %6870 = vperm.xlu1 %9516, %v6843_v32  }
 0x917   :  { %v6856_v59 = vpop.permute.xlu1 %6855  ;;  %v6853_v34 = vpop.permute.xlu0 %6852 }
 0x918   :  { %v6881_v51 = vrot.slane %v6856_v59, %v6876_v62  ;;  %v6877_v13 = vrot.slane %v6853_v34, %v6876_v62 }
 0x91a   :  { %v6902_v17 = vsel %vm4307_vm7, %v6881_v51, %v6877_v13 }
 0x91b   :  { %v6859_v21 = vpop.permute.xlu1 %6858  ;;  %v6862_v7 = vpop.permute.xlu0 %6861 }
 0x91c   :  { %v6885_v2 = vrot.slane %v6859_v21, %v6876_v62  ;;  %v6889_v33 = vrot.slane %v6862_v7, %v6876_v62 }
 0x91e   :  { %v6903_v23 = vsel %vm4310_vm8, %v6885_v2, %v6902_v17 }
 0x91f   :  { %v6865_v44 = vpop.permute.xlu1 %6864  ;;  %v6868_v49 = vpop.permute.xlu0 %6867  ;;  %v6904_v0 = vsel %vm4313_vm9, %v6889_v33, %v6903_v23 }
 0x920   :  { %v6893_v63 = vrot.slane %v6865_v44, %v6876_v62  ;;  %v6897_v52 = vrot.slane %v6868_v49, %v6876_v62 }
 0x922   :  { %v6905_v53 = vsel %vm4316_vm10, %v6893_v63, %v6904_v0 }
 0x923   :  { %v6871_v18 = vpop.permute.xlu1 %6870  ;;  %v6906_v30 = vsel %vm4319_vm11, %v6897_v52, %v6905_v53 }
 0x924   :  { %v6901_v6 = vrot.slane %v6871_v18, %v6876_v62 }
 0x926   :  { %v6907_v38 = vsel %vm4322_vm12, %v6901_v6, %v6906_v30 }
 0x927   :  { %6909 = vxpose.xlu0.b32.start.end [1/1] (short) (narrow) %v6907_v38, 8 }
 0x9a7   :  { %v6925_v22 = vpop.trf.xlu0 }
 0x9a8   :  { %9075 = vmatmul.mubr.msk.f32.vlgmr.msra.gmra.mrb[70].mxu1 %vm4557_vm13, %v6925_v22 }
 0x9a9   :  { %9480 = vmatpush3.bf16.msra.mxu1 %v9479_v45  ;;  %9109 = vmatprep.mubr.msk.f32.mxu1 %vm9674_vm2, %v11728_v19  ;;  %v7737_v19 = vld [vmem:[%s11666_s23 + $0x38] sm:$0xff]  ;;  %vm7829_vm2 = vcmask 1024  }
 0x9aa   :  { %9481 = vmatprep.subr.bf16.mxu1 %v11729_v37  ;;  %v9488_v36 = vpack.c.bf16 %v7737_v19, %v7736_v8 }
 0x9ad   :  { %9483 = vmatpush3.bf16.msra.mxu1 %v9482_v9 }
 0x9ae   :  { %9484 = vmatprep.subr.bf16.mxu1 %v11729_v37 }
 0x9b1   :  { %9486 = vmatpush3.bf16.msra.mxu1 %v9485_v40 }
 0x9b2   :  { %9487 = vmatprep.subr.bf16.mxu1 %v11729_v37 }
 0x9b5   :  { %9489 = vmatpush3.bf16.msra.mxu1 %v9488_v36 }
 0x9b6   :  { %9490 = vmatprep.subr.bf16.mxu1 %v11729_v37 }
 0x9b9   :  { %9492 = vmatpush3.bf16.msra.mxu1 %v9491_v57 }
 0x9ba   :  { %9493 = vmatprep.subr.bf16.mxu1 %v11729_v37 }
 0x9bd   :  { %9495 = vmatpush3.bf16.msra.mxu1 %v9494_v28 }
 0x9be   :  { %9496 = vmatprep.subr.bf16.mxu1 %v11729_v37 }
 0x9c1   :  { %9498 = vmatpush3.bf16.msra.mxu1 %v9497_v58 }
 0x9c2   :  { %9499 = vmatprep.subr.bf16.mxu1 %v11729_v37 }
 0x9c5   :  { %9501 = vmatpush3.bf16.msra.mxu1 %v9500_v1 }
 0xa7b   :  { %v7716_v20 = vpop.f32.mrb[70].mxu1 }
 0xa7c   :  { %v7720_v42 = vadd.f32 %v7716_v20, %v11556_v12  ;;  %v9076_v15 = vpop.f32.mrb[71].mxu1 }
 0xa7e   :  { %v7728_v31 = vadd.f32 %v7990_v5, %v7720_v42 }
 0xa80   :  { %v7729_v43 = vmax.f32 %v7728_v31, 0.0 }
 0xa82   :  { %9110 = vmatmul.mubr.f32.vlgmr.msra.gmra.mrb[72].mxu1 %v7729_v43 }
 0xb55   :  { %v7819_v29 = vpop.f32.mrb[72].mxu1 }
 0xb56   :  { %v7820_v54 = vadd.f32 %v7991_v61, %v7819_v29  ;;  %v9111_v16 = vpop.f32.mrb[73].mxu1 }
 0xb58   :  { %v7992_v4 = vmul.f32 -1.442695, %v7820_v54 }
 0xb5a   :  { %9537 = vpow2.f32 %v7992_v4 }
 0xb64   :  { %v9538_v11 = vpop.eup %9537 }
 0xb65   :  { %v7826_v37 = vadd.f32 1.0, %v9538_v11 }
 0xb67   :  { %9539 = vrcp.f32 %v7826_v37 }
 0xb71   :  { %v9540_v32 = vpop.eup %9539 }
 0xb72   :  { %7830 = vst.msk [vmem:[%s11755_s22] sm:$0x3] %vm7829_vm2, %v9540_v32 }
 0xb73   :  { %7835 = vsyncpa [#allocation4], 1 }
 0xb74   :  { %7836 = vsyncpa [#allocation6], 1 }
 0xb75   :  { %7837 = vsyncpa [#allocation9], 1 }

</bundles_post_ra>
